<compile_context>
chip_gen: v7x
topology: tpu7x:2x2x1
jax: 0.10.0
libtpu: 0.0.40
codegen_flags: <defaults>
</compile_context>

<pallas_src>
import jax
import jax.numpy as jnp
from jax.experimental import pallas as pl
from jax.experimental.pallas import tpu as pltpu

K_IN = 794           # 784 flattened pixels + 10 condition classes
K_PAD = 896          # 7 * 128, lane-aligned padding of the first layer's K
H1, H2, H3 = 1024, 512, 256
SLOPE = 0.2          # nn.LeakyReLU(0.2) per the PyTorch spec


def _round_up(n, m):
    return ((n + m - 1) // m) * m


def _leaky_relu(x, slope=SLOPE):
    # max-form: 2 VPU ops instead of cmp+select+mul (valid for 0 <= slope <= 1).
    return jnp.maximum(x, slope * x)


def discriminator_kernel(xc_ref,
                         w1_ref, b1_ref,
                         w2_ref, b2_ref,
                         w3_ref, b3_ref,
                         w4_ref, b4_ref,
                         out_ref):
    # xc arrives already in bf16 (cast fused into the wrapper concat), K padded
    # to 896. Dropout = identity (inference).
    # Linear(794->1024) + LeakyReLU; bias add in f32, leaky on the bf16 copy
    # that feeds the next MXU pass.
    h1 = (jnp.dot(xc_ref[...], w1_ref[...], preferred_element_type=jnp.float32)
          + b1_ref[...]).astype(jnp.bfloat16)
    h1 = _leaky_relu(h1)

    # Linear(1024->512) + LeakyReLU
    h2 = (jnp.dot(h1, w2_ref[...], preferred_element_type=jnp.float32)
          + b2_ref[...]).astype(jnp.bfloat16)
    h2 = _leaky_relu(h2)

    # Linear(512->256) + LeakyReLU (kept in f32: feeds the VPU, not the MXU).
    h3 = jnp.dot(h2, w3_ref[...], preferred_element_type=jnp.float32) + b3_ref[...]
    h3 = _leaky_relu(h3)

    # Linear(256->1): broadcast multiply + lane reduction on the VPU/XLU
    # (an N=1 MXU pass would be wasted). Scalar bias from SMEM.
    logits = jnp.sum(h3 * w4_ref[...], axis=-1, keepdims=True) + b4_ref[0, 0]  # (tb, 1)
    # Lane-dense store: transpose the column to a (1, tb) row (cheap XLU op).
    out_ref[...] = jnp.transpose(jax.nn.sigmoid(logits))


def init_params(key):
    """Deterministic init mimicking torch.nn.Linear default (U[-1/sqrt(fan_in), +])."""
    dims = [(K_IN, H1), (H1, H2), (H2, H3), (H3, 1)]
    params = []
    for fan_in, fan_out in dims:
        kw, kb, key = jax.random.split(key, 3)
        bound = 1.0 / jnp.sqrt(float(fan_in))
        w = jax.random.uniform(kw, (fan_in, fan_out), jnp.float32, -bound, bound)
        b = jax.random.uniform(kb, (1, fan_out), jnp.float32, -bound, bound)
        params.append((w, b))
    return params


def prepare_params(params):
    """One-time weight prep (pad + bf16 cast), hoisted off the forward path."""
    (w1, b1), (w2, b2), (w3, b3), (w4, b4) = params
    return (
        jnp.pad(w1, ((0, K_PAD - K_IN), (0, 0))).astype(jnp.bfloat16),  # (896, 1024)
        b1.reshape(1, H1).astype(jnp.float32),
        w2.astype(jnp.bfloat16),                                        # (1024, 512)
        b2.reshape(1, H2).astype(jnp.float32),
        w3.astype(jnp.bfloat16),                                        # (512, 256)
        b3.reshape(1, H3).astype(jnp.float32),
        w4.reshape(1, H3).astype(jnp.float32),                          # VPU row
        b4.reshape(1, 1).astype(jnp.float32),                           # SMEM scalar
    )


def _choose_batch_tile(B, batch_tile):
    """Batch (M) tile. Keep >= 256 on every generation (incl. v5e); prefer a
    grid of >= 2 steps when the batch is big enough (v7x megacore split)."""
    b8 = _round_up(B, 8)
    if b8 <= batch_tile:
        if b8 >= 512:  # big enough to split across 2 TCs without M < 256
            return _round_up((b8 + 1) // 2, 128)
        return b8      # single full-extent block
    # Multi-step grid: keep the tile lane-aligned (it is the output block's lanes).
    return _round_up(min(batch_tile, b8), 128)


def discriminator_forward(x, c, prepared, *, batch_tile=512):
    """x: (B, 1, 28, 28) NCHW f32; c: (B, 10) f32. Returns (B,) probabilities.

    `prepared` comes from prepare_params(). batch_tile defaults to 512; keep it
    >= 256 on all generations (v5e included) — sweep 512..1024 for large batches.
    """
    B = x.shape[0]
    (w1p, b1, w2b, b2, w3b, b3, w4row, b4s) = prepared

    tb = _choose_batch_tile(B, batch_tile)
    Bp = _round_up(B, tb)

    # Single fused prep pass: concat pixels + condition + K padding in bf16,
    # then (only if needed) pad the batch to a tile multiple.
    xc = jnp.concatenate(
        [x.reshape(B, 784), c, jnp.zeros((B, K_PAD - K_IN), x.dtype)],
        axis=1).astype(jnp.bfloat16)
    if Bp != B:
        xc = jnp.concatenate([xc, jnp.zeros((Bp - B, K_PAD), jnp.bfloat16)], axis=0)

    resident = pl.Buffered(1)           # constant-index inputs: no double buffer
    const2d = lambda i: (0, 0)
    in_specs = [
        pl.BlockSpec((tb, K_PAD), lambda i: (i, 0)),                          # xc (bf16, pipelined)
        pl.BlockSpec((K_PAD, H1), const2d, pipeline_mode=resident),           # w1
        pl.BlockSpec((1, H1), const2d, pipeline_mode=resident),               # b1
        pl.BlockSpec((H1, H2), const2d, pipeline_mode=resident),              # w2
        pl.BlockSpec((1, H2), const2d, pipeline_mode=resident),               # b2
        pl.BlockSpec((H2, H3), const2d, pipeline_mode=resident),              # w3
        pl.BlockSpec((1, H3), const2d, pipeline_mode=resident),               # b3
        pl.BlockSpec((1, H3), const2d, pipeline_mode=resident),               # w4 row (VPU)
        pl.BlockSpec(memory_space=pltpu.MemorySpace.SMEM),                    # b4 scalar
    ]
    # Lane-dense output: one (1, Bp) row, each grid step writes a (1, tb) slab.
    out_specs = pl.BlockSpec((1, tb), lambda i: (0, i))

    vmem_bytes = (48 << 20) if tb > 512 else (32 << 20)
    out = pl.pallas_call(
        discriminator_kernel,
        out_shape=jax.ShapeDtypeStruct((1, Bp), jnp.float32),
        grid=(Bp // tb,),
        in_specs=in_specs,
        out_specs=out_specs,
        compiler_params=pltpu.CompilerParams(
            dimension_semantics=("parallel",),
            vmem_limit_bytes=vmem_bytes),
    )(xc, w1p, b1, w2b, b2, w3b, b3, w4row, b4s)

    # out.squeeze() semantics from PyTorch: probabilities per batch row.
    return out[0, :B]


def reference_forward(x, c, params):
    B = x.shape[0]
    h = jnp.concatenate([x.reshape(B, 784), c], axis=1)
    (w1, b1), (w2, b2), (w3, b3), (w4, b4) = params
    h = _leaky_relu(h @ w1 + b1)
    h = _leaky_relu(h @ w2 + b2)
    h = _leaky_relu(h @ w3 + b3)
    return jax.nn.sigmoid(h @ w4 + b4).reshape(B)


if __name__ == "__main__":
    key = jax.random.PRNGKey(0)
    kx, kc, kp = jax.random.split(key, 3)

    B = 2
    x = jax.random.normal(kx, (B, 1, 28, 28), jnp.float32)   # NCHW, like MNIST
    labels = jax.random.randint(kc, (B,), 0, 10)
    c = jax.nn.one_hot(labels, 10, dtype=jnp.float32)        # (B, 10)

    params = init_params(kp)
    prepared = prepare_params(params)                        # one-time weight prep

    out = discriminator_forward(x, c, prepared)
    out = jax.block_until_ready(out)

    ref = reference_forward(x, c, params)   # f32 reference
    assert out.shape == (B,)
    # bf16 MXU operands/activations -> loosened tolerance vs the f32 reference.
    assert jnp.allclose(out, ref, atol=2e-2, rtol=2e-2), (out, ref)

    print("KERNEL_OK")
</pallas_src>

<mosaic_0001>
module attributes {stable_mosaic.version = 11 : i64} {
  func.func @discriminator_kernel(%arg0: i32, %arg1: memref<8x896xbf16, #tpu.memory_space<vmem>>, %arg2: memref<896x1024xbf16, #tpu.memory_space<vmem>>, %arg3: memref<1x1024xf32, #tpu.memory_space<vmem>>, %arg4: memref<1024x512xbf16, #tpu.memory_space<vmem>>, %arg5: memref<1x512xf32, #tpu.memory_space<vmem>>, %arg6: memref<512x256xbf16, #tpu.memory_space<vmem>>, %arg7: memref<1x256xf32, #tpu.memory_space<vmem>>, %arg8: memref<1x256xf32, #tpu.memory_space<vmem>>, %arg9: memref<1x1xf32, #tpu.memory_space<smem>>, %arg10: memref<1x8xf32, #tpu.memory_space<vmem>>) attributes {dimension_semantics = [#tpu.dimension_semantics<parallel>], iteration_bounds = array<i64: 1>, scalar_prefetch = 0 : i64, scratch_operands = 0 : i64, tpu.core_type = #tpu.core_type<tc>, window_params = [{transform_indices = @transform_0, window_bounds = array<i64: 8, 896>}, {pipeline_mode = #tpu.pipeline_mode<synchronous>, transform_indices = @transform_1, window_bounds = array<i64: 896, 1024>}, {pipeline_mode = #tpu.pipeline_mode<synchronous>, transform_indices = @transform_2, window_bounds = array<i64: 1, 1024>}, {pipeline_mode = #tpu.pipeline_mode<synchronous>, transform_indices = @transform_3, window_bounds = array<i64: 1024, 512>}, {pipeline_mode = #tpu.pipeline_mode<synchronous>, transform_indices = @transform_4, window_bounds = array<i64: 1, 512>}, {pipeline_mode = #tpu.pipeline_mode<synchronous>, transform_indices = @transform_5, window_bounds = array<i64: 512, 256>}, {pipeline_mode = #tpu.pipeline_mode<synchronous>, transform_indices = @transform_6, window_bounds = array<i64: 1, 256>}, {pipeline_mode = #tpu.pipeline_mode<synchronous>, transform_indices = @transform_7, window_bounds = array<i64: 1, 256>}, {transform_indices = @transform_8, window_bounds = array<i64: 1, 1>}, {transform_indices = @transform_9, window_bounds = array<i64: 1, 8>}]} {
    %c0 = arith.constant 0 : index
    %c0_0 = arith.constant 0 : index
    %0 = vector.load %arg1[%c0, %c0_0] : memref<8x896xbf16, #tpu.memory_space<vmem>>, vector<8x896xbf16>
    %c0_1 = arith.constant 0 : index
    %c0_2 = arith.constant 0 : index
    %1 = vector.load %arg2[%c0_1, %c0_2] : memref<896x1024xbf16, #tpu.memory_space<vmem>>, vector<896x1024xbf16>
    %cst = arith.constant dense<0.000000e+00> : vector<8x1024xf32>
    %2 = tpu.matmul %0, %1, %cst {dimension_numbers = #tpu.dot_dimension_numbers<[1], [0], [0], [1], [0, 0, 1, 1], [], []>} : vector<8x896xbf16>, vector<896x1024xbf16>, vector<8x1024xf32> -> vector<8x1024xf32>
    %c0_3 = arith.constant 0 : index
    %c0_4 = arith.constant 0 : index
    %3 = vector.load %arg3[%c0_3, %c0_4] : memref<1x1024xf32, #tpu.memory_space<vmem>>, vector<1x1024xf32>
    %4 = vector.broadcast %3 : vector<1x1024xf32> to vector<8x1024xf32>
    %5 = arith.addf %2, %4 : vector<8x1024xf32>
    %6 = arith.truncf %5 : vector<8x1024xf32> to vector<8x1024xbf16>
    %cst_5 = arith.constant 2.001950e-01 : bf16
    %7 = vector.broadcast %cst_5 : bf16 to vector<8x1024xbf16>
    %8 = arith.mulf %7, %6 : vector<8x1024xbf16>
    %9 = arith.maximumf %6, %8 : vector<8x1024xbf16>
    %c0_6 = arith.constant 0 : index
    %c0_7 = arith.constant 0 : index
    %10 = vector.load %arg4[%c0_6, %c0_7] : memref<1024x512xbf16, #tpu.memory_space<vmem>>, vector<1024x512xbf16>
    %cst_8 = arith.constant dense<0.000000e+00> : vector<8x512xf32>
    %11 = tpu.matmul %9, %10, %cst_8 {dimension_numbers = #tpu.dot_dimension_numbers<[1], [0], [0], [1], [0, 0, 1, 1], [], []>} : vector<8x1024xbf16>, vector<1024x512xbf16>, vector<8x512xf32> -> vector<8x512xf32>
    %c0_9 = arith.constant 0 : index
    %c0_10 = arith.constant 0 : index
    %12 = vector.load %arg5[%c0_9, %c0_10] : memref<1x512xf32, #tpu.memory_space<vmem>>, vector<1x512xf32>
    %13 = vector.broadcast %12 : vector<1x512xf32> to vector<8x512xf32>
    %14 = arith.addf %11, %13 : vector<8x512xf32>
    %15 = arith.truncf %14 : vector<8x512xf32> to vector<8x512xbf16>
    %cst_11 = arith.constant 2.001950e-01 : bf16
    %16 = vector.broadcast %cst_11 : bf16 to vector<8x512xbf16>
    %17 = arith.mulf %16, %15 : vector<8x512xbf16>
    %18 = arith.maximumf %15, %17 : vector<8x512xbf16>
    %c0_12 = arith.constant 0 : index
    %c0_13 = arith.constant 0 : index
    %19 = vector.load %arg6[%c0_12, %c0_13] : memref<512x256xbf16, #tpu.memory_space<vmem>>, vector<512x256xbf16>
    %cst_14 = arith.constant dense<0.000000e+00> : vector<8x256xf32>
    %20 = tpu.matmul %18, %19, %cst_14 {dimension_numbers = #tpu.dot_dimension_numbers<[1], [0], [0], [1], [0, 0, 1, 1], [], []>} : vector<8x512xbf16>, vector<512x256xbf16>, vector<8x256xf32> -> vector<8x256xf32>
    %c0_15 = arith.constant 0 : index
    %c0_16 = arith.constant 0 : index
    %21 = vector.load %arg7[%c0_15, %c0_16] : memref<1x256xf32, #tpu.memory_space<vmem>>, vector<1x256xf32>
    %22 = vector.broadcast %21 : vector<1x256xf32> to vector<8x256xf32>
    %23 = arith.addf %20, %22 : vector<8x256xf32>
    %cst_17 = arith.constant 2.000000e-01 : f32
    %24 = vector.broadcast %cst_17 : f32 to vector<8x256xf32>
    %25 = arith.mulf %24, %23 : vector<8x256xf32>
    %26 = arith.maximumf %23, %25 : vector<8x256xf32>
    %c0_18 = arith.constant 0 : index
    %c0_19 = arith.constant 0 : index
    %27 = vector.load %arg8[%c0_18, %c0_19] : memref<1x256xf32, #tpu.memory_space<vmem>>, vector<1x256xf32>
    %28 = vector.broadcast %27 : vector<1x256xf32> to vector<8x256xf32>
    %29 = arith.mulf %26, %28 : vector<8x256xf32>
    %cst_20 = arith.constant dense<0.000000e+00> : vector<8xf32>
    %30 = vector.multi_reduction <add>, %29, %cst_20 [1] : vector<8x256xf32> to vector<8xf32>
    %31 = vector.shape_cast %30 : vector<8xf32> to vector<8x1xf32>
    %c0_21 = arith.constant 0 : index
    %c0_22 = arith.constant 0 : index
    %32 = memref.load %arg9[%c0_21, %c0_22] : memref<1x1xf32, #tpu.memory_space<smem>>
    %33 = vector.broadcast %32 : f32 to vector<8x1xf32>
    %34 = arith.addf %31, %33 : vector<8x1xf32>
    %35 = arith.negf %34 : vector<8x1xf32>
    %36 = math.exp %35 : vector<8x1xf32>
    %cst_23 = arith.constant 1.000000e+00 : f32
    %37 = vector.broadcast %cst_23 : f32 to vector<8x1xf32>
    %38 = arith.addf %37, %36 : vector<8x1xf32>
    %39 = arith.divf %37, %38 : vector<8x1xf32>
    %40 = tpu.transpose %39, [1, 0] : vector<8x1xf32> -> vector<1x8xf32>
    %c0_24 = arith.constant 0 : index
    %c0_25 = arith.constant 0 : index
    %41 = vector.load %arg10[%c0_24, %c0_25] : memref<1x8xf32, #tpu.memory_space<vmem>>, vector<1x8xf32>
    tpu.vector_store %arg10[%c0_24, %c0_25], %40 {strides = array<i32>} : memref<1x8xf32, #tpu.memory_space<vmem>>, vector<1x8xf32>,
    return
  }
  func.func @transform_0(%arg0: i32) -> (i32, i32) {
    %c0_i32 = arith.constant 0 : i32
    %c0_i32_0 = arith.constant 0 : i32
    return %arg0, %c0_i32 : i32, i32
  }
  func.func @transform_1(%arg0: i32) -> (i32, i32) {
    %c0_i32 = arith.constant 0 : i32
    %c0_i32_0 = arith.constant 0 : i32
    %c0_i32_1 = arith.constant 0 : i32
    return %c0_i32, %c0_i32_0 : i32, i32
  }
  func.func @transform_2(%arg0: i32) -> (i32, i32) {
    %c0_i32 = arith.constant 0 : i32
    %c0_i32_0 = arith.constant 0 : i32
    %c0_i32_1 = arith.constant 0 : i32
    return %c0_i32, %c0_i32_0 : i32, i32
  }
  func.func @transform_3(%arg0: i32) -> (i32, i32) {
    %c0_i32 = arith.constant 0 : i32
    %c0_i32_0 = arith.constant 0 : i32
    %c0_i32_1 = arith.constant 0 : i32
    return %c0_i32, %c0_i32_0 : i32, i32
  }
  func.func @transform_4(%arg0: i32) -> (i32, i32) {
    %c0_i32 = arith.constant 0 : i32
    %c0_i32_0 = arith.constant 0 : i32
    %c0_i32_1 = arith.constant 0 : i32
    return %c0_i32, %c0_i32_0 : i32, i32
  }
  func.func @transform_5(%arg0: i32) -> (i32, i32) {
    %c0_i32 = arith.constant 0 : i32
    %c0_i32_0 = arith.constant 0 : i32
    %c0_i32_1 = arith.constant 0 : i32
    return %c0_i32, %c0_i32_0 : i32, i32
  }
  func.func @transform_6(%arg0: i32) -> (i32, i32) {
    %c0_i32 = arith.constant 0 : i32
    %c0_i32_0 = arith.constant 0 : i32
    %c0_i32_1 = arith.constant 0 : i32
    return %c0_i32, %c0_i32_0 : i32, i32
  }
  func.func @transform_7(%arg0: i32) -> (i32, i32) {
    %c0_i32 = arith.constant 0 : i32
    %c0_i32_0 = arith.constant 0 : i32
    %c0_i32_1 = arith.constant 0 : i32
    return %c0_i32, %c0_i32_0 : i32, i32
  }
  func.func @transform_8(%arg0: i32) -> (i32, i32) {
    %c0_i32 = arith.constant 0 : i32
    %c0_i32_0 = arith.constant 0 : i32
    %c0_i32_1 = arith.constant 0 : i32
    return %c0_i32, %c0_i32_0 : i32, i32
  }
  func.func @transform_9(%arg0: i32) -> (i32, i32) {
    %c0_i32 = arith.constant 0 : i32
    %c0_i32_0 = arith.constant 0 : i32
    return %c0_i32, %arg0 : i32, i32
  }
}

</mosaic_0001>

<bundles_post_ra>
// kernel: tpu_custom_call.1
= control target key start
LH: loop header
LB: loop body
LE: loop exit
PB: predicated region body
PF: predicated region fallthrough
CT: control target
= control target key end

     0   :  { %15 = vsyncpa [#allocation4], 0  ;;  %s7943_s0 = inlined_call_operand.hbm [shape: bf16[8,896], index: 0, kind: input, shape index: {}]   ;;  %s7944_s1 = inlined_call_operand.hbm [shape: bf16[896,1024], index: 1, kind: input, shape index: {}]   ;;  %s7945_s2 = inlined_call_operand.hbm [shape: f32[1,1024], index: 2, kind: input, shape index: {}]   ;;  %s7946_s3 = inlined_call_operand.hbm [shape: bf16[1024,512], index: 3, kind: input, shape index: {}]   ;;  %s7947_s4 = inlined_call_operand.hbm [shape: f32[1,512], index: 4, kind: input, shape index: {}]   ;;  %s7948_s5 = inlined_call_operand.hbm [shape: bf16[512,256], index: 5, kind: input, shape index: {}]   ;;  %s7949_s6 = inlined_call_operand.hbm [shape: f32[1,256], index: 6, kind: input, shape index: {}]   ;;  %s7950_s7 = inlined_call_operand.hbm [shape: f32[1,256], index: 7, kind: input, shape index: {}]   ;;  %s7951_s8 = inlined_call_operand.<no memory space> [shape: f32[1,1], index: 8, kind: input, shape index: {}]   ;;  %s7952_s9 = inlined_call_operand.hbm [shape: f32[1,8], index: 9, kind: output, shape index: {}]  }
   0x1   :  { %16 = vsyncpa [#allocation7], 0 }
   0x2   :  { %17 = vsyncpa [#allocation10], 0 }
   0x3   :  { %18 = vsyncpa [#allocation13], 0 }
   0x4   :  { %19 = vsyncpa [#allocation16], 0 }
   0x5   :  { %20 = vsyncpa [#allocation5], 0  ;;  %s7618_s30 = smov [#allocation6]   ;;  %s7408_s13 = scalar_lea.hbm %s7944_s1, 57344 }
   0x6   :  { %s36_s10 = sshll.u32 %s7618_s30, 4  ;;  %p7409_p0 = scmp.ne.s32.totalorder %s7944_s1, %s7408_s13  ;;  %s37_s10 = int_to_ptr.vmem [resolvable:$true] %s36_s10 }
   0x7   :  { %p7412_p1 = scmp.lt.u32.totalorder %s7408_s13, %s7944_s1 }
   0x9   :  { %p7414_p2 = pnand %p7412_p1, %p7409_p0 }
   0xb   :  { %7417 = shalt.err (!%p7414_p2)
}
   0xc   :  { %s7418_s18 = scalar_lea.vmem %s37_s10, 57344  ;;  %p7423_p4 = scmp.lt.s32.totalorder %s37_s10, %s37_s10 }
   0xd   :  { %p7419_p3 = scmp.ne.s32.totalorder %s37_s10, %s7418_s18  ;;  %p7424_p5 = scmp.lt.s32.totalorder %s7418_s18, %s7418_s18 }
   0xf   :  { %p7425_p6 = por %p7424_p5, %p7423_p4 }
  0x11   :  { %p7426_p7 = pnand %p7425_p6, %p7419_p3 }
  0x13   :  { %7429 = shalt.err (!%p7426_p7)
}
  0x14   :  { %s7619_s19 = smov 512   ;;  %s7620_s20 = smov 32  }
  0x15   :  { %42 = dma.hbm_to_vmem [thread:$0]  %s7944_s1, 57344, %s37_s10, [#allocation7], %s7619_s19, %s7619_s19, %s7620_s20  }
  0x16   :  { %s7621_s23 = smov [#allocation9]   ;;  %s7430_s27 = scalar_lea.hbm %s7946_s3, 32768 }
  0x17   :  { %s58_s24 = sshll.u32 %s7621_s23, 4  ;;  %p7431_p8 = scmp.ne.s32.totalorder %s7946_s3, %s7430_s27  ;;  %s59_s24 = int_to_ptr.vmem [resolvable:$true] %s58_s24 }
  0x18   :  { %p7434_p9 = scmp.lt.u32.totalorder %s7430_s27, %s7946_s3 }
  0x1a   :  { %p7436_p10 = pnand %p7434_p9, %p7431_p8 }
  0x1c   :  { %7439 = shalt.err (!%p7436_p10)
}
  0x1d   :  { %s7440_s12 = scalar_lea.vmem %s59_s24, 32768  ;;  %p7445_p12 = scmp.lt.s32.totalorder %s59_s24, %s59_s24 }
  0x1e   :  { %p7441_p11 = scmp.ne.s32.totalorder %s59_s24, %s7440_s12  ;;  %p7446_p13 = scmp.lt.s32.totalorder %s7440_s12, %s7440_s12 }
  0x20   :  { %p7447_p0 = por %p7446_p13, %p7445_p12 }
  0x22   :  { %p7448_p1 = pnand %p7447_p0, %p7441_p11 }
  0x24   :  { %7451 = shalt.err (!%p7448_p1)
}
  0x25   :  { %s7622_s1 = smov 256   ;;  %s7623_s10 = smov 16  }
  0x26   :  { %64 = dma.hbm_to_vmem [thread:$0]  %s7946_s3, 32768, %s59_s24, [#allocation10], %s7622_s1, %s7622_s1, %s7623_s10  }
  0x27   :  { %s7624_s15 = smov [#allocation12]   ;;  %s7452_s19 = scalar_lea.hbm %s7948_s5, 8192 }
  0x28   :  { %s80_s16 = sshll.u32 %s7624_s15, 4  ;;  %p7453_p2 = scmp.ne.s32.totalorder %s7948_s5, %s7452_s19  ;;  %s81_s16 = int_to_ptr.vmem [resolvable:$true] %s80_s16 }
  0x29   :  { %p7456_p3 = scmp.lt.u32.totalorder %s7452_s19, %s7948_s5 }
  0x2b   :  { %p7458_p4 = pnand %p7456_p3, %p7453_p2 }
  0x2d   :  { %7461 = shalt.err (!%p7458_p4)
}
  0x2e   :  { %s7462_s25 = scalar_lea.vmem %s81_s16, 8192  ;;  %p7467_p6 = scmp.lt.s32.totalorder %s81_s16, %s81_s16 }
  0x2f   :  { %p7463_p5 = scmp.ne.s32.totalorder %s81_s16, %s7462_s25  ;;  %p7468_p7 = scmp.lt.s32.totalorder %s7462_s25, %s7462_s25 }
  0x31   :  { %p7469_p8 = por %p7468_p7, %p7467_p6 }
  0x33   :  { %p7470_p9 = pnand %p7469_p8, %p7463_p5 }
  0x35   :  { %7473 = shalt.err (!%p7470_p9)
}
  0x36   :  { %s7625_s3 = smov 128   ;;  %s7626_s24 = smov 8  }
  0x37   :  { %86 = dma.hbm_to_vmem [thread:$0]  %s7948_s5, 8192, %s81_s16, [#allocation13], %s7625_s3, %s7625_s3, %s7626_s24  }
  0x38   :  { %s7627_s28 = smov [#allocation3]   ;;  %s7628_s30 = smov [#allocation8]  }
  0x39   :  { %s27_s29 = sshll.u32 %s7627_s28, 4  ;;  %s49_s11 = sshll.u32 %s7628_s30, 4  ;;  %s28_s29 = int_to_ptr.vmem [resolvable:$true] %s27_s29  ;;  %s50_s11 = int_to_ptr.vmem [resolvable:$true] %s49_s11 }
  0x3a   :  { %s7474_s10 = scalar_lea.hbm %s7943_s0, 448 }
  0x3b   :  { %p7475_p10 = scmp.ne.s32.totalorder %s7943_s0, %s7474_s10  ;;  %p7478_p11 = scmp.lt.u32.totalorder %s7474_s10, %s7943_s0 }
  0x3d   :  { %p7480_p12 = pnand %p7478_p11, %p7475_p10 }
  0x3f   :  { %7483 = shalt.err (!%p7480_p12)
}
  0x40   :  { %s7484_s5 = scalar_lea.vmem %s28_s29, 448  ;;  %p7489_p0 = scmp.lt.s32.totalorder %s28_s29, %s28_s29 }
  0x41   :  { %p7485_p13 = scmp.ne.s32.totalorder %s28_s29, %s7484_s5  ;;  %p7490_p1 = scmp.lt.s32.totalorder %s7484_s5, %s7484_s5 }
  0x43   :  { %p7491_p2 = por %p7490_p1, %p7489_p0 }
  0x45   :  { %p7492_p3 = pnand %p7491_p2, %p7485_p13 }
  0x47   :  { %7495 = shalt.err (!%p7492_p3)
}
  0x48   :  { %30 = dma.hbm_to_vmem [thread:$0]  %s7943_s0, 448, %s28_s29, [#allocation4]  }
  0x49   :  { %s7496_s21 = scalar_lea.hbm %s7945_s2, 128 }
  0x4a   :  { %p7497_p4 = scmp.ne.s32.totalorder %s7945_s2, %s7496_s21  ;;  %p7500_p5 = scmp.lt.u32.totalorder %s7496_s21, %s7945_s2 }
  0x4c   :  { %p7502_p6 = pnand %p7500_p5, %p7497_p4 }
  0x4e   :  { %7505 = shalt.err (!%p7502_p6)
}
  0x4f   :  { %s7506_s24 = scalar_lea.vmem %s50_s11, 128  ;;  %p7511_p8 = scmp.lt.s32.totalorder %s50_s11, %s50_s11 }
  0x50   :  { %p7507_p7 = scmp.ne.s32.totalorder %s50_s11, %s7506_s24  ;;  %p7512_p9 = scmp.lt.s32.totalorder %s7506_s24, %s7506_s24 }
  0x52   :  { %p7513_p10 = por %p7512_p9, %p7511_p8 }
  0x54   :  { %p7514_p11 = pnand %p7513_p10, %p7507_p7 }
  0x56   :  { %7517 = shalt.err (!%p7514_p11)
}
  0x57   :  { %52 = dma.hbm_to_vmem [thread:$0]  %s7945_s2, 128, %s50_s11, [#allocation7]  }
  0x58   :  { %s7629_s27 = smov [#allocation11]   ;;  %s7630_s29 = smov [#allocation14]  }
  0x59   :  { %s71_s28 = sshll.u32 %s7629_s27, 4  ;;  %s93_s30 = sshll.u32 %s7630_s29, 4  ;;  %s72_s28 = int_to_ptr.vmem [resolvable:$true] %s71_s28  ;;  %s94_s30 = int_to_ptr.vmem [resolvable:$true] %s93_s30 }
  0x5a   :  { %s7518_s10 = scalar_lea.hbm %s7947_s4, 64 }
  0x5b   :  { %p7519_p12 = scmp.ne.s32.totalorder %s7947_s4, %s7518_s10  ;;  %p7522_p13 = scmp.lt.u32.totalorder %s7518_s10, %s7947_s4 }
  0x5d   :  { %p7524_p0 = pnand %p7522_p13, %p7519_p12 }
  0x5f   :  { %7527 = shalt.err (!%p7524_p0)
}
  0x60   :  { %s7528_s2 = scalar_lea.vmem %s72_s28, 64  ;;  %p7533_p2 = scmp.lt.s32.totalorder %s72_s28, %s72_s28 }
  0x61   :  { %p7529_p1 = scmp.ne.s32.totalorder %s72_s28, %s7528_s2  ;;  %p7534_p3 = scmp.lt.s32.totalorder %s7528_s2, %s7528_s2 }
  0x63   :  { %p7535_p4 = por %p7534_p3, %p7533_p2 }
  0x65   :  { %p7536_p5 = pnand %p7535_p4, %p7529_p1 }
  0x67   :  { %7539 = shalt.err (!%p7536_p5)
}
  0x68   :  { %74 = dma.hbm_to_vmem [thread:$0]  %s7947_s4, 64, %s72_s28, [#allocation10]  }
  0x69   :  { %s7540_s19 = scalar_lea.hbm %s7949_s6, 32 }
  0x6a   :  { %p7541_p6 = scmp.ne.s32.totalorder %s7949_s6, %s7540_s19  ;;  %p7544_p7 = scmp.lt.u32.totalorder %s7540_s19, %s7949_s6 }
  0x6c   :  { %p7546_p8 = pnand %p7544_p7, %p7541_p6 }
  0x6e   :  { %7549 = shalt.err (!%p7546_p8)
}
  0x6f   :  { %s7550_s25 = scalar_lea.vmem %s94_s30, 32  ;;  %p7555_p10 = scmp.lt.s32.totalorder %s94_s30, %s94_s30 }
  0x70   :  { %p7551_p9 = scmp.ne.s32.totalorder %s94_s30, %s7550_s25  ;;  %p7556_p11 = scmp.lt.s32.totalorder %s7550_s25, %s7550_s25 }
  0x72   :  { %p7557_p12 = por %p7556_p11, %p7555_p10 }
  0x74   :  { %p7558_p13 = pnand %p7557_p12, %p7551_p9 }
  0x76   :  { %7561 = shalt.err (!%p7558_p13)
}
  0x77   :  { %96 = dma.hbm_to_vmem [thread:$0]  %s7949_s6, 32, %s94_s30, [#allocation13]  }
  0x78   :  { %s7631_s24 = smov [#allocation15]   ;;  %s7562_s28 = scalar_lea.hbm %s7950_s7, 32 }
  0x79   :  { %s103_s0 = sshll.u32 %s7631_s24, 4  ;;  %p7563_p0 = scmp.ne.s32.totalorder %s7950_s7, %s7562_s28  ;;  %s104_s0 = int_to_ptr.vmem [resolvable:$true] %s103_s0 }
  0x7a   :  { %p7566_p1 = scmp.lt.u32.totalorder %s7562_s28, %s7950_s7 }
  0x7c   :  { %p7568_p2 = pnand %p7566_p1, %p7563_p0 }
  0x7e   :  { %7571 = shalt.err (!%p7568_p2)
}
  0x7f   :  { %s7572_s13 = scalar_lea.vmem %s104_s0, 32  ;;  %p7577_p4 = scmp.lt.s32.totalorder %s104_s0, %s104_s0 }
  0x80   :  { %p7573_p3 = scmp.ne.s32.totalorder %s104_s0, %s7572_s13  ;;  %p7578_p5 = scmp.lt.s32.totalorder %s7572_s13, %s7572_s13 }
  0x82   :  { %p7579_p6 = por %p7578_p5, %p7577_p4 }
  0x84   :  { %p7580_p7 = pnand %p7579_p6, %p7573_p3 }
  0x86   :  { %7583 = shalt.err (!%p7580_p7)
}
  0x87   :  { %106 = dma.hbm_to_vmem [thread:$0]  %s7950_s7, 32, %s104_s0, [#allocation16]  }
  0x88   :  { %7606 = dma.done.wait [#allocation4], 448  }
  0x89   :  { %7607 = vsyncadd [#allocation4], 4294966848 }
  0x8a   :  { %7608 = dma.done.wait [#allocation7], 57472  }
  0x8b   :  { %7609 = vsyncadd [#allocation7], 4294909824 }
  0x8c   :  { %7610 = dma.done.wait [#allocation10], 32832  }
  0x8d   :  { %7611 = vsyncadd [#allocation10], 4294934464 }
  0x8e   :  { %7612 = dma.done.wait [#allocation13], 8224  }
  0x8f   :  { %7613 = vsyncadd [#allocation13], 4294959072 }
  0x90   :  { %7614 = dma.done.wait [#allocation16], 32  }
  0x91   :  { %7615 = vsyncadd [#allocation16], 4294967264  ;;  %v139_v0 = vld [vmem:[#allocation6] sm:$0xff]  ;;  %v7782_v54 = vld [vmem:[#allocation3 + $0x8] sm:$0xff]  ;;  %s7633_s15 = smov [#allocation17]   ;;  %vm6012_vm0 = vcmask 57344  }
  0x92   :  { %v143_v1 = vld [vmem:[#allocation6 + $0x20] sm:$0xff]  ;;  %v7790_v61 = vcombine.high %v7782_v54, %v7782_v54  ;;  %s6020_s17 = sshll.u32 %s7633_s15, 4  ;;  %s6021_s17 = int_to_ptr.vmem [resolvable:$true] %s6020_s17 }
  0x93   :  { %v267_v2 = vld [vmem:[#allocation6 + $0x400] sm:$0xff]  ;;  %v6041_v3 = vcombine.high %v139_v0, %v143_v1  ;;  %v6040_v5 = vcombine.low %v139_v0, %v143_v1  ;;  %s7584_s2 = scalar_lea.vmem %s6021_s17, 16  ;;  %s7588_s11 = scalar_lea.vmem %s6021_s17, 32 }
  0x94   :  { %v271_v4 = vld [vmem:[#allocation6 + $0x420] sm:$0xff]  ;;  %2967 = vmatprep.mubr.bf16.mxu0 %v7790_v61  ;;  %p7585_p8 = scmp.ne.s32.totalorder %s6021_s17, %s7584_s2  ;;  %p7589_p9 = scmp.lt.s32.totalorder %s6021_s17, %s6021_s17 }
  0x95   :  { %v147_v6 = vld [vmem:[#allocation6 + $0x40] sm:$0xff]  ;;  %v6169_v8 = vcombine.high %v267_v2, %v271_v4  ;;  %v6168_v9 = vcombine.low %v267_v2, %v271_v4  ;;  %2894 = vmatprep.subr.bf16.mxu1 %v6041_v3  ;;  %p7590_p10 = scmp.lt.s32.totalorder %s7588_s11, %s7584_s2 }
  0x96   :  { %v151_v7 = vld [vmem:[#allocation6 + $0x60] sm:$0xff]  ;;  %2895 = vmatpush1.bf16.msra.mxu1 %v6040_v5 }
  0x97   :  { %v6049_v10 = vcombine.high %v147_v6, %v151_v7  ;;  %v275_v11 = vld [vmem:[#allocation6 + $0x440] sm:$0xff]  ;;  %2935 = vmatprep.subr.bf16.mxu0 %v6169_v8  ;;  %v6048_v18 = vcombine.low %v147_v6, %v151_v7  ;;  %p7591_p11 = por %p7590_p10, %p7589_p9 }
  0x98   :  { %v279_v12 = vld [vmem:[#allocation6 + $0x460] sm:$0xff]  ;;  %2936 = vmatpush1.bf16.msra.mxu0 %v6168_v9 }
  0x99   :  { %v155_v13 = vld [vmem:[#allocation6 + $0x80] sm:$0xff]  ;;  %v6177_v14 = vcombine.high %v275_v11, %v279_v12  ;;  %2896 = vmatprep.subr.bf16.mxu1 %v6049_v10  ;;  %v6176_v19 = vcombine.low %v275_v11, %v279_v12  ;;  %p7592_p12 = pnand %p7591_p11, %p7585_p8 }
  0x9a   :  { %v159_v15 = vld [vmem:[#allocation6 + $0xa0] sm:$0xff]  ;;  %2897 = vmatpush1.bf16.msra.mxu1 %v6048_v18 }
  0x9b   :  { %v283_v16 = vld [vmem:[#allocation6 + $0x480] sm:$0xff]  ;;  %v6057_v20 = vcombine.high %v155_v13, %v159_v15  ;;  %2937 = vmatprep.subr.bf16.mxu0 %v6177_v14  ;;  %v6056_v26 = vcombine.low %v155_v13, %v159_v15 }
  0x9c   :  { %v287_v17 = vld [vmem:[#allocation6 + $0x4a0] sm:$0xff]  ;;  %2938 = vmatpush1.bf16.msra.mxu0 %v6176_v19 }
  0x9d   :  { %v6185_v21 = vcombine.high %v283_v16, %v287_v17  ;;  %v163_v22 = vld [vmem:[#allocation6 + $0xc0] sm:$0xff]  ;;  %2898 = vmatprep.subr.bf16.mxu1 %v6057_v20  ;;  %v6184_v27 = vcombine.low %v283_v16, %v287_v17 }
  0x9e   :  { %v167_v23 = vld [vmem:[#allocation6 + $0xe0] sm:$0xff]  ;;  %2899 = vmatpush1.bf16.msra.mxu1 %v6056_v26 }
  0x9f   :  { %v291_v24 = vld [vmem:[#allocation6 + $0x4c0] sm:$0xff]  ;;  %v6065_v28 = vcombine.high %v163_v22, %v167_v23  ;;  %2939 = vmatprep.subr.bf16.mxu0 %v6185_v21  ;;  %v6064_v34 = vcombine.low %v163_v22, %v167_v23 }
  0xa0   :  { %v295_v25 = vld [vmem:[#allocation6 + $0x4e0] sm:$0xff]  ;;  %2940 = vmatpush1.bf16.msra.mxu0 %v6184_v27 }
  0xa1   :  { %v6193_v29 = vcombine.high %v291_v24, %v295_v25  ;;  %v171_v30 = vld [vmem:[#allocation6 + $0x100] sm:$0xff]  ;;  %2900 = vmatprep.subr.bf16.mxu1 %v6065_v28  ;;  %v6192_v35 = vcombine.low %v291_v24, %v295_v25 }
  0xa2   :  { %v175_v31 = vld [vmem:[#allocation6 + $0x120] sm:$0xff]  ;;  %2901 = vmatpush1.bf16.msra.mxu1 %v6064_v34 }
  0xa3   :  { %v299_v32 = vld [vmem:[#allocation6 + $0x500] sm:$0xff]  ;;  %v6073_v36 = vcombine.high %v171_v30, %v175_v31  ;;  %2941 = vmatprep.subr.bf16.mxu0 %v6193_v29  ;;  %v6072_v42 = vcombine.low %v171_v30, %v175_v31 }
  0xa4   :  { %v303_v33 = vld [vmem:[#allocation6 + $0x520] sm:$0xff]  ;;  %2942 = vmatpush1.bf16.msra.mxu0 %v6192_v35 }
  0xa5   :  { %v6201_v37 = vcombine.high %v299_v32, %v303_v33  ;;  %v179_v38 = vld [vmem:[#allocation6 + $0x140] sm:$0xff]  ;;  %2902 = vmatprep.subr.bf16.mxu1 %v6073_v36  ;;  %v6200_v43 = vcombine.low %v299_v32, %v303_v33 }
  0xa6   :  { %v183_v39 = vld [vmem:[#allocation6 + $0x160] sm:$0xff]  ;;  %2903 = vmatpush1.bf16.msra.mxu1 %v6072_v42 }
  0xa7   :  { %v307_v40 = vld [vmem:[#allocation6 + $0x540] sm:$0xff]  ;;  %v6081_v44 = vcombine.high %v179_v38, %v183_v39  ;;  %2943 = vmatprep.subr.bf16.mxu0 %v6201_v37  ;;  %v6080_v50 = vcombine.low %v179_v38, %v183_v39 }
  0xa8   :  { %v311_v41 = vld [vmem:[#allocation6 + $0x560] sm:$0xff]  ;;  %2944 = vmatpush1.bf16.msra.mxu0 %v6200_v43 }
  0xa9   :  { %v6209_v45 = vcombine.high %v307_v40, %v311_v41  ;;  %v187_v46 = vld [vmem:[#allocation6 + $0x180] sm:$0xff]  ;;  %2904 = vmatprep.subr.bf16.mxu1 %v6081_v44  ;;  %v6208_v51 = vcombine.low %v307_v40, %v311_v41 }
  0xaa   :  { %v191_v47 = vld [vmem:[#allocation6 + $0x1a0] sm:$0xff]  ;;  %2905 = vmatpush1.bf16.msra.mxu1 %v6080_v50 }
  0xab   :  { %v315_v48 = vld [vmem:[#allocation6 + $0x580] sm:$0xff]  ;;  %v6089_v52 = vcombine.high %v187_v46, %v191_v47  ;;  %2945 = vmatprep.subr.bf16.mxu0 %v6209_v45  ;;  %v6088_v62 = vcombine.low %v187_v46, %v191_v47 }
  0xac   :  { %v319_v49 = vld [vmem:[#allocation6 + $0x5a0] sm:$0xff]  ;;  %2946 = vmatpush1.bf16.msra.mxu0 %v6208_v51 }
  0xad   :  { %v7780_v53 = vld [vmem:[#allocation3] sm:$0xff]  ;;  %v6217_v55 = vcombine.high %v315_v48, %v319_v49  ;;  %2906 = vmatprep.subr.bf16.mxu1 %v6089_v52  ;;  %v6216_v63 = vcombine.low %v315_v48, %v319_v49 }
  0xae   :  { %v195_v56 = vld [vmem:[#allocation6 + $0x1c0] sm:$0xff]  ;;  %v7786_v58 = vcombine.high %v7780_v53, %v7780_v53  ;;  %2907 = vmatpush1.bf16.msra.mxu1 %v6088_v62 }
  0xaf   :  { %v199_v57 = vld [vmem:[#allocation6 + $0x1e0] sm:$0xff]  ;;  %2947 = vmatprep.subr.bf16.mxu0 %v6217_v55 }
  0xb0   :  { %v323_v59 = vld [vmem:[#allocation6 + $0x5c0] sm:$0xff]  ;;  %2926 = vmatprep.mubr.bf16.mxu1 %v7786_v58  ;;  %v6097_v0 = vcombine.high %v195_v56, %v199_v57  ;;  %v6096_v6 = vcombine.low %v195_v56, %v199_v57  ;;  %2948 = vmatpush1.bf16.msra.mxu0 %v6216_v63 }
  0xb1   :  { %v327_v60 = vld [vmem:[#allocation6 + $0x5e0] sm:$0xff] }
  0xb2   :  { %v6225_v1 = vcombine.high %v323_v59, %v327_v60  ;;  %v203_v2 = vld [vmem:[#allocation6 + $0x200] sm:$0xff]  ;;  %2908 = vmatprep.subr.bf16.mxu1 %v6097_v0  ;;  %v6224_v7 = vcombine.low %v323_v59, %v327_v60 }
  0xb3   :  { %v207_v3 = vld [vmem:[#allocation6 + $0x220] sm:$0xff]  ;;  %2909 = vmatpush1.bf16.msra.mxu1 %v6096_v6  ;;  %v140_v6 = vld [vmem:[#allocation6 + $0x8] sm:$0xff] }
  0xb4   :  { %v331_v4 = vld [vmem:[#allocation6 + $0x600] sm:$0xff]  ;;  %v6105_v8 = vcombine.high %v203_v2, %v207_v3  ;;  %2949 = vmatprep.subr.bf16.mxu0 %v6225_v1  ;;  %v6104_v14 = vcombine.low %v203_v2, %v207_v3 }
  0xb5   :  { %v335_v5 = vld [vmem:[#allocation6 + $0x620] sm:$0xff]  ;;  %2950 = vmatpush1.bf16.msra.mxu0 %v6224_v7  ;;  %v144_v7 = vld [vmem:[#allocation6 + $0x28] sm:$0xff] }
  0xb6   :  { %v6233_v9 = vcombine.high %v331_v4, %v335_v5  ;;  %v211_v10 = vld [vmem:[#allocation6 + $0x240] sm:$0xff]  ;;  %2910 = vmatprep.subr.bf16.mxu1 %v6105_v8  ;;  %v6232_v15 = vcombine.low %v331_v4, %v335_v5 }
  0xb7   :  { %v215_v11 = vld [vmem:[#allocation6 + $0x260] sm:$0xff]  ;;  %2911 = vmatpush1.bf16.msra.mxu1 %v6104_v14  ;;  %v148_v14 = vld [vmem:[#allocation6 + $0x48] sm:$0xff] }
  0xb8   :  { %v339_v12 = vld [vmem:[#allocation6 + $0x640] sm:$0xff]  ;;  %v6113_v16 = vcombine.high %v211_v10, %v215_v11  ;;  %2951 = vmatprep.subr.bf16.mxu0 %v6233_v9  ;;  %v6112_v22 = vcombine.low %v211_v10, %v215_v11 }
  0xb9   :  { %v343_v13 = vld [vmem:[#allocation6 + $0x660] sm:$0xff]  ;;  %2952 = vmatpush1.bf16.msra.mxu0 %v6232_v15  ;;  %v152_v15 = vld [vmem:[#allocation6 + $0x68] sm:$0xff] }
  0xba   :  { %v6241_v17 = vcombine.high %v339_v12, %v343_v13  ;;  %v219_v18 = vld [vmem:[#allocation6 + $0x280] sm:$0xff]  ;;  %2912 = vmatprep.subr.bf16.mxu1 %v6113_v16  ;;  %v6240_v23 = vcombine.low %v339_v12, %v343_v13  ;;  %v6043_v12 = vcombine.high %v140_v6, %v144_v7  ;;  %v7796_v16 = vcombine.low %v7780_v53, %v7780_v53  ;;  %v156_v53 = vld [vmem:[#allocation6 + $0x88] sm:$0xff] }
  0xbb   :  { %v223_v19 = vld [vmem:[#allocation6 + $0x2a0] sm:$0xff]  ;;  %2913 = vmatpush1.bf16.msra.mxu1 %v6112_v22 }
  0xbc   :  { %v347_v20 = vld [vmem:[#allocation6 + $0x680] sm:$0xff]  ;;  %v6121_v24 = vcombine.high %v219_v18, %v223_v19  ;;  %2953 = vmatprep.subr.bf16.mxu0 %v6241_v17  ;;  %v6120_v30 = vcombine.low %v219_v18, %v223_v19  ;;  %v7798_v19 = vld [vmem:[#allocation3 + $0x10] sm:$0xff] }
  0xbd   :  { %v351_v21 = vld [vmem:[#allocation6 + $0x6a0] sm:$0xff]  ;;  %2954 = vmatpush1.bf16.msra.mxu0 %v6240_v23  ;;  %v6051_v23 = vcombine.high %v148_v14, %v152_v15 }
  0xbe   :  { %v6249_v25 = vcombine.high %v347_v20, %v351_v21  ;;  %v227_v26 = vld [vmem:[#allocation6 + $0x2c0] sm:$0xff]  ;;  %2914 = vmatprep.subr.bf16.mxu1 %v6121_v24  ;;  %v6248_v31 = vcombine.low %v347_v20, %v351_v21  ;;  %v6042_v20 = vcombine.low %v140_v6, %v144_v7  ;;  %v7802_v21 = vcombine.low %v7782_v54, %v7782_v54  ;;  %v200_v7 = vld [vmem:[#allocation6 + $0x1e8] sm:$0xff] }
  0xbf   :  { %v231_v27 = vld [vmem:[#allocation6 + $0x2e0] sm:$0xff]  ;;  %2915 = vmatpush1.bf16.msra.mxu1 %v6120_v30  ;;  %v6050_v54 = vcombine.low %v148_v14, %v152_v15  ;;  %v208_v15 = vld [vmem:[#allocation6 + $0x228] sm:$0xff] }
  0xc0   :  { %v355_v28 = vld [vmem:[#allocation6 + $0x6c0] sm:$0xff]  ;;  %v6129_v32 = vcombine.high %v227_v26, %v231_v27  ;;  %2955 = vmatprep.subr.bf16.mxu0 %v6249_v25  ;;  %v6128_v38 = vcombine.low %v227_v26, %v231_v27  ;;  %v160_v27 = vld [vmem:[#allocation6 + $0xa8] sm:$0xff] }
  0xc1   :  { %v359_v29 = vld [vmem:[#allocation6 + $0x6e0] sm:$0xff]  ;;  %2956 = vmatpush1.bf16.msra.mxu0 %v6248_v31  ;;  %v6059_v30 = vcombine.high %v156_v53, %v160_v27 }
  0xc2   :  { %v6257_v33 = vcombine.high %v355_v28, %v359_v29  ;;  %v235_v34 = vld [vmem:[#allocation6 + $0x300] sm:$0xff]  ;;  %2916 = vmatprep.subr.bf16.mxu1 %v6129_v32  ;;  %v6256_v39 = vcombine.low %v355_v28, %v359_v29  ;;  %v7806_v28 = vcombine.high %v7798_v19, %v7798_v19 }
  0xc3   :  { %v239_v35 = vld [vmem:[#allocation6 + $0x320] sm:$0xff]  ;;  %2917 = vmatpush1.bf16.msra.mxu1 %v6128_v38 }
  0xc4   :  { %v363_v36 = vld [vmem:[#allocation6 + $0x700] sm:$0xff]  ;;  %v6137_v40 = vcombine.high %v235_v34, %v239_v35  ;;  %2957 = vmatprep.subr.bf16.mxu0 %v6257_v33  ;;  %v6136_v46 = vcombine.low %v235_v34, %v239_v35  ;;  %v164_v33 = vld [vmem:[#allocation6 + $0xc8] sm:$0xff] }
  0xc5   :  { %v367_v37 = vld [vmem:[#allocation6 + $0x720] sm:$0xff]  ;;  %2958 = vmatpush1.bf16.msra.mxu0 %v6256_v39  ;;  %v168_v35 = vld [vmem:[#allocation6 + $0xe8] sm:$0xff] }
  0xc6   :  { %v6265_v41 = vcombine.high %v363_v36, %v367_v37  ;;  %v243_v42 = vld [vmem:[#allocation6 + $0x340] sm:$0xff]  ;;  %2918 = vmatprep.subr.bf16.mxu1 %v6137_v40  ;;  %v6264_v47 = vcombine.low %v363_v36, %v367_v37  ;;  %v6058_v36 = vcombine.low %v156_v53, %v160_v27  ;;  %v6067_v38 = vcombine.high %v164_v33, %v168_v35 }
  0xc7   :  { %v247_v43 = vld [vmem:[#allocation6 + $0x360] sm:$0xff]  ;;  %2919 = vmatpush1.bf16.msra.mxu1 %v6136_v46 }
  0xc8   :  { %v371_v44 = vld [vmem:[#allocation6 + $0x740] sm:$0xff]  ;;  %v6145_v48 = vcombine.high %v243_v42, %v247_v43  ;;  %2959 = vmatprep.subr.bf16.mxu0 %v6265_v41  ;;  %v6144_v56 = vcombine.low %v243_v42, %v247_v43  ;;  %v172_v41 = vld [vmem:[#allocation6 + $0x108] sm:$0xff] }
  0xc9   :  { %v375_v45 = vld [vmem:[#allocation6 + $0x760] sm:$0xff]  ;;  %2960 = vmatpush1.bf16.msra.mxu0 %v6264_v47  ;;  %v176_v43 = vld [vmem:[#allocation6 + $0x128] sm:$0xff] }
  0xca   :  { %v6273_v49 = vcombine.high %v371_v44, %v375_v45  ;;  %v251_v50 = vld [vmem:[#allocation6 + $0x380] sm:$0xff]  ;;  %2920 = vmatprep.subr.bf16.mxu1 %v6145_v48  ;;  %v6272_v57 = vcombine.low %v371_v44, %v375_v45  ;;  %v6066_v44 = vcombine.low %v164_v33, %v168_v35  ;;  %v6075_v46 = vcombine.high %v172_v41, %v176_v43  ;;  %v224_v33 = vld [vmem:[#allocation6 + $0x2a8] sm:$0xff] }
  0xcb   :  { %v255_v51 = vld [vmem:[#allocation6 + $0x3a0] sm:$0xff]  ;;  %2921 = vmatpush1.bf16.msra.mxu1 %v6144_v56 }
  0xcc   :  { %v379_v52 = vld [vmem:[#allocation6 + $0x780] sm:$0xff]  ;;  %v6153_v59 = vcombine.high %v251_v50, %v255_v51  ;;  %2961 = vmatprep.subr.bf16.mxu0 %v6273_v49  ;;  %v6152_v2 = vcombine.low %v251_v50, %v255_v51  ;;  %v180_v49 = vld [vmem:[#allocation6 + $0x148] sm:$0xff] }
  0xcd   :  { %v383_v55 = vld [vmem:[#allocation6 + $0x7a0] sm:$0xff]  ;;  %2962 = vmatpush1.bf16.msra.mxu0 %v6272_v57  ;;  %v184_v51 = vld [vmem:[#allocation6 + $0x168] sm:$0xff] }
  0xce   :  { %v6281_v60 = vcombine.high %v379_v52, %v383_v55  ;;  %v259_v62 = vld [vmem:[#allocation6 + $0x3c0] sm:$0xff]  ;;  %2922 = vmatprep.subr.bf16.mxu1 %v6153_v59  ;;  %v6280_v3 = vcombine.low %v379_v52, %v383_v55  ;;  %v6074_v52 = vcombine.low %v172_v41, %v176_v43  ;;  %v6083_v56 = vcombine.high %v180_v49, %v184_v51  ;;  %v232_v41 = vld [vmem:[#allocation6 + $0x2e8] sm:$0xff] }
  0xcf   :  { %v263_v63 = vld [vmem:[#allocation6 + $0x3e0] sm:$0xff]  ;;  %2923 = vmatpush1.bf16.msra.mxu1 %v6152_v2 }
  0xd0   :  { %v387_v0 = vld [vmem:[#allocation6 + $0x7c0] sm:$0xff]  ;;  %v6161_v4 = vcombine.high %v259_v62, %v263_v63  ;;  %2963 = vmatprep.subr.bf16.mxu0 %v6281_v60  ;;  %v6160_v10 = vcombine.low %v259_v62, %v263_v63  ;;  %v188_v60 = vld [vmem:[#allocation6 + $0x188] sm:$0xff] }
  0xd1   :  { %v391_v1 = vld [vmem:[#allocation6 + $0x7e0] sm:$0xff]  ;;  %2964 = vmatpush1.bf16.msra.mxu0 %v6280_v3  ;;  %v192_v63 = vld [vmem:[#allocation6 + $0x1a8] sm:$0xff] }
  0xd2   :  { %v6289_v5 = vcombine.high %v387_v0, %v391_v1  ;;  %v395_v8 = vld [vmem:[#allocation6 + $0x800] sm:$0xff]  ;;  %2924 = vmatprep.subr.bf16.mxu1 %v6161_v4  ;;  %v6288_v11 = vcombine.low %v387_v0, %v391_v1  ;;  %v6082_v0 = vcombine.low %v180_v49, %v184_v51  ;;  %v6091_v2 = vcombine.high %v188_v60, %v192_v63  ;;  %v240_v49 = vld [vmem:[#allocation6 + $0x328] sm:$0xff] }
  0xd3   :  { %v399_v9 = vld [vmem:[#allocation6 + $0x820] sm:$0xff]  ;;  %2925 = vmatpush1.bf16.msra.mxu1 %v6160_v10 }
  0xd4   :  { %2965 = vmatprep.subr.bf16.mxu0 %v6289_v5  ;;  %v6297_v13 = vcombine.high %v395_v8, %v399_v9  ;;  %v403_v17 = vld [vmem:[#allocation6 + $0x840] sm:$0xff]  ;;  %v6296_v22 = vcombine.low %v395_v8, %v399_v9  ;;  %3058 = vmatprep.subr.bf16.mxu1 %v6043_v12  ;;  %v196_v5 = vld [vmem:[#allocation6 + $0x1c8] sm:$0xff]  ;;  %v6090_v8 = vcombine.low %v188_v60, %v192_v63 }
  0xd5   :  { %v407_v18 = vld [vmem:[#allocation6 + $0x860] sm:$0xff]  ;;  %2966 = vmatpush1.bf16.msra.mxu0 %v6288_v11  ;;  %v6099_v10 = vcombine.high %v196_v5, %v200_v7  ;;  %v248_v60 = vld [vmem:[#allocation6 + $0x368] sm:$0xff] }
  0xd6   :  { %v411_v24 = vld [vmem:[#allocation6 + $0x880] sm:$0xff]  ;;  %2976 = vmatprep.subr.bf16.mxu0 %v6297_v13  ;;  %v6305_v25 = vcombine.high %v403_v17, %v407_v18  ;;  %2927 = vmatmul.mubr.bf16.vlgmr.msra.gmra.mrb[0].mxu1 %v7796_v16  ;;  %v6304_v29 = vcombine.low %v403_v17, %v407_v18  ;;  %v204_v13 = vld [vmem:[#allocation6 + $0x208] sm:$0xff]  ;;  %v6098_v17 = vcombine.low %v196_v5, %v200_v7 }
  0xd7   :  { %v415_v26 = vld [vmem:[#allocation6 + $0x8a0] sm:$0xff]  ;;  %3059 = vmatpush1.bf16.msra.mxu1 %v6042_v20  ;;  %3090 = vmatprep.mubr.bf16.mxu1 %v7786_v58  ;;  %v6107_v20 = vcombine.high %v204_v13, %v208_v15  ;;  %v6106_v53 = vcombine.low %v204_v13, %v208_v15  ;;  %v256_v5 = vld [vmem:[#allocation6 + $0x3a8] sm:$0xff] }
  0xd8   :  { %2968 = vmatmul.mubr.bf16.vlgmr.msra.gmra.mrb[0].mxu0 %v7802_v21  ;;  %3060 = vmatprep.subr.bf16.mxu1 %v6051_v23  ;;  %v419_v31 = vld [vmem:[#allocation6 + $0x8c0] sm:$0xff]  ;;  %v6313_v34 = vcombine.high %v411_v24, %v415_v26  ;;  %v6312_v37 = vcombine.low %v411_v24, %v415_v26  ;;  %v212_v24 = vld [vmem:[#allocation6 + $0x248] sm:$0xff] }
  0xd9   :  { %2977 = vmatpush1.bf16.msra.mxu0 %v6296_v22  ;;  %v423_v32 = vld [vmem:[#allocation6 + $0x8e0] sm:$0xff]  ;;  %3008 = vmatprep.mubr.bf16.mxu0 %v7806_v28  ;;  %v216_v26 = vld [vmem:[#allocation6 + $0x268] sm:$0xff] }
  0xda   :  { %2978 = vmatprep.subr.bf16.mxu0 %v6305_v25  ;;  %v427_v39 = vld [vmem:[#allocation6 + $0x900] sm:$0xff]  ;;  %v6321_v42 = vcombine.high %v419_v31, %v423_v32  ;;  %v6320_v45 = vcombine.low %v419_v31, %v423_v32  ;;  %v220_v31 = vld [vmem:[#allocation6 + $0x288] sm:$0xff] }
  0xdb   :  { %3061 = vmatpush1.bf16.msra.mxu1 %v6050_v54  ;;  %v431_v40 = vld [vmem:[#allocation6 + $0x920] sm:$0xff]  ;;  %v6115_v54 = vcombine.high %v212_v24, %v216_v26  ;;  %v264_v13 = vld [vmem:[#allocation6 + $0x3e8] sm:$0xff] }
  0xdc   :  { %3062 = vmatprep.subr.bf16.mxu1 %v6059_v30  ;;  %v435_v47 = vld [vmem:[#allocation6 + $0x940] sm:$0xff]  ;;  %v6329_v50 = vcombine.high %v427_v39, %v431_v40  ;;  %v6328_v55 = vcombine.low %v427_v39, %v431_v40  ;;  %v228_v39 = vld [vmem:[#allocation6 + $0x2c8] sm:$0xff] }
  0xdd   :  { %2979 = vmatpush1.bf16.msra.mxu0 %v6304_v29  ;;  %v439_v48 = vld [vmem:[#allocation6 + $0x960] sm:$0xff] }
  0xde   :  { %2980 = vmatprep.subr.bf16.mxu0 %v6313_v34  ;;  %v443_v57 = vld [vmem:[#allocation6 + $0x980] sm:$0xff]  ;;  %v6337_v62 = vcombine.high %v435_v47, %v439_v48  ;;  %v6336_v1 = vcombine.low %v435_v47, %v439_v48  ;;  %v6114_v34 = vcombine.low %v212_v24, %v216_v26  ;;  %v236_v47 = vld [vmem:[#allocation6 + $0x308] sm:$0xff] }
  0xdf   :  { %3063 = vmatpush1.bf16.msra.mxu1 %v6058_v36  ;;  %v447_v59 = vld [vmem:[#allocation6 + $0x9a0] sm:$0xff]  ;;  %v6123_v36 = vcombine.high %v220_v31, %v224_v33  ;;  %v272_v24 = vld [vmem:[#allocation6 + $0x428] sm:$0xff] }
  0xe0   :  { %3064 = vmatprep.subr.bf16.mxu1 %v6067_v38  ;;  %v451_v3 = vld [vmem:[#allocation6 + $0x9c0] sm:$0xff]  ;;  %v6345_v6 = vcombine.high %v443_v57, %v447_v59  ;;  %v6344_v9 = vcombine.low %v443_v57, %v447_v59  ;;  %v244_v57 = vld [vmem:[#allocation6 + $0x348] sm:$0xff] }
  0xe1   :  { %2981 = vmatpush1.bf16.msra.mxu0 %v6312_v37  ;;  %v455_v4 = vld [vmem:[#allocation6 + $0x9e0] sm:$0xff] }
  0xe2   :  { %2982 = vmatprep.subr.bf16.mxu0 %v6321_v42  ;;  %v459_v11 = vld [vmem:[#allocation6 + $0xa00] sm:$0xff]  ;;  %v6353_v14 = vcombine.high %v451_v3, %v455_v4  ;;  %v6352_v18 = vcombine.low %v451_v3, %v455_v4  ;;  %v6122_v42 = vcombine.low %v220_v31, %v224_v33  ;;  %v252_v3 = vld [vmem:[#allocation6 + $0x388] sm:$0xff]  ;;  %v7814_v33 = vcombine.low %v7798_v19, %v7798_v19 }
  0xe3   :  { %3065 = vmatpush1.bf16.msra.mxu1 %v6066_v44  ;;  %v463_v12 = vld [vmem:[#allocation6 + $0xa20] sm:$0xff]  ;;  %v6131_v44 = vcombine.high %v228_v39, %v232_v41  ;;  %v280_v31 = vld [vmem:[#allocation6 + $0x468] sm:$0xff] }
  0xe4   :  { %3066 = vmatprep.subr.bf16.mxu1 %v6075_v46  ;;  %v467_v22 = vld [vmem:[#allocation6 + $0xa40] sm:$0xff]  ;;  %v6361_v25 = vcombine.high %v459_v11, %v463_v12  ;;  %v6360_v27 = vcombine.low %v459_v11, %v463_v12  ;;  %v260_v11 = vld [vmem:[#allocation6 + $0x3c8] sm:$0xff] }
  0xe5   :  { %2983 = vmatpush1.bf16.msra.mxu0 %v6320_v45  ;;  %v471_v23 = vld [vmem:[#allocation6 + $0xa60] sm:$0xff] }
  0xe6   :  { %2984 = vmatprep.subr.bf16.mxu0 %v6329_v50  ;;  %v475_v29 = vld [vmem:[#allocation6 + $0xa80] sm:$0xff]  ;;  %v6369_v32 = vcombine.high %v467_v22, %v471_v23  ;;  %v6368_v35 = vcombine.low %v467_v22, %v471_v23  ;;  %v6130_v50 = vcombine.low %v228_v39, %v232_v41  ;;  %v268_v22 = vld [vmem:[#allocation6 + $0x408] sm:$0xff] }
  0xe7   :  { %3067 = vmatpush1.bf16.msra.mxu1 %v6074_v52  ;;  %v479_v30 = vld [vmem:[#allocation6 + $0xaa0] sm:$0xff]  ;;  %v6139_v52 = vcombine.high %v236_v47, %v240_v49 }
  0xe8   :  { %3068 = vmatprep.subr.bf16.mxu1 %v6083_v56  ;;  %v483_v37 = vld [vmem:[#allocation6 + $0xac0] sm:$0xff]  ;;  %v6377_v40 = vcombine.high %v475_v29, %v479_v30  ;;  %v6376_v43 = vcombine.low %v475_v29, %v479_v30  ;;  %v276_v29 = vld [vmem:[#allocation6 + $0x448] sm:$0xff] }
  0xe9   :  { %2985 = vmatpush1.bf16.msra.mxu0 %v6328_v55  ;;  %v487_v38 = vld [vmem:[#allocation6 + $0xae0] sm:$0xff]  ;;  %v6178_v41 = vcombine.low %v276_v29, %v280_v31 }
  0xea   :  { %2986 = vmatprep.subr.bf16.mxu0 %v6337_v62  ;;  %v491_v45 = vld [vmem:[#allocation6 + $0xb00] sm:$0xff]  ;;  %v6385_v48 = vcombine.high %v483_v37, %v487_v38  ;;  %v6384_v51 = vcombine.low %v483_v37, %v487_v38  ;;  %v6138_v62 = vcombine.low %v236_v47, %v240_v49  ;;  %v284_v38 = vld [vmem:[#allocation6 + $0x488] sm:$0xff] }
  0xeb   :  { %3069 = vmatpush1.bf16.msra.mxu1 %v6082_v0  ;;  %v495_v46 = vld [vmem:[#allocation6 + $0xb20] sm:$0xff]  ;;  %v6147_v0 = vcombine.high %v244_v57, %v248_v60  ;;  %v296_v47 = vld [vmem:[#allocation6 + $0x4e8] sm:$0xff] }
  0xec   :  { %3070 = vmatprep.subr.bf16.mxu1 %v6091_v2  ;;  %v499_v55 = vld [vmem:[#allocation6 + $0xb40] sm:$0xff]  ;;  %v6393_v59 = vcombine.high %v491_v45, %v495_v46  ;;  %v6392_v63 = vcombine.low %v491_v45, %v495_v46  ;;  %v292_v45 = vld [vmem:[#allocation6 + $0x4c8] sm:$0xff] }
  0xed   :  { %2987 = vmatpush1.bf16.msra.mxu0 %v6336_v1  ;;  %v503_v56 = vld [vmem:[#allocation6 + $0xb60] sm:$0xff] }
  0xee   :  { %2988 = vmatprep.subr.bf16.mxu0 %v6345_v6  ;;  %v507_v1 = vld [vmem:[#allocation6 + $0xb80] sm:$0xff]  ;;  %v6401_v4 = vcombine.high %v499_v55, %v503_v56  ;;  %v6146_v6 = vcombine.low %v244_v57, %v248_v60  ;;  %v6400_v7 = vcombine.low %v499_v55, %v503_v56  ;;  %v300_v56 = vld [vmem:[#allocation6 + $0x508] sm:$0xff]  ;;  %v6194_v60 = vcombine.low %v292_v45, %v296_v47 }
  0xef   :  { %3071 = vmatpush1.bf16.msra.mxu1 %v6090_v8  ;;  %v511_v2 = vld [vmem:[#allocation6 + $0xba0] sm:$0xff]  ;;  %v6155_v8 = vcombine.high %v252_v3, %v256_v5 }
  0xf0   :  { %3072 = vmatprep.subr.bf16.mxu1 %v6099_v10  ;;  %v519_v10 = vld [vmem:[#allocation6 + $0xbe0] sm:$0xff]  ;;  %v6409_v12 = vcombine.high %v507_v1, %v511_v2  ;;  %v6408_v15 = vcombine.low %v507_v1, %v511_v2  ;;  %v308_v2 = vld [vmem:[#allocation6 + $0x548] sm:$0xff] }
  0xf1   :  { %2989 = vmatpush1.bf16.msra.mxu0 %v6344_v9  ;;  %v515_v9 = vld [vmem:[#allocation6 + $0xbc0] sm:$0xff] }
  0xf2   :  { %2990 = vmatprep.subr.bf16.mxu0 %v6353_v14  ;;  %v6154_v14 = vcombine.low %v252_v3, %v256_v5  ;;  %v6417_v23 = vcombine.high %v515_v9, %v519_v10  ;;  %v6416_v26 = vcombine.low %v515_v9, %v519_v10  ;;  %v543_v37 = vld [vmem:[#allocation6 + $0xca0] sm:$0xff]  ;;  %v316_v10 = vld [vmem:[#allocation6 + $0x588] sm:$0xff] }
  0xf3   :  { %3073 = vmatpush1.bf16.msra.mxu1 %v6098_v17  ;;  %v6163_v17 = vcombine.high %v260_v11, %v264_v13  ;;  %v559_v55 = vld [vmem:[#allocation6 + $0xd20] sm:$0xff] }
  0xf4   :  { %3074 = vmatprep.subr.bf16.mxu1 %v6107_v20  ;;  %v527_v20 = vld [vmem:[#allocation6 + $0xc20] sm:$0xff] }
  0xf5   :  { %2991 = vmatpush1.bf16.msra.mxu0 %v6352_v18  ;;  %v523_v18 = vld [vmem:[#allocation6 + $0xc00] sm:$0xff] }
  0xf6   :  { %2992 = vmatprep.subr.bf16.mxu0 %v6361_v25  ;;  %v6162_v25 = vcombine.low %v260_v11, %v264_v13  ;;  %v6425_v30 = vcombine.high %v523_v18, %v527_v20  ;;  %v567_v1 = vld [vmem:[#allocation6 + $0xd60] sm:$0xff] }
  0xf7   :  { %3075 = vmatpush1.bf16.msra.mxu1 %v6106_v53  ;;  %v6171_v53 = vcombine.high %v268_v22, %v272_v24  ;;  %v575_v9 = vld [vmem:[#allocation6 + $0xda0] sm:$0xff] }
  0xf8   :  { %3076 = vmatprep.subr.bf16.mxu1 %v6115_v54  ;;  %v535_v54 = vld [vmem:[#allocation6 + $0xc60] sm:$0xff] }
  0xf9   :  { %2993 = vmatpush1.bf16.msra.mxu0 %v6360_v27  ;;  %v531_v27 = vld [vmem:[#allocation6 + $0xc40] sm:$0xff] }
  0xfa   :  { %2994 = vmatprep.subr.bf16.mxu0 %v6369_v32  ;;  %v6170_v32 = vcombine.low %v268_v22, %v272_v24  ;;  %v6433_v39 = vcombine.high %v531_v27, %v535_v54  ;;  %v324_v22 = vld [vmem:[#allocation6 + $0x5c8] sm:$0xff] }
  0xfb   :  { %3077 = vmatpush1.bf16.msra.mxu1 %v6114_v34  ;;  %v6424_v34 = vcombine.low %v523_v18, %v527_v20  ;;  %v583_v18 = vld [vmem:[#allocation6 + $0xde0] sm:$0xff] }
  0xfc   :  { %3078 = vmatprep.subr.bf16.mxu1 %v6123_v36  ;;  %v539_v36 = vld [vmem:[#allocation6 + $0xc80] sm:$0xff] }
  0xfd   :  { %2995 = vmatpush1.bf16.msra.mxu0 %v6368_v35  ;;  %v6179_v35 = vcombine.high %v276_v29, %v280_v31  ;;  %v6441_v46 = vcombine.high %v539_v36, %v543_v37 }
  0xfe   :  { %2996 = vmatprep.subr.bf16.mxu0 %v6377_v40  ;;  %v288_v40 = vld [vmem:[#allocation6 + $0x4a8] sm:$0xff] }
  0xff   :  { %3079 = vmatpush1.bf16.msra.mxu1 %v6122_v42  ;;  %v6432_v42 = vcombine.low %v531_v27, %v535_v54  ;;  %v6187_v19 = vcombine.high %v284_v38, %v288_v40  ;;  %v6186_v49 = vcombine.low %v284_v38, %v288_v40  ;;  %v336_v27 = vld [vmem:[#allocation6 + $0x628] sm:$0xff]  ;;  %v141_v54 = vld [vmem:[#allocation6 + $0x10] sm:$0xff]  ;;  %v6920_v38 = vld [vmem:[#allocation3 + $0x18] ss:$0 sps:$4 sm:$0xff]  }
 0x100   :  { %3080 = vmatprep.subr.bf16.mxu1 %v6131_v44  ;;  %v551_v44 = vld [vmem:[#allocation6 + $0xce0] sm:$0xff]  ;;  %v153_v40 = vld [vmem:[#allocation6 + $0x70] sm:$0xff] }
 0x101   :  { %2997 = vmatpush1.bf16.msra.mxu0 %v6376_v43  ;;  %v547_v43 = vld [vmem:[#allocation6 + $0xcc0] sm:$0xff] }
 0x102   :  { %2998 = vmatprep.subr.bf16.mxu0 %v6385_v48  ;;  %v7632_v48 = vmov 0   ;;  %v6449_v57 = vcombine.high %v547_v43, %v551_v44 }
 0x103   :  { %3081 = vmatpush1.bf16.msra.mxu1 %v6130_v50  ;;  %v6440_v50 = vcombine.low %v539_v36, %v543_v37  ;;  %v344_v36 = vld [vmem:[#allocation6 + $0x668] sm:$0xff]  ;;  %v149_v37 = vld [vmem:[#allocation6 + $0x50] sm:$0xff] }
 0x104   :  { %3082 = vmatprep.subr.bf16.mxu1 %v6139_v52  ;;  %v555_v52 = vld [vmem:[#allocation6 + $0xd00] sm:$0xff] }
 0x105   :  { %2999 = vmatpush1.bf16.msra.mxu0 %v6384_v51  ;;  %v6195_v51 = vcombine.high %v292_v45, %v296_v47  ;;  %v6457_v3 = vcombine.high %v555_v52, %v559_v55  ;;  %v157_v45 = vld [vmem:[#allocation6 + $0x90] sm:$0xff] }
 0x106   :  { %3000 = vmatprep.subr.bf16.mxu0 %v6393_v59  ;;  %v304_v59 = vld [vmem:[#allocation6 + $0x528] sm:$0xff]  ;;  %v161_v47 = vld [vmem:[#allocation6 + $0xb0] sm:$0xff] }
 0x107   :  { %3083 = vmatpush1.bf16.msra.mxu1 %v6138_v62  ;;  %v6448_v62 = vcombine.low %v547_v43, %v551_v44  ;;  %v6202_v5 = vcombine.low %v300_v56, %v304_v59  ;;  %v348_v43 = vld [vmem:[#allocation6 + $0x688] sm:$0xff] }
 0x108   :  { %3084 = vmatprep.subr.bf16.mxu1 %v6147_v0  ;;  %v563_v0 = vld [vmem:[#allocation6 + $0xd40] sm:$0xff]  ;;  %v352_v44 = vld [vmem:[#allocation6 + $0x6a8] sm:$0xff] }
 0x109   :  { %3001 = vmatpush1.bf16.msra.mxu0 %v6392_v63  ;;  %v6203_v63 = vcombine.high %v300_v56, %v304_v59  ;;  %v6465_v11 = vcombine.high %v563_v0, %v567_v1  ;;  %v165_v56 = vld [vmem:[#allocation6 + $0xd0] sm:$0xff] }
 0x10a   :  { %3002 = vmatprep.subr.bf16.mxu0 %v6401_v4  ;;  %v312_v4 = vld [vmem:[#allocation6 + $0x568] sm:$0xff]  ;;  %v169_v59 = vld [vmem:[#allocation6 + $0xf0] sm:$0xff] }
 0x10b   :  { %3085 = vmatpush1.bf16.msra.mxu1 %v6146_v6  ;;  %v6456_v6 = vcombine.low %v555_v52, %v559_v55  ;;  %v6210_v13 = vcombine.low %v308_v2, %v312_v4  ;;  %v356_v52 = vld [vmem:[#allocation6 + $0x6c8] sm:$0xff] }
 0x10c   :  { %3086 = vmatprep.subr.bf16.mxu1 %v6155_v8  ;;  %v571_v8 = vld [vmem:[#allocation6 + $0xd80] sm:$0xff]  ;;  %v360_v55 = vld [vmem:[#allocation6 + $0x6e8] sm:$0xff] }
 0x10d   :  { %3003 = vmatpush1.bf16.msra.mxu0 %v6400_v7  ;;  %v6211_v7 = vcombine.high %v308_v2, %v312_v4  ;;  %v6473_v20 = vcombine.high %v571_v8, %v575_v9  ;;  %v173_v2 = vld [vmem:[#allocation6 + $0x110] sm:$0xff] }
 0x10e   :  { %3004 = vmatprep.subr.bf16.mxu0 %v6409_v12  ;;  %v320_v12 = vld [vmem:[#allocation6 + $0x5a8] sm:$0xff]  ;;  %v177_v4 = vld [vmem:[#allocation6 + $0x130] sm:$0xff] }
 0x10f   :  { %3087 = vmatpush1.bf16.msra.mxu1 %v6154_v14  ;;  %v6464_v14 = vcombine.low %v563_v0, %v567_v1  ;;  %v6218_v24 = vcombine.low %v316_v10, %v320_v12  ;;  %v364_v0 = vld [vmem:[#allocation6 + $0x708] sm:$0xff] }
 0x110   :  { %3088 = vmatprep.subr.bf16.mxu1 %v6163_v17  ;;  %v579_v17 = vld [vmem:[#allocation6 + $0xdc0] sm:$0xff]  ;;  %v368_v1 = vld [vmem:[#allocation6 + $0x728] sm:$0xff] }
 0x111   :  { %3005 = vmatpush1.bf16.msra.mxu0 %v6408_v15  ;;  %v6219_v15 = vcombine.high %v316_v10, %v320_v12  ;;  %v6481_v29 = vcombine.high %v579_v17, %v583_v18  ;;  %v181_v10 = vld [vmem:[#allocation6 + $0x150] sm:$0xff] }
 0x112   :  { %3006 = vmatprep.subr.bf16.mxu0 %v6417_v23  ;;  %v328_v23 = vld [vmem:[#allocation6 + $0x5e8] sm:$0xff]  ;;  %v185_v12 = vld [vmem:[#allocation6 + $0x170] sm:$0xff] }
 0x113   :  { %3089 = vmatpush1.bf16.msra.mxu1 %v6162_v25  ;;  %v6472_v25 = vcombine.low %v571_v8, %v575_v9  ;;  %v6226_v31 = vcombine.low %v324_v22, %v328_v23  ;;  %v372_v8 = vld [vmem:[#allocation6 + $0x748] sm:$0xff] }
 0x114   :  { %3099 = vmatprep.subr.bf16.mxu1 %v6171_v53  ;;  %v332_v53 = vld [vmem:[#allocation6 + $0x608] sm:$0xff] }
 0x115   :  { %3007 = vmatpush1.bf16.msra.mxu0 %v6416_v26  ;;  %v6227_v26 = vcombine.high %v324_v22, %v328_v23  ;;  %v376_v9 = vld [vmem:[#allocation6 + $0x768] sm:$0xff]  ;;  %v6085_v22 = vcombine.high %v181_v10, %v185_v12  ;;  %v193_v23 = vld [vmem:[#allocation6 + $0x1b0] sm:$0xff] }
 0x116   :  { %3017 = vmatprep.subr.bf16.mxu0 %v6425_v30  ;;  %3091 = vmatmul.mubr.bf16.vlgmr.msra.gmra.mrb[4].mxu1 %v7796_v16  ;;  %v145_v30 = vld [vmem:[#allocation6 + $0x30] sm:$0xff] }
 0x117   :  { %3100 = vmatpush1.bf16.msra.mxu1 %v6170_v32  ;;  %3131 = vmatprep.mubr.bf16.mxu1 %v7790_v61  ;;  %v6480_v32 = vcombine.low %v579_v17, %v583_v18  ;;  %v380_v17 = vld [vmem:[#allocation6 + $0x788] sm:$0xff] }
 0x118   :  { %3009 = vmatmul.mubr.bf16.vlgmr.msra.gmra.mrb[0].mxu0 %v7814_v33  ;;  %3101 = vmatprep.subr.bf16.mxu1 %v6179_v35  ;;  %v340_v35 = vld [vmem:[#allocation6 + $0x648] sm:$0xff] }
 0x119   :  { %3018 = vmatpush1.bf16.msra.mxu0 %v6424_v34  ;;  %3049 = vmatprep.mubr.bf16.mxu0 %v7632_v48  ;;  %v6235_v34 = vcombine.high %v332_v53, %v336_v27  ;;  %v384_v18 = vld [vmem:[#allocation6 + $0x7a8] sm:$0xff] }
 0x11a   :  { %3019 = vmatprep.subr.bf16.mxu0 %v6433_v39  ;;  %v6045_v39 = vcombine.high %v141_v54, %v145_v30 }
 0x11b   :  { %3102 = vmatpush1.bf16.msra.mxu1 %v6178_v41  ;;  %v6234_v41 = vcombine.low %v332_v53, %v336_v27  ;;  %v388_v53 = vld [vmem:[#allocation6 + $0x7c8] sm:$0xff] }
 0x11c   :  { %3103 = vmatprep.subr.bf16.mxu1 %v6187_v19  ;;  %v6243_v19 = vcombine.high %v340_v35, %v344_v36  ;;  %v392_v27 = vld [vmem:[#allocation6 + $0x7e8] sm:$0xff] }
 0x11d   :  { %3020 = vmatpush1.bf16.msra.mxu0 %v6432_v42  ;;  %v6044_v42 = vcombine.low %v141_v54, %v145_v30  ;;  %v197_v54 = vld [vmem:[#allocation6 + $0x1d0] sm:$0xff] }
 0x11e   :  { %3021 = vmatprep.subr.bf16.mxu0 %v6441_v46  ;;  %v6053_v46 = vcombine.high %v149_v37, %v153_v40  ;;  %v201_v30 = vld [vmem:[#allocation6 + $0x1f0] sm:$0xff] }
 0x11f   :  { %3104 = vmatpush1.bf16.msra.mxu1 %v6186_v49  ;;  %v6242_v49 = vcombine.low %v340_v35, %v344_v36  ;;  %v396_v35 = vld [vmem:[#allocation6 + $0x808] sm:$0xff] }
 0x120   :  { %3105 = vmatprep.subr.bf16.mxu1 %v6195_v51  ;;  %v6251_v51 = vcombine.high %v348_v43, %v352_v44  ;;  %v400_v36 = vld [vmem:[#allocation6 + $0x828] sm:$0xff] }
 0x121   :  { %3022 = vmatpush1.bf16.msra.mxu0 %v6440_v50  ;;  %v6052_v50 = vcombine.low %v149_v37, %v153_v40  ;;  %v205_v37 = vld [vmem:[#allocation6 + $0x210] sm:$0xff]  ;;  %v6290_v40 = vcombine.low %v388_v53, %v392_v27 }
 0x122   :  { %3023 = vmatprep.subr.bf16.mxu0 %v6449_v57  ;;  %v6061_v57 = vcombine.high %v157_v45, %v161_v47 }
 0x123   :  { %3106 = vmatpush1.bf16.msra.mxu1 %v6194_v60  ;;  %v6250_v60 = vcombine.low %v348_v43, %v352_v44  ;;  %v408_v43 = vld [vmem:[#allocation6 + $0x868] sm:$0xff]  ;;  %v213_v44 = vld [vmem:[#allocation6 + $0x250] sm:$0xff] }
 0x124   :  { %3107 = vmatprep.subr.bf16.mxu1 %v6203_v63  ;;  %v6259_v63 = vcombine.high %v356_v52, %v360_v55 }
 0x125   :  { %3024 = vmatpush1.bf16.msra.mxu0 %v6448_v62  ;;  %v6060_v62 = vcombine.low %v157_v45, %v161_v47  ;;  %v6298_v47 = vcombine.low %v396_v35, %v400_v36 }
 0x126   :  { %3025 = vmatprep.subr.bf16.mxu0 %v6457_v3  ;;  %v6069_v3 = vcombine.high %v165_v56, %v169_v59 }
 0x127   :  { %3108 = vmatpush1.bf16.msra.mxu1 %v6202_v5  ;;  %v6258_v5 = vcombine.low %v356_v52, %v360_v55  ;;  %v416_v52 = vld [vmem:[#allocation6 + $0x8a8] sm:$0xff]  ;;  %v221_v55 = vld [vmem:[#allocation6 + $0x290] sm:$0xff] }
 0x128   :  { %3109 = vmatprep.subr.bf16.mxu1 %v6211_v7  ;;  %v6267_v7 = vcombine.high %v364_v0, %v368_v1 }
 0x129   :  { %3026 = vmatpush1.bf16.msra.mxu0 %v6456_v6  ;;  %v6068_v6 = vcombine.low %v165_v56, %v169_v59 }
 0x12a   :  { %3027 = vmatprep.subr.bf16.mxu0 %v6465_v11  ;;  %v6077_v11 = vcombine.high %v173_v2, %v177_v4 }
 0x12b   :  { %3110 = vmatpush1.bf16.msra.mxu1 %v6210_v13  ;;  %v6266_v13 = vcombine.low %v364_v0, %v368_v1  ;;  %v424_v0 = vld [vmem:[#allocation6 + $0x8e8] sm:$0xff]  ;;  %v229_v1 = vld [vmem:[#allocation6 + $0x2d0] sm:$0xff] }
 0x12c   :  { %3111 = vmatprep.subr.bf16.mxu1 %v6219_v15  ;;  %v6275_v15 = vcombine.high %v372_v8, %v376_v9 }
 0x12d   :  { %3028 = vmatpush1.bf16.msra.mxu0 %v6464_v14  ;;  %v6076_v14 = vcombine.low %v173_v2, %v177_v4 }
 0x12e   :  { %3029 = vmatprep.subr.bf16.mxu0 %v6473_v20  ;;  %v189_v20 = vld [vmem:[#allocation6 + $0x190] sm:$0xff] }
 0x12f   :  { %3112 = vmatpush1.bf16.msra.mxu1 %v6218_v24  ;;  %v6274_v24 = vcombine.low %v372_v8, %v376_v9  ;;  %v432_v8 = vld [vmem:[#allocation6 + $0x928] sm:$0xff]  ;;  %v237_v9 = vld [vmem:[#allocation6 + $0x310] sm:$0xff] }
 0x130   :  { %3113 = vmatprep.subr.bf16.mxu1 %v6227_v26  ;;  %v6283_v26 = vcombine.high %v380_v17, %v384_v18 }
 0x131   :  { %3030 = vmatpush1.bf16.msra.mxu0 %v6472_v25  ;;  %v6084_v25 = vcombine.low %v181_v10, %v185_v12 }
 0x132   :  { %3031 = vmatprep.subr.bf16.mxu0 %v6481_v29  ;;  %v6093_v29 = vcombine.high %v189_v20, %v193_v23 }
 0x133   :  { %3114 = vmatpush1.bf16.msra.mxu1 %v6226_v31  ;;  %v6282_v31 = vcombine.low %v380_v17, %v384_v18  ;;  %v440_v17 = vld [vmem:[#allocation6 + $0x968] sm:$0xff]  ;;  %v245_v18 = vld [vmem:[#allocation6 + $0x350] sm:$0xff] }
 0x134   :  { %3115 = vmatprep.subr.bf16.mxu1 %v6235_v34  ;;  %v6291_v34 = vcombine.high %v388_v53, %v392_v27  ;;  %v448_v53 = vld [vmem:[#allocation6 + $0x9a8] sm:$0xff]  ;;  %v253_v27 = vld [vmem:[#allocation6 + $0x390] sm:$0xff] }
 0x135   :  { %3032 = vmatpush1.bf16.msra.mxu0 %v6480_v32  ;;  %v6092_v32 = vcombine.low %v189_v20, %v193_v23 }
 0x136   :  { %3222 = vmatprep.subr.bf16.mxu0 %v6045_v39  ;;  %v209_v39 = vld [vmem:[#allocation6 + $0x230] sm:$0xff] }
 0x137   :  { %3116 = vmatpush1.bf16.msra.mxu1 %v6234_v41  ;;  %v6100_v41 = vcombine.low %v197_v54, %v201_v30  ;;  %v6109_v45 = vcombine.high %v205_v37, %v209_v39 }
 0x138   :  { %3050 = vmatmul.mubr.bf16.vlgmr.msra.gmra.mrb[0].mxu0 %v6920_v38  ;;  %3117 = vmatprep.subr.bf16.mxu1 %v6243_v19  ;;  %v6101_v38 = vcombine.high %v197_v54, %v201_v30  ;;  %v404_v19 = vld [vmem:[#allocation6 + $0x848] sm:$0xff] }
 0x139   :  { %3223 = vmatpush1.bf16.msra.mxu0 %v6044_v42  ;;  %3254 = vmatprep.mubr.bf16.mxu0 %v7786_v58  ;;  %v6299_v42 = vcombine.high %v396_v35, %v400_v36  ;;  %v6306_v59 = vcombine.low %v404_v19, %v408_v43  ;;  %v456_v35 = vld [vmem:[#allocation6 + $0x9e8] sm:$0xff]  ;;  %v261_v36 = vld [vmem:[#allocation6 + $0x3d0] sm:$0xff] }
 0x13a   :  { %3224 = vmatprep.subr.bf16.mxu0 %v6053_v46  ;;  %v217_v46 = vld [vmem:[#allocation6 + $0x270] sm:$0xff] }
 0x13b   :  { %3118 = vmatpush1.bf16.msra.mxu1 %v6242_v49  ;;  %v6108_v49 = vcombine.low %v205_v37, %v209_v39  ;;  %v6117_v56 = vcombine.high %v213_v44, %v217_v46 }
 0x13c   :  { %3119 = vmatprep.subr.bf16.mxu1 %v6251_v51  ;;  %v412_v51 = vld [vmem:[#allocation6 + $0x888] sm:$0xff] }
 0x13d   :  { %3225 = vmatpush1.bf16.msra.mxu0 %v6052_v50  ;;  %v6307_v50 = vcombine.high %v404_v19, %v408_v43  ;;  %v6314_v4 = vcombine.low %v412_v51, %v416_v52  ;;  %v464_v19 = vld [vmem:[#allocation6 + $0xa28] sm:$0xff]  ;;  %v269_v43 = vld [vmem:[#allocation6 + $0x410] sm:$0xff] }
 0x13e   :  { %3226 = vmatprep.subr.bf16.mxu0 %v6061_v57  ;;  %v225_v57 = vld [vmem:[#allocation6 + $0x2b0] sm:$0xff] }
 0x13f   :  { %3120 = vmatpush1.bf16.msra.mxu1 %v6250_v60  ;;  %v6116_v60 = vcombine.low %v213_v44, %v217_v46  ;;  %v6125_v2 = vcombine.high %v221_v55, %v225_v57 }
 0x140   :  { %3121 = vmatprep.subr.bf16.mxu1 %v6259_v63  ;;  %v420_v63 = vld [vmem:[#allocation6 + $0x8c8] sm:$0xff] }
 0x141   :  { %3227 = vmatpush1.bf16.msra.mxu0 %v6060_v62  ;;  %v6315_v62 = vcombine.high %v412_v51, %v416_v52  ;;  %v6322_v12 = vcombine.low %v420_v63, %v424_v0  ;;  %v472_v51 = vld [vmem:[#allocation6 + $0xa68] sm:$0xff]  ;;  %v277_v52 = vld [vmem:[#allocation6 + $0x450] sm:$0xff] }
 0x142   :  { %3228 = vmatprep.subr.bf16.mxu0 %v6069_v3  ;;  %v233_v3 = vld [vmem:[#allocation6 + $0x2f0] sm:$0xff] }
 0x143   :  { %3122 = vmatpush1.bf16.msra.mxu1 %v6258_v5  ;;  %v6124_v5 = vcombine.low %v221_v55, %v225_v57  ;;  %v6133_v10 = vcombine.high %v229_v1, %v233_v3 }
 0x144   :  { %3123 = vmatprep.subr.bf16.mxu1 %v6267_v7  ;;  %v428_v7 = vld [vmem:[#allocation6 + $0x908] sm:$0xff] }
 0x145   :  { %3229 = vmatpush1.bf16.msra.mxu0 %v6068_v6  ;;  %v6323_v6 = vcombine.high %v420_v63, %v424_v0  ;;  %v6330_v23 = vcombine.low %v428_v7, %v432_v8  ;;  %v480_v0 = vld [vmem:[#allocation6 + $0xaa8] sm:$0xff] }
 0x146   :  { %3230 = vmatprep.subr.bf16.mxu0 %v6077_v11  ;;  %v241_v11 = vld [vmem:[#allocation6 + $0x330] sm:$0xff] }
 0x147   :  { %3124 = vmatpush1.bf16.msra.mxu1 %v6266_v13  ;;  %v6132_v13 = vcombine.low %v229_v1, %v233_v3  ;;  %v6141_v20 = vcombine.high %v237_v9, %v241_v11  ;;  %v285_v1 = vld [vmem:[#allocation6 + $0x490] sm:$0xff] }
 0x148   :  { %3125 = vmatprep.subr.bf16.mxu1 %v6275_v15  ;;  %v436_v15 = vld [vmem:[#allocation6 + $0x948] sm:$0xff] }
 0x149   :  { %3231 = vmatpush1.bf16.msra.mxu0 %v6076_v14  ;;  %v6331_v14 = vcombine.high %v428_v7, %v432_v8  ;;  %v6338_v30 = vcombine.low %v436_v15, %v440_v17  ;;  %v484_v7 = vld [vmem:[#allocation6 + $0xac8] sm:$0xff] }
 0x14a   :  { %3232 = vmatprep.subr.bf16.mxu0 %v6085_v22  ;;  %v249_v22 = vld [vmem:[#allocation6 + $0x370] sm:$0xff]  ;;  %v488_v8 = vld [vmem:[#allocation6 + $0xae8] sm:$0xff] }
 0x14b   :  { %3126 = vmatpush1.bf16.msra.mxu1 %v6274_v24  ;;  %v6140_v24 = vcombine.low %v237_v9, %v241_v11  ;;  %v6149_v54 = vcombine.high %v245_v18, %v249_v22  ;;  %v293_v9 = vld [vmem:[#allocation6 + $0x4d0] sm:$0xff] }
 0x14c   :  { %3127 = vmatprep.subr.bf16.mxu1 %v6283_v26  ;;  %v444_v26 = vld [vmem:[#allocation6 + $0x988] sm:$0xff] }
 0x14d   :  { %3233 = vmatpush1.bf16.msra.mxu0 %v6084_v25  ;;  %v6339_v25 = vcombine.high %v436_v15, %v440_v17  ;;  %v6346_v39 = vcombine.low %v444_v26, %v448_v53  ;;  %v492_v15 = vld [vmem:[#allocation6 + $0xb08] sm:$0xff] }
 0x14e   :  { %3234 = vmatprep.subr.bf16.mxu0 %v6093_v29  ;;  %v257_v29 = vld [vmem:[#allocation6 + $0x3b0] sm:$0xff]  ;;  %v496_v17 = vld [vmem:[#allocation6 + $0xb28] sm:$0xff] }
 0x14f   :  { %3128 = vmatpush1.bf16.msra.mxu1 %v6282_v31  ;;  %v6148_v31 = vcombine.low %v245_v18, %v249_v22  ;;  %v6157_v37 = vcombine.high %v253_v27, %v257_v29  ;;  %v301_v18 = vld [vmem:[#allocation6 + $0x510] sm:$0xff]  ;;  %v6386_v22 = vcombine.low %v484_v7, %v488_v8 }
 0x150   :  { %3129 = vmatprep.subr.bf16.mxu1 %v6291_v34  ;;  %v452_v34 = vld [vmem:[#allocation6 + $0x9c8] sm:$0xff] }
 0x151   :  { %3235 = vmatpush1.bf16.msra.mxu0 %v6092_v32  ;;  %v6347_v32 = vcombine.high %v444_v26, %v448_v53  ;;  %v6354_v46 = vcombine.low %v452_v34, %v456_v35  ;;  %v500_v26 = vld [vmem:[#allocation6 + $0xb48] sm:$0xff] }
 0x152   :  { %3236 = vmatprep.subr.bf16.mxu0 %v6101_v38  ;;  %v265_v38 = vld [vmem:[#allocation6 + $0x3f0] sm:$0xff]  ;;  %v504_v53 = vld [vmem:[#allocation6 + $0xb68] sm:$0xff] }
 0x153   :  { %3130 = vmatpush1.bf16.msra.mxu1 %v6290_v40  ;;  %v6156_v40 = vcombine.low %v253_v27, %v257_v29  ;;  %v6165_v44 = vcombine.high %v261_v36, %v265_v38  ;;  %v309_v27 = vld [vmem:[#allocation6 + $0x550] sm:$0xff]  ;;  %v6394_v29 = vcombine.low %v492_v15, %v496_v17 }
 0x154   :  { %3140 = vmatprep.subr.bf16.mxu1 %v6299_v42  ;;  %v460_v42 = vld [vmem:[#allocation6 + $0xa08] sm:$0xff] }
 0x155   :  { %3237 = vmatpush1.bf16.msra.mxu0 %v6100_v41  ;;  %v6355_v41 = vcombine.high %v452_v34, %v456_v35  ;;  %v6362_v57 = vcombine.low %v460_v42, %v464_v19  ;;  %v508_v34 = vld [vmem:[#allocation6 + $0xb88] sm:$0xff] }
 0x156   :  { %3238 = vmatprep.subr.bf16.mxu0 %v6109_v45  ;;  %3132 = vmatmul.mubr.bf16.vlgmr.msra.gmra.mrb[4].mxu1 %v7802_v21  ;;  %v273_v45 = vld [vmem:[#allocation6 + $0x430] sm:$0xff]  ;;  %v512_v35 = vld [vmem:[#allocation6 + $0xba8] sm:$0xff] }
 0x157   :  { %3141 = vmatpush1.bf16.msra.mxu1 %v6298_v47  ;;  %3172 = vmatprep.mubr.bf16.mxu1 %v7806_v28  ;;  %v6164_v47 = vcombine.low %v261_v36, %v265_v38  ;;  %v6173_v55 = vcombine.high %v269_v43, %v273_v45  ;;  %v317_v36 = vld [vmem:[#allocation6 + $0x590] sm:$0xff]  ;;  %v6402_v38 = vcombine.low %v500_v26, %v504_v53 }
 0x158   :  { %3142 = vmatprep.subr.bf16.mxu1 %v6307_v50  ;;  %v468_v50 = vld [vmem:[#allocation6 + $0xa48] sm:$0xff] }
 0x159   :  { %3239 = vmatpush1.bf16.msra.mxu0 %v6108_v49  ;;  %v6363_v49 = vcombine.high %v460_v42, %v464_v19  ;;  %v6370_v3 = vcombine.low %v468_v50, %v472_v51  ;;  %v516_v42 = vld [vmem:[#allocation6 + $0xbc8] sm:$0xff] }
 0x15a   :  { %3240 = vmatprep.subr.bf16.mxu0 %v6117_v56  ;;  %v281_v56 = vld [vmem:[#allocation6 + $0x470] sm:$0xff]  ;;  %v520_v19 = vld [vmem:[#allocation6 + $0xbe8] sm:$0xff] }
 0x15b   :  { %3143 = vmatpush1.bf16.msra.mxu1 %v6306_v59  ;;  %v6172_v59 = vcombine.low %v269_v43, %v273_v45  ;;  %v6181_v63 = vcombine.high %v277_v52, %v281_v56  ;;  %v325_v43 = vld [vmem:[#allocation6 + $0x5d0] sm:$0xff]  ;;  %v6410_v45 = vcombine.low %v508_v34, %v512_v35 }
 0x15c   :  { %3144 = vmatprep.subr.bf16.mxu1 %v6315_v62  ;;  %v476_v62 = vld [vmem:[#allocation6 + $0xa88] sm:$0xff] }
 0x15d   :  { %3241 = vmatpush1.bf16.msra.mxu0 %v6116_v60  ;;  %v6371_v60 = vcombine.high %v468_v50, %v472_v51  ;;  %v6378_v11 = vcombine.low %v476_v62, %v480_v0  ;;  %v524_v50 = vld [vmem:[#allocation6 + $0xc08] sm:$0xff] }
 0x15e   :  { %3242 = vmatprep.subr.bf16.mxu0 %v6125_v2  ;;  %v289_v2 = vld [vmem:[#allocation6 + $0x4b0] sm:$0xff]  ;;  %v528_v51 = vld [vmem:[#allocation6 + $0xc28] sm:$0xff] }
 0x15f   :  { %3145 = vmatpush1.bf16.msra.mxu1 %v6314_v4  ;;  %v6180_v4 = vcombine.low %v277_v52, %v281_v56  ;;  %v333_v52 = vld [vmem:[#allocation6 + $0x610] sm:$0xff]  ;;  %v6418_v56 = vcombine.low %v516_v42, %v520_v19 }
 0x160   :  { %3146 = vmatprep.subr.bf16.mxu1 %v6323_v6  ;;  %v6189_v6 = vcombine.high %v285_v1, %v289_v2 }
 0x161   :  { %3243 = vmatpush1.bf16.msra.mxu0 %v6124_v5  ;;  %v6379_v5 = vcombine.high %v476_v62, %v480_v0  ;;  %v532_v62 = vld [vmem:[#allocation6 + $0xc48] sm:$0xff]  ;;  %v341_v0 = vld [vmem:[#allocation6 + $0x650] sm:$0xff] }
 0x162   :  { %3244 = vmatprep.subr.bf16.mxu0 %v6133_v10  ;;  %v297_v10 = vld [vmem:[#allocation6 + $0x4f0] sm:$0xff] }
 0x163   :  { %3147 = vmatpush1.bf16.msra.mxu1 %v6322_v12  ;;  %v6188_v12 = vcombine.low %v285_v1, %v289_v2  ;;  %v345_v1 = vld [vmem:[#allocation6 + $0x670] sm:$0xff]  ;;  %v6426_v2 = vcombine.low %v524_v50, %v528_v51 }
 0x164   :  { %3148 = vmatprep.subr.bf16.mxu1 %v6331_v14  ;;  %v6197_v14 = vcombine.high %v293_v9, %v297_v10 }
 0x165   :  { %3245 = vmatpush1.bf16.msra.mxu0 %v6132_v13  ;;  %v6387_v13 = vcombine.high %v484_v7, %v488_v8  ;;  %v544_v7 = vld [vmem:[#allocation6 + $0xca8] sm:$0xff]  ;;  %v349_v8 = vld [vmem:[#allocation6 + $0x690] sm:$0xff] }
 0x166   :  { %3246 = vmatprep.subr.bf16.mxu0 %v6141_v20  ;;  %v305_v20 = vld [vmem:[#allocation6 + $0x530] sm:$0xff] }
 0x167   :  { %3149 = vmatpush1.bf16.msra.mxu1 %v6330_v23  ;;  %v6196_v23 = vcombine.low %v293_v9, %v297_v10  ;;  %v353_v9 = vld [vmem:[#allocation6 + $0x6b0] sm:$0xff] }
 0x168   :  { %3150 = vmatprep.subr.bf16.mxu1 %v6339_v25  ;;  %v6205_v25 = vcombine.high %v301_v18, %v305_v20 }
 0x169   :  { %3247 = vmatpush1.bf16.msra.mxu0 %v6140_v24  ;;  %v6395_v24 = vcombine.high %v492_v15, %v496_v17  ;;  %v552_v15 = vld [vmem:[#allocation6 + $0xce8] sm:$0xff]  ;;  %v357_v17 = vld [vmem:[#allocation6 + $0x6d0] sm:$0xff] }
 0x16a   :  { %3248 = vmatprep.subr.bf16.mxu0 %v6149_v54  ;;  %v313_v54 = vld [vmem:[#allocation6 + $0x570] sm:$0xff] }
 0x16b   :  { %3151 = vmatpush1.bf16.msra.mxu1 %v6338_v30  ;;  %v6204_v30 = vcombine.low %v301_v18, %v305_v20  ;;  %v361_v18 = vld [vmem:[#allocation6 + $0x6f0] sm:$0xff] }
 0x16c   :  { %3152 = vmatprep.subr.bf16.mxu1 %v6347_v32  ;;  %v6213_v32 = vcombine.high %v309_v27, %v313_v54 }
 0x16d   :  { %3249 = vmatpush1.bf16.msra.mxu0 %v6148_v31  ;;  %v6403_v31 = vcombine.high %v500_v26, %v504_v53  ;;  %v560_v26 = vld [vmem:[#allocation6 + $0xd28] sm:$0xff]  ;;  %v365_v53 = vld [vmem:[#allocation6 + $0x710] sm:$0xff] }
 0x16e   :  { %3250 = vmatprep.subr.bf16.mxu0 %v6157_v37  ;;  %v321_v37 = vld [vmem:[#allocation6 + $0x5b0] sm:$0xff] }
 0x16f   :  { %3153 = vmatpush1.bf16.msra.mxu1 %v6346_v39  ;;  %v6212_v39 = vcombine.low %v309_v27, %v313_v54  ;;  %v369_v27 = vld [vmem:[#allocation6 + $0x730] sm:$0xff] }
 0x170   :  { %3154 = vmatprep.subr.bf16.mxu1 %v6355_v41  ;;  %v6221_v41 = vcombine.high %v317_v36, %v321_v37 }
 0x171   :  { %3251 = vmatpush1.bf16.msra.mxu0 %v6156_v40  ;;  %v6411_v40 = vcombine.high %v508_v34, %v512_v35  ;;  %v568_v34 = vld [vmem:[#allocation6 + $0xd68] sm:$0xff]  ;;  %v373_v35 = vld [vmem:[#allocation6 + $0x750] sm:$0xff] }
 0x172   :  { %3252 = vmatprep.subr.bf16.mxu0 %v6165_v44  ;;  %v329_v44 = vld [vmem:[#allocation6 + $0x5f0] sm:$0xff] }
 0x173   :  { %3155 = vmatpush1.bf16.msra.mxu1 %v6354_v46  ;;  %v6220_v46 = vcombine.low %v317_v36, %v321_v37  ;;  %v377_v36 = vld [vmem:[#allocation6 + $0x770] sm:$0xff] }
 0x174   :  { %3156 = vmatprep.subr.bf16.mxu1 %v6363_v49  ;;  %v6229_v49 = vcombine.high %v325_v43, %v329_v44 }
 0x175   :  { %3253 = vmatpush1.bf16.msra.mxu0 %v6164_v47  ;;  %v6419_v47 = vcombine.high %v516_v42, %v520_v19  ;;  %v576_v42 = vld [vmem:[#allocation6 + $0xda8] sm:$0xff]  ;;  %v381_v19 = vld [vmem:[#allocation6 + $0x790] sm:$0xff] }
 0x176   :  { %3263 = vmatprep.subr.bf16.mxu0 %v6173_v55  ;;  %v337_v55 = vld [vmem:[#allocation6 + $0x630] sm:$0xff] }
 0x177   :  { %3157 = vmatpush1.bf16.msra.mxu1 %v6362_v57  ;;  %v6228_v57 = vcombine.low %v325_v43, %v329_v44  ;;  %v385_v43 = vld [vmem:[#allocation6 + $0x7b0] sm:$0xff] }
 0x178   :  { %3255 = vmatmul.mubr.bf16.vlgmr.msra.gmra.mrb[4].mxu0 %v7796_v16  ;;  %3158 = vmatprep.subr.bf16.mxu1 %v6371_v60  ;;  %v6237_v60 = vcombine.high %v333_v52, %v337_v55 }
 0x179   :  { %3264 = vmatpush1.bf16.msra.mxu0 %v6172_v59  ;;  %3295 = vmatprep.mubr.bf16.mxu0 %v7790_v61  ;;  %v6427_v59 = vcombine.high %v524_v50, %v528_v51  ;;  %v580_v50 = vld [vmem:[#allocation6 + $0xdc8] sm:$0xff] }
 0x17a   :  { %3265 = vmatprep.subr.bf16.mxu0 %v6181_v63  ;;  %v536_v63 = vld [vmem:[#allocation6 + $0xc68] sm:$0xff] }
 0x17b   :  { %3159 = vmatpush1.bf16.msra.mxu1 %v6370_v3  ;;  %v6236_v3 = vcombine.low %v333_v52, %v337_v55  ;;  %v6434_v10 = vcombine.low %v532_v62, %v536_v63  ;;  %v584_v51 = vld [vmem:[#allocation6 + $0xde8] sm:$0xff]  ;;  %v389_v55 = vld [vmem:[#allocation6 + $0x7d0] sm:$0xff] }
 0x17c   :  { %3160 = vmatprep.subr.bf16.mxu1 %v6379_v5  ;;  %v6245_v5 = vcombine.high %v341_v0, %v345_v1 }
 0x17d   :  { %3266 = vmatpush1.bf16.msra.mxu0 %v6180_v4  ;;  %v6435_v4 = vcombine.high %v532_v62, %v536_v63  ;;  %v6284_v62 = vcombine.low %v381_v19, %v385_v43  ;;  %v6483_v63 = vcombine.high %v580_v50, %v584_v51 }
 0x17e   :  { %3267 = vmatprep.subr.bf16.mxu0 %v6189_v6  ;;  %v540_v6 = vld [vmem:[#allocation6 + $0xc88] sm:$0xff] }
 0x17f   :  { %3161 = vmatpush1.bf16.msra.mxu1 %v6378_v11  ;;  %v6244_v11 = vcombine.low %v341_v0, %v345_v1  ;;  %v6442_v20 = vcombine.low %v540_v6, %v544_v7  ;;  %v142_v1 = vld [vmem:[#allocation6 + $0x18] sm:$0xff] }
 0x180   :  { %3162 = vmatprep.subr.bf16.mxu1 %v6387_v13  ;;  %v6253_v13 = vcombine.high %v349_v8, %v353_v9 }
 0x181   :  { %3268 = vmatpush1.bf16.msra.mxu0 %v6188_v12  ;;  %v6443_v12 = vcombine.high %v540_v6, %v544_v7 }
 0x182   :  { %3269 = vmatprep.subr.bf16.mxu0 %v6197_v14  ;;  %v548_v14 = vld [vmem:[#allocation6 + $0xcc8] sm:$0xff] }
 0x183   :  { %3163 = vmatpush1.bf16.msra.mxu1 %v6386_v22  ;;  %v6252_v22 = vcombine.low %v349_v8, %v353_v9  ;;  %v6450_v54 = vcombine.low %v548_v14, %v552_v15  ;;  %v150_v9 = vld [vmem:[#allocation6 + $0x58] sm:$0xff] }
 0x184   :  { %3164 = vmatprep.subr.bf16.mxu1 %v6395_v24  ;;  %v6261_v24 = vcombine.high %v357_v17, %v361_v18 }
 0x185   :  { %3270 = vmatpush1.bf16.msra.mxu0 %v6196_v23  ;;  %v6451_v23 = vcombine.high %v548_v14, %v552_v15 }
 0x186   :  { %3271 = vmatprep.subr.bf16.mxu0 %v6205_v25  ;;  %v556_v25 = vld [vmem:[#allocation6 + $0xd08] sm:$0xff] }
 0x187   :  { %3165 = vmatpush1.bf16.msra.mxu1 %v6394_v29  ;;  %v6260_v29 = vcombine.low %v357_v17, %v361_v18  ;;  %v6458_v37 = vcombine.low %v556_v25, %v560_v26  ;;  %v158_v18 = vld [vmem:[#allocation6 + $0x98] sm:$0xff] }
 0x188   :  { %3166 = vmatprep.subr.bf16.mxu1 %v6403_v31  ;;  %v6269_v31 = vcombine.high %v365_v53, %v369_v27 }
 0x189   :  { %3272 = vmatpush1.bf16.msra.mxu0 %v6204_v30  ;;  %v6459_v30 = vcombine.high %v556_v25, %v560_v26 }
 0x18a   :  { %3273 = vmatprep.subr.bf16.mxu0 %v6213_v32  ;;  %v564_v32 = vld [vmem:[#allocation6 + $0xd48] sm:$0xff] }
 0x18b   :  { %3167 = vmatpush1.bf16.msra.mxu1 %v6402_v38  ;;  %v6268_v38 = vcombine.low %v365_v53, %v369_v27  ;;  %v6466_v44 = vcombine.low %v564_v32, %v568_v34 }
 0x18c   :  { %3168 = vmatprep.subr.bf16.mxu1 %v6411_v40  ;;  %v6277_v40 = vcombine.high %v373_v35, %v377_v36 }
 0x18d   :  { %3274 = vmatpush1.bf16.msra.mxu0 %v6212_v39  ;;  %v6467_v39 = vcombine.high %v564_v32, %v568_v34 }
 0x18e   :  { %3275 = vmatprep.subr.bf16.mxu0 %v6221_v41  ;;  %v572_v41 = vld [vmem:[#allocation6 + $0xd88] sm:$0xff] }
 0x18f   :  { %3169 = vmatpush1.bf16.msra.mxu1 %v6410_v45  ;;  %v6276_v45 = vcombine.low %v373_v35, %v377_v36 }
 0x190   :  { %3170 = vmatprep.subr.bf16.mxu1 %v6419_v47 }
 0x191   :  { %3276 = vmatpush1.bf16.msra.mxu0 %v6220_v46  ;;  %v6475_v46 = vcombine.high %v572_v41, %v576_v42 }
 0x192   :  { %3277 = vmatprep.subr.bf16.mxu0 %v6229_v49  ;;  %v6285_v49 = vcombine.high %v381_v19, %v385_v43  ;;  %v182_v43 = vld [vmem:[#allocation6 + $0x158] sm:$0xff] }
 0x193   :  { %3171 = vmatpush1.bf16.msra.mxu1 %v6418_v56  ;;  %v393_v56 = vld [vmem:[#allocation6 + $0x7f0] sm:$0xff] }
 0x194   :  { %3181 = vmatprep.subr.bf16.mxu1 %v6427_v59  ;;  %v6474_v59 = vcombine.low %v572_v41, %v576_v42  ;;  %v6293_v0 = vcombine.high %v389_v55, %v393_v56  ;;  %v6292_v6 = vcombine.low %v389_v55, %v393_v56  ;;  %v190_v56 = vld [vmem:[#allocation6 + $0x198] sm:$0xff] }
 0x195   :  { %3278 = vmatpush1.bf16.msra.mxu0 %v6228_v57 }
 0x196   :  { %3279 = vmatprep.subr.bf16.mxu0 %v6237_v60  ;;  %3173 = vmatmul.mubr.bf16.vlgmr.msra.gmra.mrb[4].mxu1 %v7814_v33 }
 0x197   :  { %3182 = vmatpush1.bf16.msra.mxu1 %v6426_v2  ;;  %3213 = vmatprep.mubr.bf16.mxu1 %v7632_v48  ;;  %v146_v2 = vld [vmem:[#allocation6 + $0x38] sm:$0xff] }
 0x198   :  { %3183 = vmatprep.subr.bf16.mxu1 %v6435_v4  ;;  %v401_v4 = vld [vmem:[#allocation6 + $0x830] sm:$0xff]  ;;  %v6047_v7 = vcombine.high %v142_v1, %v146_v2 }
 0x199   :  { %3280 = vmatpush1.bf16.msra.mxu0 %v6236_v3  ;;  %v397_v3 = vld [vmem:[#allocation6 + $0x810] sm:$0xff] }
 0x19a   :  { %3281 = vmatprep.subr.bf16.mxu0 %v6245_v5  ;;  %v6482_v5 = vcombine.low %v580_v50, %v584_v51  ;;  %v6301_v8 = vcombine.high %v397_v3, %v401_v4  ;;  %v6300_v14 = vcombine.low %v397_v3, %v401_v4  ;;  %v202_v3 = vld [vmem:[#allocation6 + $0x1f8] sm:$0xff]  ;;  %v453_v4 = vld [vmem:[#allocation6 + $0x9d0] sm:$0xff] }
 0x19b   :  { %3184 = vmatpush1.bf16.msra.mxu1 %v6434_v10  ;;  %v154_v10 = vld [vmem:[#allocation6 + $0x78] sm:$0xff] }
 0x19c   :  { %3185 = vmatprep.subr.bf16.mxu1 %v6443_v12  ;;  %v409_v12 = vld [vmem:[#allocation6 + $0x870] sm:$0xff]  ;;  %v6055_v15 = vcombine.high %v150_v9, %v154_v10  ;;  %v6054_v25 = vcombine.low %v150_v9, %v154_v10  ;;  %v206_v10 = vld [vmem:[#allocation6 + $0x218] sm:$0xff] }
 0x19d   :  { %3282 = vmatpush1.bf16.msra.mxu0 %v6244_v11  ;;  %v405_v11 = vld [vmem:[#allocation6 + $0x850] sm:$0xff] }
 0x19e   :  { %3283 = vmatprep.subr.bf16.mxu0 %v6253_v13  ;;  %v6046_v13 = vcombine.low %v142_v1, %v146_v2  ;;  %v6309_v17 = vcombine.high %v405_v11, %v409_v12  ;;  %v6308_v26 = vcombine.low %v405_v11, %v409_v12  ;;  %v198_v2 = vld [vmem:[#allocation6 + $0x1d8] sm:$0xff]  ;;  %v461_v12 = vld [vmem:[#allocation6 + $0xa10] sm:$0xff] }
 0x19f   :  { %3186 = vmatpush1.bf16.msra.mxu1 %v6442_v20  ;;  %v162_v20 = vld [vmem:[#allocation6 + $0xb8] sm:$0xff] }
 0x1a0   :  { %3187 = vmatprep.subr.bf16.mxu1 %v6451_v23  ;;  %v413_v23 = vld [vmem:[#allocation6 + $0x890] sm:$0xff]  ;;  %v6063_v53 = vcombine.high %v158_v18, %v162_v20  ;;  %v6062_v32 = vcombine.low %v158_v18, %v162_v20  ;;  %v210_v11 = vld [vmem:[#allocation6 + $0x238] sm:$0xff] }
 0x1a1   :  { %3284 = vmatpush1.bf16.msra.mxu0 %v6252_v22  ;;  %v7831_v22 = vld [vmem:[#allocation3 + $0x18] ss:$0 sps:$4 sm:$0xff]  }
 0x1a2   :  { %3285 = vmatprep.subr.bf16.mxu0 %v6261_v24  ;;  %v417_v24 = vld [vmem:[#allocation6 + $0x8b0] sm:$0xff]  ;;  %v214_v20 = vld [vmem:[#allocation6 + $0x258] sm:$0xff] }
 0x1a3   :  { %3188 = vmatpush1.bf16.msra.mxu1 %v6450_v54  ;;  %v6317_v27 = vcombine.high %v413_v23, %v417_v24  ;;  %v166_v54 = vld [vmem:[#allocation6 + $0xd8] sm:$0xff]  ;;  %v6316_v34 = vcombine.low %v413_v23, %v417_v24  ;;  %v469_v24 = vld [vmem:[#allocation6 + $0xa50] sm:$0xff] }
 0x1a4   :  { %3189 = vmatprep.subr.bf16.mxu1 %v6459_v30  ;;  %v421_v30 = vld [vmem:[#allocation6 + $0x8d0] sm:$0xff]  ;;  %v218_v23 = vld [vmem:[#allocation6 + $0x278] sm:$0xff] }
 0x1a5   :  { %3286 = vmatpush1.bf16.msra.mxu0 %v6260_v29  ;;  %v170_v29 = vld [vmem:[#allocation6 + $0xf8] sm:$0xff] }
 0x1a6   :  { %3287 = vmatprep.subr.bf16.mxu0 %v6269_v31  ;;  %v425_v31 = vld [vmem:[#allocation6 + $0x8f0] sm:$0xff]  ;;  %v6071_v35 = vcombine.high %v166_v54, %v170_v29  ;;  %v6070_v41 = vcombine.low %v166_v54, %v170_v29  ;;  %v222_v29 = vld [vmem:[#allocation6 + $0x298] sm:$0xff] }
 0x1a7   :  { %3190 = vmatpush1.bf16.msra.mxu1 %v6458_v37  ;;  %v6325_v36 = vcombine.high %v421_v30, %v425_v31  ;;  %v174_v37 = vld [vmem:[#allocation6 + $0x118] sm:$0xff]  ;;  %v6324_v42 = vcombine.low %v421_v30, %v425_v31  ;;  %v477_v31 = vld [vmem:[#allocation6 + $0xa90] sm:$0xff] }
 0x1a8   :  { %3191 = vmatprep.subr.bf16.mxu1 %v6467_v39  ;;  %v429_v39 = vld [vmem:[#allocation6 + $0x910] sm:$0xff]  ;;  %v226_v30 = vld [vmem:[#allocation6 + $0x2b8] sm:$0xff] }
 0x1a9   :  { %3288 = vmatpush1.bf16.msra.mxu0 %v6268_v38  ;;  %v7827_v47 = vpop.f32.mrb[0].mxu1  ;;  %v178_v38 = vld [vmem:[#allocation6 + $0x138] sm:$0xff] }
 0x1aa   :  { %3289 = vmatprep.subr.bf16.mxu0 %v6277_v40  ;;  %v7829_v52 = vpop.f32.mrb[1].mxu1  ;;  %v433_v40 = vld [vmem:[#allocation6 + $0x930] sm:$0xff]  ;;  %v6079_v19 = vcombine.high %v174_v37, %v178_v38 }
 0x1ab   :  { %v2932_v57 = vpop.f32.mrb[2].mxu1  ;;  %3192 = vmatpush1.bf16.msra.mxu1 %v6466_v44  ;;  %v186_v44 = vld [vmem:[#allocation6 + $0x178] sm:$0xff]  ;;  %v6332_v50 = vcombine.low %v429_v39, %v433_v40 }
 0x1ac   :  { %v2933_v60 = vpop.f32.mrb[3].mxu1  ;;  %3193 = vmatprep.subr.bf16.mxu1 %v6475_v46  ;;  %v441_v46 = vld [vmem:[#allocation6 + $0x970] sm:$0xff]  ;;  %v6087_v51 = vcombine.high %v182_v43, %v186_v44  ;;  %v194_v57 = vld [vmem:[#allocation6 + $0x1b8] sm:$0xff] }
 0x1ad   :  { %3290 = vmatpush1.bf16.msra.mxu0 %v6276_v45  ;;  %v437_v45 = vld [vmem:[#allocation6 + $0x950] sm:$0xff] }
 0x1ae   :  { %3291 = vmatprep.subr.bf16.mxu0 %v6285_v49  ;;  %v6078_v49 = vcombine.low %v174_v37, %v178_v38  ;;  %v6341_v55 = vcombine.high %v437_v45, %v441_v46  ;;  %v449_v60 = vld [vmem:[#allocation6 + $0x9b0] sm:$0xff]  ;;  %v230_v38 = vld [vmem:[#allocation6 + $0x2d8] sm:$0xff] }
 0x1af   :  { %3194 = vmatpush1.bf16.msra.mxu1 %v6474_v59  ;;  %v445_v59 = vld [vmem:[#allocation6 + $0x990] sm:$0xff] }
 0x1b0   :  { %3195 = vmatprep.subr.bf16.mxu1 %v6483_v63  ;;  %v6340_v63 = vcombine.low %v437_v45, %v441_v46  ;;  %v6349_v1 = vcombine.high %v445_v59, %v449_v60  ;;  %v242_v45 = vld [vmem:[#allocation6 + $0x338] sm:$0xff]  ;;  %v493_v46 = vld [vmem:[#allocation6 + $0xb10] sm:$0xff] }
 0x1b1   :  { %3292 = vmatpush1.bf16.msra.mxu0 %v6284_v62  ;;  %v6086_v62 = vcombine.low %v182_v43, %v186_v44  ;;  %v238_v44 = vld [vmem:[#allocation6 + $0x318] sm:$0xff] }
 0x1b2   :  { %3293 = vmatprep.subr.bf16.mxu0 %v6293_v0  ;;  %v6095_v0 = vcombine.high %v190_v56, %v194_v57 }
 0x1b3   :  { %3196 = vmatpush1.bf16.msra.mxu1 %v6482_v5  ;;  %v457_v5 = vld [vmem:[#allocation6 + $0x9f0] sm:$0xff] }
 0x1b4   :  { %3386 = vmatprep.subr.bf16.mxu1 %v6047_v7  ;;  %v6348_v7 = vcombine.low %v445_v59, %v449_v60  ;;  %v6357_v9 = vcombine.high %v453_v4, %v457_v5  ;;  %v250_v59 = vld [vmem:[#allocation6 + $0x378] sm:$0xff]  ;;  %v501_v60 = vld [vmem:[#allocation6 + $0xb50] sm:$0xff] }
 0x1b5   :  { %3294 = vmatpush1.bf16.msra.mxu0 %v6292_v6  ;;  %v6094_v6 = vcombine.low %v190_v56, %v194_v57  ;;  %v246_v57 = vld [vmem:[#allocation6 + $0x358] sm:$0xff] }
 0x1b6   :  { %3304 = vmatprep.subr.bf16.mxu0 %v6301_v8  ;;  %3214 = vmatmul.mubr.bf16.vlgmr.msra.gmra.mrb[4].mxu1 %v7831_v22  ;;  %v6103_v8 = vcombine.high %v198_v2, %v202_v3 }
 0x1b7   :  { %3387 = vmatpush1.bf16.msra.mxu1 %v6046_v13  ;;  %3418 = vmatprep.mubr.bf16.mxu1 %v7786_v58  ;;  %v6333_v58 = vcombine.high %v429_v39, %v433_v40  ;;  %v465_v13 = vld [vmem:[#allocation6 + $0xa30] sm:$0xff]  ;;  %v234_v39 = vld [vmem:[#allocation6 + $0x2f8] sm:$0xff] }
 0x1b8   :  { %3296 = vmatmul.mubr.bf16.vlgmr.msra.gmra.mrb[4].mxu0 %v7802_v21  ;;  %3388 = vmatprep.subr.bf16.mxu1 %v6055_v15  ;;  %v6356_v15 = vcombine.low %v453_v4, %v457_v5  ;;  %v6365_v18 = vcombine.high %v461_v12, %v465_v13  ;;  %v485_v40 = vld [vmem:[#allocation6 + $0xad0] sm:$0xff]  ;;  %v258_v4 = vld [vmem:[#allocation6 + $0x3b8] sm:$0xff] }
 0x1b9   :  { %3305 = vmatpush1.bf16.msra.mxu0 %v6300_v14  ;;  %3336 = vmatprep.mubr.bf16.mxu0 %v7806_v28  ;;  %v6102_v14 = vcombine.low %v198_v2, %v202_v3  ;;  %v254_v3 = vld [vmem:[#allocation6 + $0x398] sm:$0xff]  ;;  %v509_v5 = vld [vmem:[#allocation6 + $0xb90] sm:$0xff] }
 0x1ba   :  { %3306 = vmatprep.subr.bf16.mxu0 %v6309_v17  ;;  %v6111_v17 = vcombine.high %v206_v10, %v210_v11 }
 0x1bb   :  { %3389 = vmatpush1.bf16.msra.mxu1 %v6054_v25  ;;  %v473_v25 = vld [vmem:[#allocation6 + $0xa70] sm:$0xff] }
 0x1bc   :  { %3390 = vmatprep.subr.bf16.mxu1 %v6063_v53  ;;  %v6364_v53 = vcombine.low %v461_v12, %v465_v13  ;;  %v6373_v54 = vcombine.high %v469_v24, %v473_v25  ;;  %v266_v12 = vld [vmem:[#allocation6 + $0x3f8] sm:$0xff]  ;;  %v517_v13 = vld [vmem:[#allocation6 + $0xbd0] sm:$0xff] }
 0x1bd   :  { %3307 = vmatpush1.bf16.msra.mxu0 %v6308_v26  ;;  %v6110_v26 = vcombine.low %v206_v10, %v210_v11  ;;  %v262_v11 = vld [vmem:[#allocation6 + $0x3d8] sm:$0xff] }
 0x1be   :  { %3308 = vmatprep.subr.bf16.mxu0 %v6317_v27  ;;  %v6119_v27 = vcombine.high %v214_v20, %v218_v23 }
 0x1bf   :  { %3391 = vmatpush1.bf16.msra.mxu1 %v6062_v32  ;;  %v481_v32 = vld [vmem:[#allocation6 + $0xab0] sm:$0xff] }
 0x1c0   :  { %3392 = vmatprep.subr.bf16.mxu1 %v6071_v35  ;;  %v6372_v35 = vcombine.low %v469_v24, %v473_v25  ;;  %v6381_v37 = vcombine.high %v477_v31, %v481_v32  ;;  %v274_v24 = vld [vmem:[#allocation6 + $0x438] sm:$0xff]  ;;  %v525_v25 = vld [vmem:[#allocation6 + $0xc10] sm:$0xff] }
 0x1c1   :  { %3309 = vmatpush1.bf16.msra.mxu0 %v6316_v34  ;;  %v6118_v34 = vcombine.low %v214_v20, %v218_v23  ;;  %v270_v23 = vld [vmem:[#allocation6 + $0x418] sm:$0xff] }
 0x1c2   :  { %3310 = vmatprep.subr.bf16.mxu0 %v6325_v36  ;;  %v6127_v36 = vcombine.high %v222_v29, %v226_v30 }
 0x1c3   :  { %3393 = vmatpush1.bf16.msra.mxu1 %v6070_v41  ;;  %v489_v41 = vld [vmem:[#allocation6 + $0xaf0] sm:$0xff] }
 0x1c4   :  { %3394 = vmatprep.subr.bf16.mxu1 %v6079_v19  ;;  %v6380_v19 = vcombine.low %v477_v31, %v481_v32  ;;  %v6389_v43 = vcombine.high %v485_v40, %v489_v41  ;;  %v282_v31 = vld [vmem:[#allocation6 + $0x478] sm:$0xff]  ;;  %v533_v32 = vld [vmem:[#allocation6 + $0xc50] sm:$0xff] }
 0x1c5   :  { %3311 = vmatpush1.bf16.msra.mxu0 %v6324_v42  ;;  %v6126_v42 = vcombine.low %v222_v29, %v226_v30  ;;  %v278_v30 = vld [vmem:[#allocation6 + $0x458] sm:$0xff] }
 0x1c6   :  { %3312 = vmatprep.subr.bf16.mxu0 %v6333_v58  ;;  %v6135_v58 = vcombine.high %v230_v38, %v234_v39 }
 0x1c7   :  { %3395 = vmatpush1.bf16.msra.mxu1 %v6078_v49  ;;  %v497_v49 = vld [vmem:[#allocation6 + $0xb30] sm:$0xff] }
 0x1c8   :  { %3396 = vmatprep.subr.bf16.mxu1 %v6087_v51  ;;  %v6388_v51 = vcombine.low %v485_v40, %v489_v41  ;;  %v6397_v56 = vcombine.high %v493_v46, %v497_v49  ;;  %v290_v40 = vld [vmem:[#allocation6 + $0x4b8] sm:$0xff]  ;;  %v541_v41 = vld [vmem:[#allocation6 + $0xc90] sm:$0xff] }
 0x1c9   :  { %3313 = vmatpush1.bf16.msra.mxu0 %v6332_v50  ;;  %v6134_v50 = vcombine.low %v230_v38, %v234_v39  ;;  %v286_v39 = vld [vmem:[#allocation6 + $0x498] sm:$0xff] }
 0x1ca   :  { %3314 = vmatprep.subr.bf16.mxu0 %v6341_v55  ;;  %v6143_v55 = vcombine.high %v238_v44, %v242_v45 }
 0x1cb   :  { %3397 = vmatpush1.bf16.msra.mxu1 %v6086_v62  ;;  %v505_v62 = vld [vmem:[#allocation6 + $0xb70] sm:$0xff] }
 0x1cc   :  { %3398 = vmatprep.subr.bf16.mxu1 %v6095_v0  ;;  %v6396_v0 = vcombine.low %v493_v46, %v497_v49  ;;  %v6405_v2 = vcombine.high %v501_v60, %v505_v62  ;;  %v294_v46 = vld [vmem:[#allocation6 + $0x4d8] sm:$0xff] }
 0x1cd   :  { %3315 = vmatpush1.bf16.msra.mxu0 %v6340_v63  ;;  %v6142_v63 = vcombine.low %v238_v44, %v242_v45  ;;  %v589_v44 = vlaneseq  ;;  %v298_v49 = vld [vmem:[#allocation6 + $0x4f8] sm:$0xff] }
 0x1ce   :  { %3316 = vmatprep.subr.bf16.mxu0 %v6349_v1  ;;  %v6151_v1 = vcombine.high %v246_v57, %v250_v59 }
 0x1cf   :  { %3399 = vmatpush1.bf16.msra.mxu1 %v6094_v6  ;;  %v513_v6 = vld [vmem:[#allocation6 + $0xbb0] sm:$0xff] }
 0x1d0   :  { %3400 = vmatprep.subr.bf16.mxu1 %v6103_v8  ;;  %v6404_v8 = vcombine.low %v501_v60, %v505_v62  ;;  %v6413_v10 = vcombine.high %v509_v5, %v513_v6  ;;  %v302_v60 = vld [vmem:[#allocation6 + $0x518] sm:$0xff] }
 0x1d1   :  { %3317 = vmatpush1.bf16.msra.mxu0 %v6348_v7  ;;  %v6150_v7 = vcombine.low %v246_v57, %v250_v59  ;;  %v7841_v57 = vshrl.u32 %v589_v44, 7  ;;  %v306_v62 = vld [vmem:[#allocation6 + $0x538] sm:$0xff] }
 0x1d2   :  { %3318 = vmatprep.subr.bf16.mxu0 %v6357_v9  ;;  %v6159_v9 = vcombine.high %v254_v3, %v258_v4 }
 0x1d3   :  { %3401 = vmatpush1.bf16.msra.mxu1 %v6102_v14  ;;  %v521_v14 = vld [vmem:[#allocation6 + $0xbf0] sm:$0xff] }
 0x1d4   :  { %3402 = vmatprep.subr.bf16.mxu1 %v6111_v17  ;;  %v6412_v17 = vcombine.low %v509_v5, %v513_v6  ;;  %v6421_v20 = vcombine.high %v517_v13, %v521_v14  ;;  %v310_v5 = vld [vmem:[#allocation6 + $0x558] sm:$0xff] }
 0x1d5   :  { %3319 = vmatpush1.bf16.msra.mxu0 %v6356_v15  ;;  %v6158_v15 = vcombine.low %v254_v3, %v258_v4  ;;  %v7844_v3 = vsub.s32 0, %v7841_v57  ;;  %v314_v6 = vld [vmem:[#allocation6 + $0x578] sm:$0xff] }
 0x1d6   :  { %3320 = vmatprep.subr.bf16.mxu0 %v6365_v18  ;;  %v6167_v18 = vcombine.high %v262_v11, %v266_v12 }
 0x1d7   :  { %3403 = vmatpush1.bf16.msra.mxu1 %v6110_v26  ;;  %v529_v26 = vld [vmem:[#allocation6 + $0xc30] sm:$0xff] }
 0x1d8   :  { %3404 = vmatprep.subr.bf16.mxu1 %v6119_v27  ;;  %v6420_v27 = vcombine.low %v517_v13, %v521_v14  ;;  %v6429_v29 = vcombine.high %v525_v25, %v529_v26  ;;  %v6215_v13 = vcombine.high %v310_v5, %v314_v6 }
 0x1d9   :  { %3321 = vmatpush1.bf16.msra.mxu0 %v6364_v53  ;;  %v6166_v53 = vcombine.low %v262_v11, %v266_v12  ;;  %v6206_v11 = vcombine.low %v302_v60, %v306_v62 }
 0x1da   :  { %3322 = vmatprep.subr.bf16.mxu0 %v6373_v54  ;;  %v6175_v54 = vcombine.high %v270_v23, %v274_v24 }
 0x1db   :  { %3405 = vmatpush1.bf16.msra.mxu1 %v6118_v34  ;;  %v537_v34 = vld [vmem:[#allocation6 + $0xc70] sm:$0xff] }
 0x1dc   :  { %3406 = vmatprep.subr.bf16.mxu1 %v6127_v36  ;;  %v6428_v36 = vcombine.low %v525_v25, %v529_v26  ;;  %v6437_v38 = vcombine.high %v533_v32, %v537_v34  ;;  %v6214_v25 = vcombine.low %v310_v5, %v314_v6  ;;  %v358_v5 = vld [vmem:[#allocation6 + $0x6d8] sm:$0xff] }
 0x1dd   :  { %3323 = vmatpush1.bf16.msra.mxu0 %v6372_v35  ;;  %v6174_v35 = vcombine.low %v270_v23, %v274_v24  ;;  %v573_v23 = vld [vmem:[#allocation6 + $0xd90] sm:$0xff]  ;;  %v362_v6 = vld [vmem:[#allocation6 + $0x6f8] sm:$0xff] }
 0x1de   :  { %3324 = vmatprep.subr.bf16.mxu0 %v6381_v37  ;;  %v6183_v37 = vcombine.high %v278_v30, %v282_v31  ;;  %v577_v24 = vld [vmem:[#allocation6 + $0xdb0] sm:$0xff] }
 0x1df   :  { %3407 = vmatpush1.bf16.msra.mxu1 %v6126_v42  ;;  %v545_v42 = vld [vmem:[#allocation6 + $0xcb0] sm:$0xff] }
 0x1e0   :  { %3408 = vmatprep.subr.bf16.mxu1 %v6135_v58  ;;  %v6436_v58 = vcombine.low %v533_v32, %v537_v34  ;;  %v6445_v45 = vcombine.high %v541_v41, %v545_v42  ;;  %v581_v34 = vld [vmem:[#allocation6 + $0xdd0] sm:$0xff] }
 0x1e1   :  { %3325 = vmatpush1.bf16.msra.mxu0 %v6380_v19  ;;  %v6182_v19 = vcombine.low %v278_v30, %v282_v31  ;;  %v330_v30 = vld [vmem:[#allocation6 + $0x5f8] sm:$0xff] }
 0x1e2   :  { %3326 = vmatprep.subr.bf16.mxu0 %v6389_v43  ;;  %v6191_v43 = vcombine.high %v286_v39, %v290_v40 }
 0x1e3   :  { %3409 = vmatpush1.bf16.msra.mxu1 %v6134_v50  ;;  %v549_v50 = vld [vmem:[#allocation6 + $0xcd0] sm:$0xff] }
 0x1e4   :  { %3410 = vmatprep.subr.bf16.mxu1 %v6143_v55  ;;  %v6444_v55 = vcombine.low %v541_v41, %v545_v42  ;;  %v6476_v41 = vcombine.low %v573_v23, %v577_v24 }
 0x1e5   :  { %3327 = vmatpush1.bf16.msra.mxu0 %v6388_v51  ;;  %v553_v51 = vld [vmem:[#allocation6 + $0xcf0] sm:$0xff] }
 0x1e6   :  { %3328 = vmatprep.subr.bf16.mxu0 %v6397_v56  ;;  %v6199_v56 = vcombine.high %v294_v46, %v298_v49  ;;  %v6453_v59 = vcombine.high %v549_v50, %v553_v51 }
 0x1e7   :  { %3411 = vmatpush1.bf16.msra.mxu1 %v6142_v63  ;;  %v557_v63 = vld [vmem:[#allocation6 + $0xd10] sm:$0xff] }
 0x1e8   :  { %3412 = vmatprep.subr.bf16.mxu1 %v6151_v1  ;;  %v6198_v1 = vcombine.low %v294_v46, %v298_v49  ;;  %v6923_v49 = vld [vmem:[#allocation9 + $0x4] ss:$16 sps:$4 sm:$0xff]  }
 0x1e9   :  { %3329 = vmatpush1.bf16.msra.mxu0 %v6396_v0  ;;  %v561_v0 = vld [vmem:[#allocation6 + $0xd30] sm:$0xff] }
 0x1ea   :  { %3330 = vmatprep.subr.bf16.mxu0 %v6405_v2  ;;  %v6452_v2 = vcombine.low %v549_v50, %v553_v51  ;;  %v6461_v4 = vcombine.high %v557_v63, %v561_v0  ;;  %v6460_v12 = vcombine.low %v557_v63, %v561_v0  ;;  %v342_v51 = vld [vmem:[#allocation6 + $0x658] sm:$0xff] }
 0x1eb   :  { %3413 = vmatpush1.bf16.msra.mxu1 %v6150_v7  ;;  %v7846_v7 = vld [vmem:[#allocation8] sm:$0xff]  ;;  %v354_v63 = vld [vmem:[#allocation6 + $0x6b8] sm:$0xff] }
 0x1ec   :  { %3414 = vmatprep.subr.bf16.mxu1 %v6159_v9  ;;  %v565_v9 = vld [vmem:[#allocation6 + $0xd50] sm:$0xff]  ;;  %v592_v14 = vrot.slane %v7846_v7, %v7844_v3 }
 0x1ed   :  { %3331 = vmatpush1.bf16.msra.mxu0 %v6404_v8  ;;  %v7849_v8 = vsub.s32 1, %v7841_v57 }
 0x1ee   :  { %3332 = vmatprep.subr.bf16.mxu0 %v6413_v10  ;;  %v569_v10 = vld [vmem:[#allocation6 + $0xd70] sm:$0xff] }
 0x1ef   :  { %3415 = vmatpush1.bf16.msra.mxu1 %v6158_v15  ;;  %v6469_v15 = vcombine.high %v565_v9, %v569_v10  ;;  %v6468_v26 = vcombine.low %v565_v9, %v569_v10  ;;  %v6927_v10 = vld [vmem:[#allocation9 + $0x40] ss:$16 sps:$4 sm:$0xff]  }
 0x1f0   :  { %3416 = vmatprep.subr.bf16.mxu1 %v6167_v18  ;;  %v322_v18 = vld [vmem:[#allocation6 + $0x5b8] sm:$0xff] }
 0x1f1   :  { %3333 = vmatpush1.bf16.msra.mxu0 %v6412_v17  ;;  %v318_v17 = vld [vmem:[#allocation6 + $0x598] sm:$0xff] }
 0x1f2   :  { %3334 = vmatprep.subr.bf16.mxu0 %v6421_v20  ;;  %v596_v20 = vrot.slane %v7846_v7, %v7849_v8 }
 0x1f3   :  { %3417 = vmatpush1.bf16.msra.mxu1 %v6166_v53  ;;  %v6223_v53 = vcombine.high %v318_v17, %v322_v18 }
 0x1f4   :  { %3427 = vmatprep.subr.bf16.mxu1 %v6175_v54  ;;  %v6477_v54 = vcombine.high %v573_v23, %v577_v24  ;;  %v2931_v31 = vadd.f32 %v7829_v52, %v596_v20  ;;  %v374_v20 = vld [vmem:[#allocation6 + $0x758] sm:$0xff] }
 0x1f5   :  { %3335 = vmatpush1.bf16.msra.mxu0 %v6420_v27  ;;  %v2929_v27 = vadd.f32 %v7827_v47, %v592_v14  ;;  %v6262_v14 = vcombine.low %v358_v5, %v362_v6  ;;  %v378_v23 = vld [vmem:[#allocation6 + $0x778] sm:$0xff] }
 0x1f6   :  { %3345 = vmatprep.subr.bf16.mxu0 %v6429_v29  ;;  %3419 = vmatmul.mubr.bf16.vlgmr.msra.gmra.mrb[8].mxu1 %v7796_v16  ;;  %v6190_v16 = vcombine.low %v286_v39, %v290_v40  ;;  %v326_v29 = vld [vmem:[#allocation6 + $0x5d8] sm:$0xff] }
 0x1f7   :  { %3428 = vmatpush1.bf16.msra.mxu1 %v6174_v35  ;;  %3459 = vmatprep.mubr.bf16.mxu1 %v7790_v61  ;;  %v6207_v61 = vcombine.high %v302_v60, %v306_v62  ;;  %v585_v35 = vld [vmem:[#allocation6 + $0xdf0] sm:$0xff]  ;;  %v6231_v47 = vcombine.high %v326_v29, %v330_v30  ;;  %v6230_v44 = vcombine.low %v326_v29, %v330_v30  ;;  %v6926_v60 = vld [vmem:[#allocation9 + $0x24] ss:$16 sps:$4 sm:$0xff]   ;;  %v6936_v30 = vld [vmem:[#allocation9 + $0xa0] ss:$16 sps:$4 sm:$0xff]  }
 0x1f8   :  { %3337 = vmatmul.mubr.bf16.vlgmr.msra.gmra.mrb[4].mxu0 %v7814_v33  ;;  %3429 = vmatprep.subr.bf16.mxu1 %v6183_v37  ;;  %v350_v62 = vld [vmem:[#allocation6 + $0x698] sm:$0xff]  ;;  %v6278_v29 = vcombine.low %v374_v20, %v378_v23 }
 0x1f9   :  { %3346 = vmatpush1.bf16.msra.mxu0 %v6428_v36  ;;  %3377 = vmatprep.mubr.bf16.mxu0 %v7632_v48  ;;  %v6254_v9 = vcombine.low %v350_v62, %v354_v63 }
 0x1fa   :  { %3347 = vmatprep.subr.bf16.mxu0 %v6437_v38  ;;  %v6222_v38 = vcombine.low %v318_v17, %v322_v18  ;;  %v6935_v18 = vld [vmem:[#allocation9 + $0x84] ss:$16 sps:$4 sm:$0xff]  }
 0x1fb   :  { %3430 = vmatpush1.bf16.msra.mxu1 %v6182_v19  ;;  %v6485_v19 = vcombine.high %v581_v34, %v585_v35 }
 0x1fc   :  { %3431 = vmatprep.subr.bf16.mxu1 %v6191_v43  ;;  %v338_v43 = vld [vmem:[#allocation6 + $0x638] sm:$0xff] }
 0x1fd   :  { %3348 = vmatpush1.bf16.msra.mxu0 %v6436_v58  ;;  %v334_v58 = vld [vmem:[#allocation6 + $0x618] sm:$0xff] }
 0x1fe   :  { %3349 = vmatprep.subr.bf16.mxu0 %v6445_v45  ;;  %v6484_v45 = vcombine.low %v581_v34, %v585_v35  ;;  %v6239_v46 = vcombine.high %v334_v58, %v338_v43  ;;  %v390_v34 = vld [vmem:[#allocation6 + $0x7d8] sm:$0xff] }
 0x1ff   :  { %3432 = vmatpush1.bf16.msra.mxu1 %v6190_v16  ;;  %v346_v16 = vld [vmem:[#allocation6 + $0x678] sm:$0xff] }
 0x200   :  { %3433 = vmatprep.subr.bf16.mxu1 %v6199_v56  ;;  %v6921_v56 = vld [vmem:[#allocation9] ss:$16 sps:$4 sm:$0xff]  }
 0x201   :  { %3350 = vmatpush1.bf16.msra.mxu0 %v6444_v55  ;;  %v6238_v55 = vcombine.low %v334_v58, %v338_v43  ;;  %v394_v35 = vld [vmem:[#allocation6 + $0x7f8] sm:$0xff] }
 0x202   :  { %3351 = vmatprep.subr.bf16.mxu0 %v6453_v59  ;;  %v6247_v59 = vcombine.high %v342_v51, %v346_v16  ;;  %v6947_v43 = vld [vmem:[#allocation9 + $0x104] ss:$16 sps:$4 sm:$0xff]  }
 0x203   :  { %3434 = vmatpush1.bf16.msra.mxu1 %v6198_v1  ;;  %v6246_v1 = vcombine.low %v342_v51, %v346_v16  ;;  %v414_v51 = vld [vmem:[#allocation6 + $0x898] sm:$0xff] }
 0x204   :  { %3435 = vmatprep.subr.bf16.mxu1 %v6207_v61  ;;  %v6255_v61 = vcombine.high %v350_v62, %v354_v63  ;;  %v418_v16 = vld [vmem:[#allocation6 + $0x8b8] sm:$0xff] }
 0x205   :  { %3352 = vmatpush1.bf16.msra.mxu0 %v6452_v2  ;;  %v6924_v2 = vld [vmem:[#allocation9 + $0x20] ss:$16 sps:$4 sm:$0xff]  }
 0x206   :  { %3353 = vmatprep.subr.bf16.mxu0 %v6461_v4  ;;  %v6929_v4 = vld [vmem:[#allocation9 + $0x44] ss:$16 sps:$4 sm:$0xff]  }
 0x207   :  { %3436 = vmatpush1.bf16.msra.mxu1 %v6206_v11  ;;  %v6263_v11 = vcombine.high %v358_v5, %v362_v6  ;;  %v422_v62 = vld [vmem:[#allocation6 + $0x8d8] sm:$0xff] }
 0x208   :  { %3437 = vmatprep.subr.bf16.mxu1 %v6215_v13  ;;  %v370_v13 = vld [vmem:[#allocation6 + $0x738] sm:$0xff] }
 0x209   :  { %3354 = vmatpush1.bf16.msra.mxu0 %v6460_v12  ;;  %v366_v12 = vld [vmem:[#allocation6 + $0x718] sm:$0xff] }
 0x20a   :  { %3355 = vmatprep.subr.bf16.mxu0 %v6469_v15  ;;  %v6930_v15 = vld [vmem:[#allocation9 + $0x60] ss:$16 sps:$4 sm:$0xff]   ;;  %v6271_v17 = vcombine.high %v366_v12, %v370_v13  ;;  %v6270_v24 = vcombine.low %v366_v12, %v370_v13 }
 0x20b   :  { %v3051_v32 = vpop.f32.mrb[0].mxu0  ;;  %3438 = vmatpush1.bf16.msra.mxu1 %v6214_v25  ;;  %v6933_v25 = vld [vmem:[#allocation9 + $0x80] ss:$16 sps:$4 sm:$0xff]  }
 0x20c   :  { %v7857_v36 = vadd.f32 %v3051_v32, %v2929_v27  ;;  %v3053_v37 = vpop.f32.mrb[1].mxu0  ;;  %3439 = vmatprep.subr.bf16.mxu1 %v6223_v53  ;;  %v6938_v53 = vld [vmem:[#allocation9 + $0xa4] ss:$16 sps:$4 sm:$0xff]   ;;  %v6954_v6 = vld [vmem:[#allocation9 + $0x160] ss:$16 sps:$4 sm:$0xff]  }
 0x20d   :  { %v6812_v39 = vadd.f32 %v3053_v37, %v2931_v31  ;;  %v3055_v40 = vpop.f32.mrb[2].mxu0  ;;  %3356 = vmatpush1.bf16.msra.mxu0 %v6468_v26  ;;  %v6279_v26 = vcombine.high %v374_v20, %v378_v23  ;;  %v382_v27 = vld [vmem:[#allocation6 + $0x798] sm:$0xff] }
 0x20e   :  { %v3056_v42 = vpop.f32.mrb[3].mxu0  ;;  %3357 = vmatprep.subr.bf16.mxu0 %v6477_v54  ;;  %v386_v54 = vld [vmem:[#allocation6 + $0x7b8] sm:$0xff] }
 0x20f   :  { %v3551_v52 = vpack.c.bf16 %v6812_v39, %v6812_v39  ;;  %3440 = vmatpush1.bf16.msra.mxu1 %v6222_v38  ;;  %v6287_v31 = vcombine.high %v382_v27, %v386_v54  ;;  %v6941_v32 = vld [vmem:[#allocation9 + $0xc4] ss:$16 sps:$4 sm:$0xff]   ;;  %v6286_v37 = vcombine.low %v382_v27, %v386_v54  ;;  %v6939_v38 = vld [vmem:[#allocation9 + $0xc0] ss:$16 sps:$4 sm:$0xff]   ;;  %v6295_v39 = vcombine.high %v390_v34, %v394_v35 }
 0x210   :  { %3441 = vmatprep.subr.bf16.mxu1 %v6231_v47  ;;  %v6944_v40 = vld [vmem:[#allocation9 + $0xe4] ss:$16 sps:$4 sm:$0xff]   ;;  %v6294_v42 = vcombine.low %v390_v34, %v394_v35  ;;  %v6957_v13 = vld [vmem:[#allocation9 + $0x180] ss:$16 sps:$4 sm:$0xff]  }
 0x211   :  { %3358 = vmatpush1.bf16.msra.mxu0 %v6476_v41  ;;  %v3559_v50 = vmul.bf16 1045249613, %v3551_v52  ;;  %v398_v41 = vld [vmem:[#allocation6 + $0x818] sm:$0xff] }
 0x212   :  { %3359 = vmatprep.subr.bf16.mxu0 %v6485_v19  ;;  %v402_v47 = vld [vmem:[#allocation6 + $0x838] sm:$0xff] }
 0x213   :  { %3442 = vmatpush1.bf16.msra.mxu1 %v6230_v44  ;;  %v7859_v0 = vmax.bf16 %v3559_v50, %v3551_v52  ;;  %v6942_v19 = vld [vmem:[#allocation9 + $0xe0] ss:$16 sps:$4 sm:$0xff]   ;;  %v6303_v58 = vcombine.high %v398_v41, %v402_v47  ;;  %v6950_v50 = vld [vmem:[#allocation9 + $0x124] ss:$16 sps:$4 sm:$0xff]  }
 0x214   :  { %3443 = vmatprep.subr.bf16.mxu1 %v6239_v46  ;;  %v406_v52 = vld [vmem:[#allocation6 + $0x858] sm:$0xff] }
 0x215   :  { %3360 = vmatpush1.bf16.msra.mxu0 %v6484_v45  ;;  %v410_v44 = vld [vmem:[#allocation6 + $0x878] sm:$0xff]  ;;  %v6302_v45 = vcombine.low %v398_v41, %v402_v47 }
 0x216   :  { %5132 = vmatprep.subr.bf16.mxu0 %v6923_v49  ;;  %v6945_v46 = vld [vmem:[#allocation9 + $0x100] ss:$16 sps:$4 sm:$0xff]   ;;  %v6311_v49 = vcombine.high %v406_v52, %v410_v44 }
 0x217   :  { %3444 = vmatpush1.bf16.msra.mxu1 %v6238_v55  ;;  %v6310_v55 = vcombine.low %v406_v52, %v410_v44  ;;  %v426_v63 = vld [vmem:[#allocation6 + $0x8f8] sm:$0xff] }
 0x218   :  { %3378 = vmatmul.mubr.bf16.vlgmr.msra.gmra.mrb[4].mxu0 %v7831_v22  ;;  %3445 = vmatprep.subr.bf16.mxu1 %v6247_v59  ;;  %v6932_v22 = vld [vmem:[#allocation9 + $0x64] ss:$16 sps:$4 sm:$0xff]   ;;  %v6319_v59 = vcombine.high %v414_v51, %v418_v16  ;;  %v6960_v23 = vld [vmem:[#allocation9 + $0x1a0] ss:$16 sps:$4 sm:$0xff]  }
 0x219   :  { %5133 = vmatpush1.bf16.msra.mxu0 %v6921_v56  ;;  %5164 = vmatprep.mubr.bf16.mxu0 %v7859_v0  ;;  %v6948_v56 = vld [vmem:[#allocation9 + $0x120] ss:$16 sps:$4 sm:$0xff]  }
 0x21a   :  { %5134 = vmatprep.subr.bf16.mxu0 %v6926_v60  ;;  %v6953_v60 = vld [vmem:[#allocation9 + $0x144] ss:$16 sps:$4 sm:$0xff]   ;;  %v6963_v54 = vld [vmem:[#allocation9 + $0x1c0] ss:$16 sps:$4 sm:$0xff]  }
 0x21b   :  { %3446 = vmatpush1.bf16.msra.mxu1 %v6246_v1  ;;  %v6318_v1 = vcombine.low %v414_v51, %v418_v16  ;;  %v434_v5 = vld [vmem:[#allocation6 + $0x938] sm:$0xff] }
 0x21c   :  { %3447 = vmatprep.subr.bf16.mxu1 %v6255_v61  ;;  %v6327_v61 = vcombine.high %v422_v62, %v426_v63  ;;  %v466_v34 = vld [vmem:[#allocation6 + $0xa38] sm:$0xff] }
 0x21d   :  { %5135 = vmatpush1.bf16.msra.mxu0 %v6924_v2  ;;  %v6951_v2 = vld [vmem:[#allocation9 + $0x140] ss:$16 sps:$4 sm:$0xff]  }
 0x21e   :  { %5136 = vmatprep.subr.bf16.mxu0 %v6929_v4  ;;  %v430_v4 = vld [vmem:[#allocation6 + $0x918] sm:$0xff] }
 0x21f   :  { %3448 = vmatpush1.bf16.msra.mxu1 %v6254_v9  ;;  %v6335_v9 = vcombine.high %v430_v4, %v434_v5  ;;  %v6334_v12 = vcombine.low %v430_v4, %v434_v5  ;;  %v470_v41 = vld [vmem:[#allocation6 + $0xa58] sm:$0xff] }
 0x220   :  { %3449 = vmatprep.subr.bf16.mxu1 %v6263_v11  ;;  %v438_v11 = vld [vmem:[#allocation6 + $0x958] sm:$0xff] }
 0x221   :  { %5137 = vmatpush1.bf16.msra.mxu0 %v6927_v10  ;;  %v6959_v10 = vld [vmem:[#allocation9 + $0x184] ss:$16 sps:$4 sm:$0xff]  }
 0x222   :  { %5138 = vmatprep.subr.bf16.mxu0 %v6932_v22  ;;  %v442_v22 = vld [vmem:[#allocation6 + $0x978] sm:$0xff] }
 0x223   :  { %3450 = vmatpush1.bf16.msra.mxu1 %v6262_v14  ;;  %v6343_v14 = vcombine.high %v438_v11, %v442_v22  ;;  %v6342_v20 = vcombine.low %v438_v11, %v442_v22  ;;  %v474_v47 = vld [vmem:[#allocation6 + $0xa78] sm:$0xff] }
 0x224   :  { %3451 = vmatprep.subr.bf16.mxu1 %v6271_v17  ;;  %v446_v17 = vld [vmem:[#allocation6 + $0x998] sm:$0xff] }
 0x225   :  { %5139 = vmatpush1.bf16.msra.mxu0 %v6930_v15  ;;  %v6962_v15 = vld [vmem:[#allocation9 + $0x1a4] ss:$16 sps:$4 sm:$0xff]  }
 0x226   :  { %5140 = vmatprep.subr.bf16.mxu0 %v6935_v18  ;;  %v450_v18 = vld [vmem:[#allocation6 + $0x9b8] sm:$0xff] }
 0x227   :  { %3452 = vmatpush1.bf16.msra.mxu1 %v6270_v24  ;;  %v6351_v24 = vcombine.high %v446_v17, %v450_v18  ;;  %v6350_v27 = vcombine.low %v446_v17, %v450_v18  ;;  %v478_v52 = vld [vmem:[#allocation6 + $0xa98] sm:$0xff] }
 0x228   :  { %3453 = vmatprep.subr.bf16.mxu1 %v6279_v26  ;;  %v454_v26 = vld [vmem:[#allocation6 + $0x9d8] sm:$0xff] }
 0x229   :  { %5141 = vmatpush1.bf16.msra.mxu0 %v6933_v25  ;;  %v6965_v25 = vld [vmem:[#allocation9 + $0x1c4] ss:$16 sps:$4 sm:$0xff]  }
 0x22a   :  { %5142 = vmatprep.subr.bf16.mxu0 %v6938_v53  ;;  %v458_v53 = vld [vmem:[#allocation6 + $0x9f8] sm:$0xff] }
 0x22b   :  { %3454 = vmatpush1.bf16.msra.mxu1 %v6278_v29  ;;  %v6359_v29 = vcombine.high %v454_v26, %v458_v53  ;;  %v6358_v35 = vcombine.low %v454_v26, %v458_v53  ;;  %v482_v44 = vld [vmem:[#allocation6 + $0xab8] sm:$0xff] }
 0x22c   :  { %3455 = vmatprep.subr.bf16.mxu1 %v6287_v31  ;;  %v6968_v31 = vld [vmem:[#allocation9 + $0x1e4] ss:$16 sps:$4 sm:$0xff]  }
 0x22d   :  { %5143 = vmatpush1.bf16.msra.mxu0 %v6936_v30  ;;  %v3550_v30 = vpack.c.bf16 %v7857_v36, %v7857_v36  ;;  %v6969_v36 = vld [vmem:[#allocation9 + $0x200] ss:$16 sps:$4 sm:$0xff]  }
 0x22e   :  { %5144 = vmatprep.subr.bf16.mxu0 %v6941_v32  ;;  %v462_v32 = vld [vmem:[#allocation6 + $0xa18] sm:$0xff] }
 0x22f   :  { %3456 = vmatpush1.bf16.msra.mxu1 %v6286_v37  ;;  %v6966_v37 = vld [vmem:[#allocation9 + $0x1e0] ss:$16 sps:$4 sm:$0xff]  }
 0x230   :  { %3457 = vmatprep.subr.bf16.mxu1 %v6295_v39  ;;  %v3558_v39 = vmul.bf16 1045249613, %v3550_v30  ;;  %v486_v51 = vld [vmem:[#allocation6 + $0xad8] sm:$0xff] }
 0x231   :  { %5145 = vmatpush1.bf16.msra.mxu0 %v6939_v38  ;;  %v6367_v38 = vcombine.high %v462_v32, %v466_v34  ;;  %v490_v16 = vld [vmem:[#allocation6 + $0xaf8] sm:$0xff] }
 0x232   :  { %5146 = vmatprep.subr.bf16.mxu0 %v6944_v40  ;;  %v6971_v40 = vld [vmem:[#allocation9 + $0x204] ss:$16 sps:$4 sm:$0xff]  }
 0x233   :  { %3458 = vmatpush1.bf16.msra.mxu1 %v6294_v42  ;;  %v6366_v42 = vcombine.low %v462_v32, %v466_v34  ;;  %v502_v4 = vld [vmem:[#allocation6 + $0xb58] sm:$0xff] }
 0x234   :  { %3468 = vmatprep.subr.bf16.mxu1 %v6303_v58  ;;  %v7867_v58 = vmax.bf16 %v3558_v39, %v3550_v30  ;;  %v506_v5 = vld [vmem:[#allocation6 + $0xb78] sm:$0xff] }
 0x235   :  { %5147 = vmatpush1.bf16.msra.mxu0 %v6942_v19  ;;  %v6375_v19 = vcombine.high %v470_v41, %v474_v47  ;;  %v510_v11 = vld [vmem:[#allocation6 + $0xb98] sm:$0xff] }
 0x236   :  { %5148 = vmatprep.subr.bf16.mxu0 %v6947_v43  ;;  %3460 = vmatmul.mubr.bf16.vlgmr.msra.gmra.mrb[8].mxu1 %v7802_v21  ;;  %v6956_v21 = vld [vmem:[#allocation9 + $0x164] ss:$16 sps:$4 sm:$0xff]  }
 0x237   :  { %3469 = vmatpush1.bf16.msra.mxu1 %v6302_v45  ;;  %3500 = vmatprep.mubr.bf16.mxu1 %v7806_v28  ;;  %v6326_v28 = vcombine.low %v422_v62, %v426_v63  ;;  %v6974_v43 = vld [vmem:[#allocation9 + $0x224] ss:$16 sps:$4 sm:$0xff]   ;;  %v6374_v45 = vcombine.low %v470_v41, %v474_v47  ;;  %v6996_v47 = vld [vmem:[#allocation9 + $0x320] ss:$16 sps:$4 sm:$0xff]  }
 0x238   :  { %3470 = vmatprep.subr.bf16.mxu1 %v6311_v49  ;;  %v6383_v49 = vcombine.high %v478_v52, %v482_v44  ;;  %v494_v62 = vld [vmem:[#allocation6 + $0xb18] sm:$0xff] }
 0x239   :  { %5149 = vmatpush1.bf16.msra.mxu0 %v6945_v46  ;;  %v6972_v46 = vld [vmem:[#allocation9 + $0x220] ss:$16 sps:$4 sm:$0xff]   ;;  %v6995_v30 = vld [vmem:[#allocation9 + $0x304] ss:$16 sps:$4 sm:$0xff]  }
 0x23a   :  { %5150 = vmatprep.subr.bf16.mxu0 %v6950_v50  ;;  %v6977_v50 = vld [vmem:[#allocation9 + $0x244] ss:$16 sps:$4 sm:$0xff]  }
 0x23b   :  { %3471 = vmatpush1.bf16.msra.mxu1 %v6310_v55  ;;  %v6382_v55 = vcombine.low %v478_v52, %v482_v44  ;;  %v498_v63 = vld [vmem:[#allocation6 + $0xb38] sm:$0xff] }
 0x23c   :  { %3472 = vmatprep.subr.bf16.mxu1 %v6319_v59  ;;  %v6391_v59 = vcombine.high %v486_v51, %v490_v16  ;;  %v514_v22 = vld [vmem:[#allocation6 + $0xbb8] sm:$0xff] }
 0x23d   :  { %5151 = vmatpush1.bf16.msra.mxu0 %v6948_v56  ;;  %v6975_v56 = vld [vmem:[#allocation9 + $0x240] ss:$16 sps:$4 sm:$0xff]  }
 0x23e   :  { %5152 = vmatprep.subr.bf16.mxu0 %v6953_v60  ;;  %v6980_v60 = vld [vmem:[#allocation9 + $0x264] ss:$16 sps:$4 sm:$0xff]   ;;  %v6999_v44 = vld [vmem:[#allocation9 + $0x340] ss:$16 sps:$4 sm:$0xff]  }
 0x23f   :  { %3473 = vmatpush1.bf16.msra.mxu1 %v6318_v1  ;;  %v6390_v1 = vcombine.low %v486_v51, %v490_v16  ;;  %v518_v17 = vld [vmem:[#allocation6 + $0xbd8] sm:$0xff] }
 0x240   :  { %3474 = vmatprep.subr.bf16.mxu1 %v6327_v61  ;;  %v6399_v61 = vcombine.high %v494_v62, %v498_v63  ;;  %v522_v18 = vld [vmem:[#allocation6 + $0xbf8] sm:$0xff] }
 0x241   :  { %5153 = vmatpush1.bf16.msra.mxu0 %v6951_v2  ;;  %v6978_v2 = vld [vmem:[#allocation9 + $0x260] ss:$16 sps:$4 sm:$0xff]   ;;  %v7007_v16 = vld [vmem:[#allocation9 + $0x384] ss:$16 sps:$4 sm:$0xff]  }
 0x242   :  { %5154 = vmatprep.subr.bf16.mxu0 %v6956_v21  ;;  %v6983_v21 = vld [vmem:[#allocation9 + $0x284] ss:$16 sps:$4 sm:$0xff]  }
 0x243   :  { %3475 = vmatpush1.bf16.msra.mxu1 %v6326_v28  ;;  %v6398_v28 = vcombine.low %v494_v62, %v498_v63  ;;  %v526_v26 = vld [vmem:[#allocation6 + $0xc18] sm:$0xff]  ;;  %v603_v62 = vsub.s32 3, %v7841_v57 }
 0x244   :  { %3476 = vmatprep.subr.bf16.mxu1 %v6335_v9  ;;  %v6407_v9 = vcombine.high %v502_v4, %v506_v5  ;;  %v530_v53 = vld [vmem:[#allocation6 + $0xc38] sm:$0xff] }
 0x245   :  { %5155 = vmatpush1.bf16.msra.mxu0 %v6954_v6  ;;  %v6981_v6 = vld [vmem:[#allocation9 + $0x280] ss:$16 sps:$4 sm:$0xff]   ;;  %v6430_v34 = vcombine.low %v526_v26, %v530_v53 }
 0x246   :  { %5156 = vmatprep.subr.bf16.mxu0 %v6959_v10  ;;  %v6986_v10 = vld [vmem:[#allocation9 + $0x2a4] ss:$16 sps:$4 sm:$0xff]   ;;  %v7005_v63 = vld [vmem:[#allocation9 + $0x380] ss:$16 sps:$4 sm:$0xff]  }
 0x247   :  { %3477 = vmatpush1.bf16.msra.mxu1 %v6334_v12  ;;  %v6406_v12 = vcombine.low %v502_v4, %v506_v5  ;;  %v538_v32 = vld [vmem:[#allocation6 + $0xc78] sm:$0xff]  ;;  %v604_v5 = vrot.slane %v7846_v7, %v603_v62 }
 0x248   :  { %3478 = vmatprep.subr.bf16.mxu1 %v6343_v14  ;;  %v6415_v14 = vcombine.high %v510_v11, %v514_v22  ;;  %v542_v39 = vld [vmem:[#allocation6 + $0xc98] sm:$0xff] }
 0x249   :  { %5157 = vmatpush1.bf16.msra.mxu0 %v6957_v13  ;;  %v6984_v13 = vld [vmem:[#allocation9 + $0x2a0] ss:$16 sps:$4 sm:$0xff]  }
 0x24a   :  { %5158 = vmatprep.subr.bf16.mxu0 %v6962_v15  ;;  %v6989_v15 = vld [vmem:[#allocation9 + $0x2c4] ss:$16 sps:$4 sm:$0xff]  }
 0x24b   :  { %3479 = vmatpush1.bf16.msra.mxu1 %v6342_v20  ;;  %v6414_v20 = vcombine.low %v510_v11, %v514_v22  ;;  %v7013_v11 = vld [vmem:[#allocation9 + $0x3c4] ss:$16 sps:$4 sm:$0xff]  }
 0x24c   :  { %3480 = vmatprep.subr.bf16.mxu1 %v6351_v24  ;;  %v6423_v24 = vcombine.high %v518_v17, %v522_v18  ;;  %v582_v22 = vld [vmem:[#allocation6 + $0xdd8] sm:$0xff] }
 0x24d   :  { %5159 = vmatpush1.bf16.msra.mxu0 %v6960_v23  ;;  %v6987_v23 = vld [vmem:[#allocation9 + $0x2c0] ss:$16 sps:$4 sm:$0xff]  }
 0x24e   :  { %5160 = vmatprep.subr.bf16.mxu0 %v6965_v25  ;;  %v6992_v25 = vld [vmem:[#allocation9 + $0x2e4] ss:$16 sps:$4 sm:$0xff]  }
 0x24f   :  { %3481 = vmatpush1.bf16.msra.mxu1 %v6350_v27  ;;  %v6422_v27 = vcombine.low %v518_v17, %v522_v18 }
 0x250   :  { %3482 = vmatprep.subr.bf16.mxu1 %v6359_v29  ;;  %v6431_v29 = vcombine.high %v526_v26, %v530_v53  ;;  %v7016_v26 = vld [vmem:[#allocation9 + $0x3e4] ss:$16 sps:$4 sm:$0xff]  }
 0x251   :  { %5161 = vmatpush1.bf16.msra.mxu0 %v6963_v54  ;;  %v6990_v54 = vld [vmem:[#allocation9 + $0x2e0] ss:$16 sps:$4 sm:$0xff]  }
 0x252   :  { %5162 = vmatprep.subr.bf16.mxu0 %v6968_v31  ;;  %v534_v31 = vld [vmem:[#allocation6 + $0xc58] sm:$0xff] }
 0x253   :  { %3483 = vmatpush1.bf16.msra.mxu1 %v6358_v35  ;;  %v6993_v35 = vld [vmem:[#allocation9 + $0x300] ss:$16 sps:$4 sm:$0xff]   ;;  %v6438_v41 = vcombine.low %v534_v31, %v538_v32 }
 0x254   :  { %3484 = vmatprep.subr.bf16.mxu1 %v6367_v38  ;;  %v6998_v38 = vld [vmem:[#allocation9 + $0x324] ss:$16 sps:$4 sm:$0xff]  }
 0x255   :  { %5163 = vmatpush1.bf16.msra.mxu0 %v6966_v37  ;;  %v6439_v37 = vcombine.high %v534_v31, %v538_v32  ;;  %v7043_v32 = vld [vmem:[#allocation9 + $0x404] ss:$16 sps:$4 sm:$0xff]  }
 0x256   :  { %5173 = vmatprep.subr.bf16.mxu0 %v6971_v40  ;;  %v546_v40 = vld [vmem:[#allocation6 + $0xcb8] sm:$0xff] }
 0x257   :  { %3485 = vmatpush1.bf16.msra.mxu1 %v6366_v42  ;;  %v6447_v42 = vcombine.high %v542_v39, %v546_v40  ;;  %v6446_v52 = vcombine.low %v542_v39, %v546_v40  ;;  %v7406_v39 = vld [vmem:[#allocation3 + $0x18] ss:$0 sps:$4 sm:$0xff]  }
 0x258   :  { %5165 = vmatmul.mubr.bf16.vlgmr.msra.gmra.mrb[8].mxu0 %v7867_v58  ;;  %3486 = vmatprep.subr.bf16.mxu1 %v6375_v19  ;;  %v550_v19 = vld [vmem:[#allocation6 + $0xcd8] sm:$0xff] }
 0x259   :  { %5174 = vmatpush1.bf16.msra.mxu0 %v6969_v36  ;;  %v7001_v36 = vld [vmem:[#allocation9 + $0x344] ss:$16 sps:$4 sm:$0xff]  }
 0x25a   :  { %5175 = vmatprep.subr.bf16.mxu0 %v6974_v43  ;;  %v554_v43 = vld [vmem:[#allocation6 + $0xcf8] sm:$0xff] }
 0x25b   :  { %3487 = vmatpush1.bf16.msra.mxu1 %v6374_v45  ;;  %v6455_v45 = vcombine.high %v550_v19, %v554_v43  ;;  %v7049_v40 = vld [vmem:[#allocation9 + $0x424] ss:$16 sps:$4 sm:$0xff]  }
 0x25c   :  { %3488 = vmatprep.subr.bf16.mxu1 %v6383_v49  ;;  %v562_v49 = vld [vmem:[#allocation6 + $0xd38] sm:$0xff] }
 0x25d   :  { %5176 = vmatpush1.bf16.msra.mxu0 %v6972_v46  ;;  %v558_v46 = vld [vmem:[#allocation6 + $0xd18] sm:$0xff] }
 0x25e   :  { %5177 = vmatprep.subr.bf16.mxu0 %v6977_v50  ;;  %v7002_v50 = vld [vmem:[#allocation9 + $0x360] ss:$16 sps:$4 sm:$0xff]   ;;  %v6463_v51 = vcombine.high %v558_v46, %v562_v49 }
 0x25f   :  { %3489 = vmatpush1.bf16.msra.mxu1 %v6382_v55  ;;  %v566_v55 = vld [vmem:[#allocation6 + $0xd58] sm:$0xff] }
 0x260   :  { %3490 = vmatprep.subr.bf16.mxu1 %v6391_v59  ;;  %v599_v59 = vsub.s32 2, %v7841_v57 }
 0x261   :  { %5178 = vmatpush1.bf16.msra.mxu0 %v6975_v56  ;;  %v570_v56 = vld [vmem:[#allocation6 + $0xd78] sm:$0xff] }
 0x262   :  { %5179 = vmatprep.subr.bf16.mxu0 %v6980_v60  ;;  %v6462_v60 = vcombine.low %v558_v46, %v562_v49  ;;  %v600_v4 = vrot.slane %v7846_v7, %v599_v59  ;;  %v7011_v7 = vld [vmem:[#allocation9 + $0x3c0] ss:$16 sps:$4 sm:$0xff]   ;;  %v7067_v46 = vld [vmem:[#allocation9 + $0x484] ss:$16 sps:$4 sm:$0xff]   ;;  %v7029_v49 = vld [vmem:[#allocation9 + $0x88] ss:$16 sps:$4 sm:$0xff]  }
 0x263   :  { %3491 = vmatpush1.bf16.msra.mxu1 %v6390_v1  ;;  %v6471_v1 = vcombine.high %v566_v55, %v570_v56 }
 0x264   :  { %3492 = vmatprep.subr.bf16.mxu1 %v6399_v61  ;;  %v574_v61 = vld [vmem:[#allocation6 + $0xd98] sm:$0xff] }
 0x265   :  { %5180 = vmatpush1.bf16.msra.mxu0 %v6978_v2  ;;  %v7010_v2 = vld [vmem:[#allocation9 + $0x3a4] ss:$16 sps:$4 sm:$0xff]  }
 0x266   :  { %5181 = vmatprep.subr.bf16.mxu0 %v6983_v21  ;;  %v578_v21 = vld [vmem:[#allocation6 + $0xdb8] sm:$0xff] }
 0x267   :  { %3493 = vmatpush1.bf16.msra.mxu1 %v6398_v28  ;;  %v6470_v28 = vcombine.low %v566_v55, %v570_v56  ;;  %v6478_v18 = vcombine.low %v574_v61, %v578_v21  ;;  %v7037_v55 = vld [vmem:[#allocation9 + $0xcc] ss:$16 sps:$4 sm:$0xff]   ;;  %v7071_v56 = vld [vmem:[#allocation9 + $0x4a0] ss:$16 sps:$4 sm:$0xff]  }
 0x268   :  { %3494 = vmatprep.subr.bf16.mxu1 %v6407_v9  ;;  %v6479_v9 = vcombine.high %v574_v61, %v578_v21  ;;  %v7085_v61 = vld [vmem:[#allocation9 + $0x4e4] ss:$16 sps:$4 sm:$0xff]   ;;  %v7038_v21 = vld [vmem:[#allocation9 + $0xe8] ss:$16 sps:$4 sm:$0xff]  }
 0x269   :  { %5182 = vmatpush1.bf16.msra.mxu0 %v6981_v6  ;;  %v7008_v6 = vld [vmem:[#allocation9 + $0x3a0] ss:$16 sps:$4 sm:$0xff]  }
 0x26a   :  { %5183 = vmatprep.subr.bf16.mxu0 %v6986_v10 }
 0x26b   :  { %3495 = vmatpush1.bf16.msra.mxu1 %v6406_v12  ;;  %v586_v12 = vld [vmem:[#allocation6 + $0xdf8] sm:$0xff] }
 0x26c   :  { %3496 = vmatprep.subr.bf16.mxu1 %v6415_v14 }
 0x26d   :  { %5184 = vmatpush1.bf16.msra.mxu0 %v6984_v13 }
 0x26e   :  { %5185 = vmatprep.subr.bf16.mxu0 %v6989_v15 }
 0x26f   :  { %3497 = vmatpush1.bf16.msra.mxu1 %v6414_v20 }
 0x270   :  { %3498 = vmatprep.subr.bf16.mxu1 %v6423_v24 }
 0x271   :  { %5186 = vmatpush1.bf16.msra.mxu0 %v6987_v23  ;;  %v6487_v23 = vcombine.high %v582_v22, %v586_v12 }
 0x272   :  { %5187 = vmatprep.subr.bf16.mxu0 %v6992_v25 }
 0x273   :  { %3499 = vmatpush1.bf16.msra.mxu1 %v6422_v27  ;;  %v6486_v27 = vcombine.low %v582_v22, %v586_v12  ;;  %v7050_v22 = vld [vmem:[#allocation9 + $0x128] ss:$16 sps:$4 sm:$0xff]   ;;  %v7058_v12 = vld [vmem:[#allocation9 + $0x14c] ss:$16 sps:$4 sm:$0xff]  }
 0x274   :  { %3509 = vmatprep.subr.bf16.mxu1 %v6431_v29  ;;  %v7019_v29 = vld [vmem:[#allocation9 + $0xc] ss:$16 sps:$4 sm:$0xff]  }
 0x275   :  { %5188 = vmatpush1.bf16.msra.mxu0 %v6990_v54  ;;  %v7014_v54 = vld [vmem:[#allocation9 + $0x3e0] ss:$16 sps:$4 sm:$0xff]  }
 0x276   :  { %5189 = vmatprep.subr.bf16.mxu0 %v6995_v30  ;;  %3501 = vmatmul.mubr.bf16.vlgmr.msra.gmra.mrb[8].mxu1 %v7814_v33  ;;  %v7004_v33 = vld [vmem:[#allocation9 + $0x364] ss:$16 sps:$4 sm:$0xff]  }
 0x277   :  { %3510 = vmatpush1.bf16.msra.mxu1 %v6430_v34  ;;  %3541 = vmatprep.mubr.bf16.mxu1 %v7632_v48  ;;  %v6454_v48 = vcombine.low %v550_v19, %v554_v43  ;;  %v7017_v34 = vld [vmem:[#allocation9 + $0x8] ss:$16 sps:$4 sm:$0xff]   ;;  %v7028_v43 = vld [vmem:[#allocation9 + $0x6c] ss:$16 sps:$4 sm:$0xff]  }
 0x278   :  { %3511 = vmatprep.subr.bf16.mxu1 %v6439_v37  ;;  %v7023_v19 = vld [vmem:[#allocation9 + $0x48] ss:$16 sps:$4 sm:$0xff]  }
 0x279   :  { %5190 = vmatpush1.bf16.msra.mxu0 %v6993_v35  ;;  %v7022_v35 = vld [vmem:[#allocation9 + $0x2c] ss:$16 sps:$4 sm:$0xff]  }
 0x27a   :  { %5191 = vmatprep.subr.bf16.mxu0 %v6998_v38  ;;  %v7041_v38 = vld [vmem:[#allocation9 + $0x400] ss:$16 sps:$4 sm:$0xff]  }
 0x27b   :  { %3512 = vmatpush1.bf16.msra.mxu1 %v6438_v41  ;;  %v7020_v41 = vld [vmem:[#allocation9 + $0x28] ss:$16 sps:$4 sm:$0xff]  }
 0x27c   :  { %3513 = vmatprep.subr.bf16.mxu1 %v6447_v42  ;;  %v7047_v42 = vld [vmem:[#allocation9 + $0x420] ss:$16 sps:$4 sm:$0xff]  }
 0x27d   :  { %5192 = vmatpush1.bf16.msra.mxu0 %v6996_v47  ;;  %v7025_v47 = vld [vmem:[#allocation9 + $0x4c] ss:$16 sps:$4 sm:$0xff]  }
 0x27e   :  { %5193 = vmatprep.subr.bf16.mxu0 %v7001_v36  ;;  %v7055_v36 = vld [vmem:[#allocation9 + $0x444] ss:$16 sps:$4 sm:$0xff]  }
 0x27f   :  { %3514 = vmatpush1.bf16.msra.mxu1 %v6446_v52  ;;  %v7053_v52 = vld [vmem:[#allocation9 + $0x440] ss:$16 sps:$4 sm:$0xff]  }
 0x280   :  { %3515 = vmatprep.subr.bf16.mxu1 %v6455_v45  ;;  %v7026_v45 = vld [vmem:[#allocation9 + $0x68] ss:$16 sps:$4 sm:$0xff]  }
 0x281   :  { %5194 = vmatpush1.bf16.msra.mxu0 %v6999_v44  ;;  %v7061_v44 = vld [vmem:[#allocation9 + $0x464] ss:$16 sps:$4 sm:$0xff]  }
 0x282   :  { %5195 = vmatprep.subr.bf16.mxu0 %v7004_v33  ;;  %v7031_v33 = vld [vmem:[#allocation9 + $0x8c] ss:$16 sps:$4 sm:$0xff]  }
 0x283   :  { %3516 = vmatpush1.bf16.msra.mxu1 %v6454_v48  ;;  %v7034_v48 = vld [vmem:[#allocation9 + $0xac] ss:$16 sps:$4 sm:$0xff]  }
 0x284   :  { %3517 = vmatprep.subr.bf16.mxu1 %v6463_v51  ;;  %v7073_v51 = vld [vmem:[#allocation9 + $0x4a4] ss:$16 sps:$4 sm:$0xff]  }
 0x285   :  { %5196 = vmatpush1.bf16.msra.mxu0 %v7002_v50  ;;  %v7065_v50 = vld [vmem:[#allocation9 + $0x480] ss:$16 sps:$4 sm:$0xff]  }
 0x286   :  { %5197 = vmatprep.subr.bf16.mxu0 %v7007_v16  ;;  %v7032_v16 = vld [vmem:[#allocation9 + $0xa8] ss:$16 sps:$4 sm:$0xff]  }
 0x287   :  { %3518 = vmatpush1.bf16.msra.mxu1 %v6462_v60  ;;  %v7079_v60 = vld [vmem:[#allocation9 + $0x4c4] ss:$16 sps:$4 sm:$0xff]  }
 0x288   :  { %3519 = vmatprep.subr.bf16.mxu1 %v6471_v1  ;;  %v7040_v1 = vld [vmem:[#allocation9 + $0xec] ss:$16 sps:$4 sm:$0xff]  }
 0x289   :  { %5198 = vmatpush1.bf16.msra.mxu0 %v7005_v63  ;;  %v3215_v10 = vpop.f32.mrb[4].mxu1  ;;  %v7035_v63 = vld [vmem:[#allocation9 + $0xc8] ss:$16 sps:$4 sm:$0xff]  }
 0x28a   :  { %5199 = vmatprep.subr.bf16.mxu0 %v7010_v2  ;;  %v6813_v13 = vadd.f32 %v3215_v10, %v600_v4  ;;  %v3217_v14 = vpop.f32.mrb[5].mxu1  ;;  %v7077_v2 = vld [vmem:[#allocation9 + $0x4c0] ss:$16 sps:$4 sm:$0xff]   ;;  %v7046_v4 = vld [vmem:[#allocation9 + $0x10c] ss:$16 sps:$4 sm:$0xff]  }
 0x28b   :  { %v6814_v15 = vadd.f32 %v3217_v14, %v604_v5  ;;  %v3219_v17 = vpop.f32.mrb[6].mxu1  ;;  %3520 = vmatpush1.bf16.msra.mxu1 %v6470_v28  ;;  %v7083_v5 = vld [vmem:[#allocation9 + $0x4e0] ss:$16 sps:$4 sm:$0xff]   ;;  %v7091_v28 = vld [vmem:[#allocation9 + $0x504] ss:$16 sps:$4 sm:$0xff]  }
 0x28c   :  { %v3220_v20 = vpop.f32.mrb[7].mxu1  ;;  %3521 = vmatprep.subr.bf16.mxu1 %v6479_v9  ;;  %v3552_v24 = vpack.c.bf16 %v6813_v13, %v6813_v13  ;;  %v7052_v9 = vld [vmem:[#allocation9 + $0x12c] ss:$16 sps:$4 sm:$0xff]   ;;  %v7089_v10 = vld [vmem:[#allocation9 + $0x500] ss:$16 sps:$4 sm:$0xff]  }
 0x28d   :  { %5200 = vmatpush1.bf16.msra.mxu0 %v7008_v6  ;;  %v3553_v25 = vpack.c.bf16 %v6814_v15, %v6814_v15  ;;  %v7044_v6 = vld [vmem:[#allocation9 + $0x108] ss:$16 sps:$4 sm:$0xff]   ;;  %v7095_v13 = vld [vmem:[#allocation9 + $0x520] ss:$16 sps:$4 sm:$0xff]   ;;  %v7103_v14 = vld [vmem:[#allocation9 + $0x544] ss:$16 sps:$4 sm:$0xff]  }
 0x28e   :  { %5201 = vmatprep.subr.bf16.mxu0 %v7013_v11  ;;  %v3560_v30 = vmul.bf16 1045249613, %v3552_v24  ;;  %v7097_v11 = vld [vmem:[#allocation9 + $0x524] ss:$16 sps:$4 sm:$0xff]   ;;  %v7056_v15 = vld [vmem:[#allocation9 + $0x148] ss:$16 sps:$4 sm:$0xff]  }
 0x28f   :  { %v3561_v53 = vmul.bf16 1045249613, %v3553_v25  ;;  %3522 = vmatpush1.bf16.msra.mxu1 %v6478_v18  ;;  %v7064_v17 = vld [vmem:[#allocation9 + $0x16c] ss:$16 sps:$4 sm:$0xff]   ;;  %v7101_v18 = vld [vmem:[#allocation9 + $0x540] ss:$16 sps:$4 sm:$0xff]  }
 0x290   :  { %3523 = vmatprep.subr.bf16.mxu1 %v6487_v23  ;;  %v7883_v37 = vmax.bf16 %v3560_v30, %v3552_v24  ;;  %v7109_v20 = vld [vmem:[#allocation9 + $0x564] ss:$16 sps:$4 sm:$0xff]   ;;  %v7070_v23 = vld [vmem:[#allocation9 + $0x18c] ss:$16 sps:$4 sm:$0xff]   ;;  %v7107_v24 = vld [vmem:[#allocation9 + $0x560] ss:$16 sps:$4 sm:$0xff]  }
 0x291   :  { %5202 = vmatpush1.bf16.msra.mxu0 %v7011_v7  ;;  %v7880_v31 = vmax.bf16 %v3561_v53, %v3553_v25  ;;  %v7062_v7 = vld [vmem:[#allocation9 + $0x168] ss:$16 sps:$4 sm:$0xff]   ;;  %v7115_v25 = vld [vmem:[#allocation9 + $0x584] ss:$16 sps:$4 sm:$0xff]   ;;  %v7076_v53 = vld [vmem:[#allocation9 + $0x1ac] ss:$16 sps:$4 sm:$0xff]  }
 0x292   :  { %5203 = vmatprep.subr.bf16.mxu0 %v7016_v26  ;;  %v7068_v26 = vld [vmem:[#allocation9 + $0x188] ss:$16 sps:$4 sm:$0xff]   ;;  %v7082_v30 = vld [vmem:[#allocation9 + $0x1cc] ss:$16 sps:$4 sm:$0xff]  }
 0x293   :  { %3524 = vmatpush1.bf16.msra.mxu1 %v6486_v27  ;;  %5205 = vmatprep.mubr.bf16.mxu0 %v7880_v31  ;;  %v7113_v27 = vld [vmem:[#allocation9 + $0x580] ss:$16 sps:$4 sm:$0xff]  }
 0x294   :  { %5296 = vmatprep.subr.bf16.mxu1 %v7019_v29  ;;  %v7074_v29 = vld [vmem:[#allocation9 + $0x1a8] ss:$16 sps:$4 sm:$0xff]  }
 0x295   :  { %5204 = vmatpush1.bf16.msra.mxu0 %v7014_v54  ;;  %v7121_v54 = vld [vmem:[#allocation9 + $0x5a4] ss:$16 sps:$4 sm:$0xff]  }
 0x296   :  { %5214 = vmatprep.subr.bf16.mxu0 %v7043_v32  ;;  %3542 = vmatmul.mubr.bf16.vlgmr.msra.gmra.mrb[8].mxu1 %v7406_v39  ;;  %v7119_v32 = vld [vmem:[#allocation9 + $0x5a0] ss:$16 sps:$4 sm:$0xff]  }
 0x297   :  { %5297 = vmatpush1.bf16.msra.mxu1 %v7017_v34  ;;  %5328 = vmatprep.mubr.bf16.mxu1 %v7859_v0  ;;  %v7059_v0 = vld [vmem:[#allocation9 + $0x460] ss:$16 sps:$4 sm:$0xff]   ;;  %v7127_v34 = vld [vmem:[#allocation9 + $0x5c4] ss:$16 sps:$4 sm:$0xff]  }
 0x298   :  { %5206 = vmatmul.mubr.bf16.vlgmr.msra.gmra.mrb[8].mxu0 %v7883_v37  ;;  %5298 = vmatprep.subr.bf16.mxu1 %v7022_v35  ;;  %v7080_v35 = vld [vmem:[#allocation9 + $0x1c8] ss:$16 sps:$4 sm:$0xff]   ;;  %v7125_v39 = vld [vmem:[#allocation9 + $0x5c0] ss:$16 sps:$4 sm:$0xff]  }
 0x299   :  { %5215 = vmatpush1.bf16.msra.mxu0 %v7041_v38  ;;  %v7088_v38 = vld [vmem:[#allocation9 + $0x1ec] ss:$16 sps:$4 sm:$0xff]  }
 0x29a   :  { %5216 = vmatprep.subr.bf16.mxu0 %v7049_v40  ;;  %v7133_v40 = vld [vmem:[#allocation9 + $0x5e4] ss:$16 sps:$4 sm:$0xff]  }
 0x29b   :  { %5299 = vmatpush1.bf16.msra.mxu1 %v7020_v41  ;;  %v7086_v41 = vld [vmem:[#allocation9 + $0x1e8] ss:$16 sps:$4 sm:$0xff]  }
 0x29c   :  { %5300 = vmatprep.subr.bf16.mxu1 %v7025_v47  ;;  %v7094_v47 = vld [vmem:[#allocation9 + $0x20c] ss:$16 sps:$4 sm:$0xff]  }
 0x29d   :  { %5217 = vmatpush1.bf16.msra.mxu0 %v7047_v42  ;;  %v7131_v42 = vld [vmem:[#allocation9 + $0x5e0] ss:$16 sps:$4 sm:$0xff]  }
 0x29e   :  { %5218 = vmatprep.subr.bf16.mxu0 %v7055_v36  ;;  %v7187_v36 = vld [vmem:[#allocation9 + $0x604] ss:$16 sps:$4 sm:$0xff]  }
 0x29f   :  { %5301 = vmatpush1.bf16.msra.mxu1 %v7023_v19  ;;  %v7092_v19 = vld [vmem:[#allocation9 + $0x208] ss:$16 sps:$4 sm:$0xff]  }
 0x2a0   :  { %5302 = vmatprep.subr.bf16.mxu1 %v7028_v43  ;;  %v7100_v43 = vld [vmem:[#allocation9 + $0x22c] ss:$16 sps:$4 sm:$0xff]  }
 0x2a1   :  { %5219 = vmatpush1.bf16.msra.mxu0 %v7053_v52  ;;  %v7098_v52 = vld [vmem:[#allocation9 + $0x228] ss:$16 sps:$4 sm:$0xff]  }
 0x2a2   :  { %5220 = vmatprep.subr.bf16.mxu0 %v7061_v44  ;;  %v7106_v44 = vld [vmem:[#allocation9 + $0x24c] ss:$16 sps:$4 sm:$0xff]  }
 0x2a3   :  { %5303 = vmatpush1.bf16.msra.mxu1 %v7026_v45  ;;  %v7104_v45 = vld [vmem:[#allocation9 + $0x248] ss:$16 sps:$4 sm:$0xff]  }
 0x2a4   :  { %5304 = vmatprep.subr.bf16.mxu1 %v7031_v33  ;;  %v7112_v33 = vld [vmem:[#allocation9 + $0x26c] ss:$16 sps:$4 sm:$0xff]  }
 0x2a5   :  { %5221 = vmatpush1.bf16.msra.mxu0 %v7059_v0  ;;  %v7110_v0 = vld [vmem:[#allocation9 + $0x268] ss:$16 sps:$4 sm:$0xff]  }
 0x2a6   :  { %5222 = vmatprep.subr.bf16.mxu0 %v7067_v46  ;;  %v7118_v46 = vld [vmem:[#allocation9 + $0x28c] ss:$16 sps:$4 sm:$0xff]  }
 0x2a7   :  { %5305 = vmatpush1.bf16.msra.mxu1 %v7029_v49  ;;  %v7116_v49 = vld [vmem:[#allocation9 + $0x288] ss:$16 sps:$4 sm:$0xff]  }
 0x2a8   :  { %5306 = vmatprep.subr.bf16.mxu1 %v7034_v48  ;;  %v607_v48 = vsub.s32 4, %v7841_v57 }
 0x2a9   :  { %5223 = vmatpush1.bf16.msra.mxu0 %v7065_v50  ;;  %v7124_v50 = vld [vmem:[#allocation9 + $0x2ac] ss:$16 sps:$4 sm:$0xff]  }
 0x2aa   :  { %5224 = vmatprep.subr.bf16.mxu0 %v7073_v51 }
 0x2ab   :  { %5307 = vmatpush1.bf16.msra.mxu1 %v7032_v16  ;;  %v7122_v16 = vld [vmem:[#allocation9 + $0x2a8] ss:$16 sps:$4 sm:$0xff]  }
 0x2ac   :  { %5308 = vmatprep.subr.bf16.mxu1 %v7037_v55 }
 0x2ad   :  { %5225 = vmatpush1.bf16.msra.mxu0 %v7071_v56  ;;  %v7130_v56 = vld [vmem:[#allocation9 + $0x2cc] ss:$16 sps:$4 sm:$0xff]  }
 0x2ae   :  { %5226 = vmatprep.subr.bf16.mxu0 %v7079_v60 }
 0x2af   :  { %5309 = vmatpush1.bf16.msra.mxu1 %v7035_v63 }
 0x2b0   :  { %5310 = vmatprep.subr.bf16.mxu1 %v7040_v1 }
 0x2b1   :  { %5227 = vmatpush1.bf16.msra.mxu0 %v7077_v2  ;;  %v7128_v2 = vld [vmem:[#allocation9 + $0x2c8] ss:$16 sps:$4 sm:$0xff]  }
 0x2b2   :  { %5228 = vmatprep.subr.bf16.mxu0 %v7085_v61 }
 0x2b3   :  { %5311 = vmatpush1.bf16.msra.mxu1 %v7038_v21 }
 0x2b4   :  { %5312 = vmatprep.subr.bf16.mxu1 %v7046_v4  ;;  %v7136_v4 = vld [vmem:[#allocation9 + $0x2ec] ss:$16 sps:$4 sm:$0xff]  }
 0x2b5   :  { %5229 = vmatpush1.bf16.msra.mxu0 %v7083_v5 }
 0x2b6   :  { %5230 = vmatprep.subr.bf16.mxu0 %v7091_v28 }
 0x2b7   :  { %5313 = vmatpush1.bf16.msra.mxu1 %v7044_v6 }
 0x2b8   :  { %5314 = vmatprep.subr.bf16.mxu1 %v7052_v9 }
 0x2b9   :  { %5231 = vmatpush1.bf16.msra.mxu0 %v7089_v10  ;;  %v7134_v10 = vld [vmem:[#allocation9 + $0x2e8] ss:$16 sps:$4 sm:$0xff]  }
 0x2ba   :  { %5232 = vmatprep.subr.bf16.mxu0 %v7097_v11 }
 0x2bb   :  { %5315 = vmatpush1.bf16.msra.mxu1 %v7050_v22  ;;  %v7139_v22 = vld [vmem:[#allocation9 + $0x30c] ss:$16 sps:$4 sm:$0xff]  }
 0x2bc   :  { %5316 = vmatprep.subr.bf16.mxu1 %v7058_v12 }
 0x2bd   :  { %5233 = vmatpush1.bf16.msra.mxu0 %v7095_v13  ;;  %v7185_v13 = vld [vmem:[#allocation9 + $0x600] ss:$16 sps:$4 sm:$0xff]  }
 0x2be   :  { %5234 = vmatprep.subr.bf16.mxu0 %v7103_v14 }
 0x2bf   :  { %5317 = vmatpush1.bf16.msra.mxu1 %v7056_v15  ;;  %v7137_v15 = vld [vmem:[#allocation9 + $0x308] ss:$16 sps:$4 sm:$0xff]  }
 0x2c0   :  { %5318 = vmatprep.subr.bf16.mxu1 %v7064_v17  ;;  %v7193_v17 = vld [vmem:[#allocation9 + $0x624] ss:$16 sps:$4 sm:$0xff]  }
 0x2c1   :  { %5235 = vmatpush1.bf16.msra.mxu0 %v7101_v18  ;;  %v7142_v18 = vld [vmem:[#allocation9 + $0x32c] ss:$16 sps:$4 sm:$0xff]  }
 0x2c2   :  { %5236 = vmatprep.subr.bf16.mxu0 %v7109_v20  ;;  %v7191_v20 = vld [vmem:[#allocation9 + $0x620] ss:$16 sps:$4 sm:$0xff]  }
 0x2c3   :  { %5319 = vmatpush1.bf16.msra.mxu1 %v7062_v7  ;;  %v7140_v7 = vld [vmem:[#allocation9 + $0x328] ss:$16 sps:$4 sm:$0xff]  }
 0x2c4   :  { %5320 = vmatprep.subr.bf16.mxu1 %v7070_v23  ;;  %v7199_v23 = vld [vmem:[#allocation9 + $0x644] ss:$16 sps:$4 sm:$0xff]  }
 0x2c5   :  { %5237 = vmatpush1.bf16.msra.mxu0 %v7107_v24  ;;  %v7145_v24 = vld [vmem:[#allocation9 + $0x34c] ss:$16 sps:$4 sm:$0xff]  }
 0x2c6   :  { %5238 = vmatprep.subr.bf16.mxu0 %v7115_v25  ;;  %v7197_v25 = vld [vmem:[#allocation9 + $0x640] ss:$16 sps:$4 sm:$0xff]  }
 0x2c7   :  { %5321 = vmatpush1.bf16.msra.mxu1 %v7068_v26  ;;  %v7143_v26 = vld [vmem:[#allocation9 + $0x348] ss:$16 sps:$4 sm:$0xff]  }
 0x2c8   :  { %5322 = vmatprep.subr.bf16.mxu1 %v7076_v53  ;;  %v7205_v53 = vld [vmem:[#allocation9 + $0x664] ss:$16 sps:$4 sm:$0xff]  }
 0x2c9   :  { %5239 = vmatpush1.bf16.msra.mxu0 %v7113_v27  ;;  %v7148_v27 = vld [vmem:[#allocation9 + $0x36c] ss:$16 sps:$4 sm:$0xff]  }
 0x2ca   :  { %5240 = vmatprep.subr.bf16.mxu0 %v7121_v54  ;;  %v7203_v54 = vld [vmem:[#allocation9 + $0x660] ss:$16 sps:$4 sm:$0xff]  }
 0x2cb   :  { %5323 = vmatpush1.bf16.msra.mxu1 %v7074_v29  ;;  %v7146_v29 = vld [vmem:[#allocation9 + $0x368] ss:$16 sps:$4 sm:$0xff]  }
 0x2cc   :  { %5324 = vmatprep.subr.bf16.mxu1 %v7082_v30  ;;  %v7211_v30 = vld [vmem:[#allocation9 + $0x684] ss:$16 sps:$4 sm:$0xff]  }
 0x2cd   :  { %5241 = vmatpush1.bf16.msra.mxu0 %v7119_v32  ;;  %v7151_v32 = vld [vmem:[#allocation9 + $0x38c] ss:$16 sps:$4 sm:$0xff]  }
 0x2ce   :  { %5242 = vmatprep.subr.bf16.mxu0 %v7127_v34  ;;  %v7209_v34 = vld [vmem:[#allocation9 + $0x680] ss:$16 sps:$4 sm:$0xff]  }
 0x2cf   :  { %5325 = vmatpush1.bf16.msra.mxu1 %v7080_v35  ;;  %v7149_v35 = vld [vmem:[#allocation9 + $0x388] ss:$16 sps:$4 sm:$0xff]  }
 0x2d0   :  { %5326 = vmatprep.subr.bf16.mxu1 %v7088_v38  ;;  %v7217_v38 = vld [vmem:[#allocation9 + $0x6a4] ss:$16 sps:$4 sm:$0xff]  }
 0x2d1   :  { %5243 = vmatpush1.bf16.msra.mxu0 %v7125_v39  ;;  %v7154_v39 = vld [vmem:[#allocation9 + $0x3ac] ss:$16 sps:$4 sm:$0xff]  }
 0x2d2   :  { %5244 = vmatprep.subr.bf16.mxu0 %v7133_v40  ;;  %v7215_v40 = vld [vmem:[#allocation9 + $0x6a0] ss:$16 sps:$4 sm:$0xff]  }
 0x2d3   :  { %5327 = vmatpush1.bf16.msra.mxu1 %v7086_v41  ;;  %v7152_v41 = vld [vmem:[#allocation9 + $0x3a8] ss:$16 sps:$4 sm:$0xff]  }
 0x2d4   :  { %5337 = vmatprep.subr.bf16.mxu1 %v7094_v47  ;;  %v7223_v47 = vld [vmem:[#allocation9 + $0x6c4] ss:$16 sps:$4 sm:$0xff]  }
 0x2d5   :  { %5245 = vmatpush1.bf16.msra.mxu0 %v7131_v42  ;;  %v7157_v42 = vld [vmem:[#allocation9 + $0x3cc] ss:$16 sps:$4 sm:$0xff]  }
 0x2d6   :  { %5329 = vmatmul.mubr.bf16.vlgmr.msra.gmra.mrb[12].mxu1 %v7867_v58  ;;  %5255 = vmatprep.subr.bf16.mxu0 %v7187_v36  ;;  %v611_v58 = vsub.s32 5, %v7841_v57  ;;  %v7221_v36 = vld [vmem:[#allocation9 + $0x6c0] ss:$16 sps:$4 sm:$0xff]  }
 0x2d7   :  { %5338 = vmatpush1.bf16.msra.mxu1 %v7092_v19  ;;  %5369 = vmatprep.mubr.bf16.mxu1 %v7880_v31  ;;  %v7891_v31 = vld [vmem:[#allocation8] sm:$0xff] }
 0x2d8   :  { %5339 = vmatprep.subr.bf16.mxu1 %v7100_v43  ;;  %v608_v51 = vrot.slane %v7891_v31, %v607_v48  ;;  %v612_v55 = vrot.slane %v7891_v31, %v611_v58  ;;  %v7155_v19 = vld [vmem:[#allocation9 + $0x3c8] ss:$16 sps:$4 sm:$0xff]   ;;  %v7229_v43 = vld [vmem:[#allocation9 + $0x6e4] ss:$16 sps:$4 sm:$0xff]   ;;  %v7166_v48 = vld [vmem:[#allocation9 + $0x42c] ss:$16 sps:$4 sm:$0xff]  }
 0x2d9   :  { %v7241_v58 = vld [vmem:[#allocation9 + $0x724] ss:$16 sps:$4 sm:$0xff]  }
 0x2db   :  { %5340 = vmatpush1.bf16.msra.mxu1 %v7098_v52  ;;  %v7160_v52 = vld [vmem:[#allocation9 + $0x3ec] ss:$16 sps:$4 sm:$0xff]  }
 0x2dc   :  { %5341 = vmatprep.subr.bf16.mxu1 %v7106_v44  ;;  %v7227_v44 = vld [vmem:[#allocation9 + $0x6e0] ss:$16 sps:$4 sm:$0xff]  }
 0x2df   :  { %5342 = vmatpush1.bf16.msra.mxu1 %v7104_v45  ;;  %v7158_v45 = vld [vmem:[#allocation9 + $0x3e8] ss:$16 sps:$4 sm:$0xff]  }
 0x2e0   :  { %5343 = vmatprep.subr.bf16.mxu1 %v7112_v33  ;;  %v7235_v33 = vld [vmem:[#allocation9 + $0x704] ss:$16 sps:$4 sm:$0xff]  }
 0x2e3   :  { %5344 = vmatpush1.bf16.msra.mxu1 %v7110_v0  ;;  %v7163_v0 = vld [vmem:[#allocation9 + $0x40c] ss:$16 sps:$4 sm:$0xff]  }
 0x2e4   :  { %5345 = vmatprep.subr.bf16.mxu1 %v7118_v46  ;;  %v7233_v46 = vld [vmem:[#allocation9 + $0x700] ss:$16 sps:$4 sm:$0xff]  }
 0x2e7   :  { %5346 = vmatpush1.bf16.msra.mxu1 %v7116_v49  ;;  %v7161_v49 = vld [vmem:[#allocation9 + $0x408] ss:$16 sps:$4 sm:$0xff]  }
 0x2e8   :  { %5347 = vmatprep.subr.bf16.mxu1 %v7124_v50  ;;  %v7239_v50 = vld [vmem:[#allocation9 + $0x720] ss:$16 sps:$4 sm:$0xff]  }
 0x2eb   :  { %v3379_v60 = vpop.f32.mrb[4].mxu0  ;;  %5348 = vmatpush1.bf16.msra.mxu1 %v7122_v16  ;;  %v7247_v16 = vld [vmem:[#allocation9 + $0x744] ss:$16 sps:$4 sm:$0xff]  }
 0x2ec   :  { %v6815_v63 = vadd.f32 %v3379_v60, %v608_v51  ;;  %v3381_v1 = vpop.f32.mrb[5].mxu0  ;;  %5349 = vmatprep.subr.bf16.mxu1 %v7130_v56  ;;  %v7164_v51 = vld [vmem:[#allocation9 + $0x428] ss:$16 sps:$4 sm:$0xff]   ;;  %v7245_v56 = vld [vmem:[#allocation9 + $0x740] ss:$16 sps:$4 sm:$0xff]  }
 0x2ed   :  { %v6816_v61 = vadd.f32 %v3381_v1, %v612_v55  ;;  %v3383_v21 = vpop.f32.mrb[6].mxu0  ;;  %v7169_v55 = vld [vmem:[#allocation9 + $0x44c] ss:$16 sps:$4 sm:$0xff]   ;;  %v7167_v60 = vld [vmem:[#allocation9 + $0x448] ss:$16 sps:$4 sm:$0xff]  }
 0x2ee   :  { %v3554_v5 = vpack.c.bf16 %v6815_v63, %v6815_v63  ;;  %v3384_v28 = vpop.f32.mrb[7].mxu0  ;;  %v7253_v63 = vld [vmem:[#allocation9 + $0x764] ss:$16 sps:$4 sm:$0xff]   ;;  %v7172_v1 = vld [vmem:[#allocation9 + $0x46c] ss:$16 sps:$4 sm:$0xff]  }
 0x2ef   :  { %v3555_v6 = vpack.c.bf16 %v6816_v61, %v6816_v61  ;;  %5350 = vmatpush1.bf16.msra.mxu1 %v7128_v2  ;;  %v7170_v2 = vld [vmem:[#allocation9 + $0x468] ss:$16 sps:$4 sm:$0xff]   ;;  %v7259_v61 = vld [vmem:[#allocation9 + $0x784] ss:$16 sps:$4 sm:$0xff]   ;;  %v7175_v21 = vld [vmem:[#allocation9 + $0x48c] ss:$16 sps:$4 sm:$0xff]  }
 0x2f0   :  { %v3562_v9 = vmul.bf16 1045249613, %v3554_v5  ;;  %5351 = vmatprep.subr.bf16.mxu1 %v7136_v4  ;;  %v7257_v4 = vld [vmem:[#allocation9 + $0x780] ss:$16 sps:$4 sm:$0xff]   ;;  %v7265_v28 = vld [vmem:[#allocation9 + $0x7a4] ss:$16 sps:$4 sm:$0xff]  }
 0x2f1   :  { %v3563_v11 = vmul.bf16 1045249613, %v3555_v6 }
 0x2f2   :  { %v7897_v14 = vmax.bf16 %v3562_v9, %v3554_v5  ;;  %v7173_v5 = vld [vmem:[#allocation9 + $0x488] ss:$16 sps:$4 sm:$0xff]   ;;  %v7263_v9 = vld [vmem:[#allocation9 + $0x7a0] ss:$16 sps:$4 sm:$0xff]  }
 0x2f3   :  { %v7895_v12 = vmax.bf16 %v3563_v11, %v3555_v6  ;;  %5352 = vmatpush1.bf16.msra.mxu1 %v7134_v10  ;;  %v7178_v6 = vld [vmem:[#allocation9 + $0x4ac] ss:$16 sps:$4 sm:$0xff]   ;;  %v7176_v10 = vld [vmem:[#allocation9 + $0x4a8] ss:$16 sps:$4 sm:$0xff]   ;;  %v7271_v11 = vld [vmem:[#allocation9 + $0x7c4] ss:$16 sps:$4 sm:$0xff]  }
 0x2f4   :  { %5353 = vmatprep.subr.bf16.mxu1 %v7139_v22  ;;  %v7181_v22 = vld [vmem:[#allocation9 + $0x4cc] ss:$16 sps:$4 sm:$0xff]  }
 0x2f5   :  { %5246 = vmatprep.mubr.bf16.mxu0 %v7895_v12 }
 0x2f6   :  { %5247 = vmatmul.mubr.bf16.vlgmr.msra.gmra.mrb[8].mxu0 %v7897_v14 }
 0x2f7   :  { %5256 = vmatpush1.bf16.msra.mxu0 %v7185_v13  ;;  %5354 = vmatpush1.bf16.msra.mxu1 %v7137_v15  ;;  %v7179_v13 = vld [vmem:[#allocation9 + $0x4c8] ss:$16 sps:$4 sm:$0xff]   ;;  %v7277_v15 = vld [vmem:[#allocation9 + $0x7e4] ss:$16 sps:$4 sm:$0xff]  }
 0x2f8   :  { %5257 = vmatprep.subr.bf16.mxu0 %v7193_v17  ;;  %5355 = vmatprep.subr.bf16.mxu1 %v7142_v18  ;;  %v7184_v17 = vld [vmem:[#allocation9 + $0x4ec] ss:$16 sps:$4 sm:$0xff]   ;;  %v7275_v18 = vld [vmem:[#allocation9 + $0x7e0] ss:$16 sps:$4 sm:$0xff]  }
 0x2fb   :  { %5258 = vmatpush1.bf16.msra.mxu0 %v7191_v20  ;;  %5356 = vmatpush1.bf16.msra.mxu1 %v7140_v7  ;;  %v7182_v20 = vld [vmem:[#allocation9 + $0x4e8] ss:$16 sps:$4 sm:$0xff]  }
 0x2fc   :  { %5259 = vmatprep.subr.bf16.mxu0 %v7199_v23  ;;  %5357 = vmatprep.subr.bf16.mxu1 %v7145_v24  ;;  %v7307_v7 = vld [vmem:[#allocation12 + $0x4] ss:$8 sps:$4 sm:$0xff]   ;;  %v7190_v23 = vld [vmem:[#allocation9 + $0x50c] ss:$16 sps:$4 sm:$0xff]  }
 0x2fd   :  { %v7188_v24 = vld [vmem:[#allocation9 + $0x508] ss:$16 sps:$4 sm:$0xff]  }
 0x2ff   :  { %5260 = vmatpush1.bf16.msra.mxu0 %v7197_v25  ;;  %5358 = vmatpush1.bf16.msra.mxu1 %v7143_v26  ;;  %v7196_v25 = vld [vmem:[#allocation9 + $0x52c] ss:$16 sps:$4 sm:$0xff]   ;;  %v7194_v26 = vld [vmem:[#allocation9 + $0x528] ss:$16 sps:$4 sm:$0xff]  }
 0x300   :  { %5261 = vmatprep.subr.bf16.mxu0 %v7205_v53  ;;  %5359 = vmatprep.subr.bf16.mxu1 %v7148_v27  ;;  %v7202_v53 = vld [vmem:[#allocation9 + $0x54c] ss:$16 sps:$4 sm:$0xff]   ;;  %v7200_v27 = vld [vmem:[#allocation9 + $0x548] ss:$16 sps:$4 sm:$0xff]  }
 0x303   :  { %5262 = vmatpush1.bf16.msra.mxu0 %v7203_v54  ;;  %5360 = vmatpush1.bf16.msra.mxu1 %v7146_v29  ;;  %v7208_v54 = vld [vmem:[#allocation9 + $0x56c] ss:$16 sps:$4 sm:$0xff]   ;;  %v7206_v29 = vld [vmem:[#allocation9 + $0x568] ss:$16 sps:$4 sm:$0xff]  }
 0x304   :  { %5263 = vmatprep.subr.bf16.mxu0 %v7211_v30  ;;  %5361 = vmatprep.subr.bf16.mxu1 %v7151_v32  ;;  %v7214_v30 = vld [vmem:[#allocation9 + $0x58c] ss:$16 sps:$4 sm:$0xff]   ;;  %v7212_v32 = vld [vmem:[#allocation9 + $0x588] ss:$16 sps:$4 sm:$0xff]  }
 0x307   :  { %5264 = vmatpush1.bf16.msra.mxu0 %v7209_v34  ;;  %5362 = vmatpush1.bf16.msra.mxu1 %v7149_v35  ;;  %v7220_v34 = vld [vmem:[#allocation9 + $0x5ac] ss:$16 sps:$4 sm:$0xff]   ;;  %v7218_v35 = vld [vmem:[#allocation9 + $0x5a8] ss:$16 sps:$4 sm:$0xff]  }
 0x308   :  { %5265 = vmatprep.subr.bf16.mxu0 %v7217_v38  ;;  %5363 = vmatprep.subr.bf16.mxu1 %v7154_v39  ;;  %v7226_v38 = vld [vmem:[#allocation9 + $0x5cc] ss:$16 sps:$4 sm:$0xff]   ;;  %v7224_v39 = vld [vmem:[#allocation9 + $0x5c8] ss:$16 sps:$4 sm:$0xff]  }
 0x30b   :  { %5266 = vmatpush1.bf16.msra.mxu0 %v7215_v40  ;;  %5364 = vmatpush1.bf16.msra.mxu1 %v7152_v41  ;;  %v7232_v40 = vld [vmem:[#allocation9 + $0x5ec] ss:$16 sps:$4 sm:$0xff]   ;;  %v7230_v41 = vld [vmem:[#allocation9 + $0x5e8] ss:$16 sps:$4 sm:$0xff]  }
 0x30c   :  { %5267 = vmatprep.subr.bf16.mxu0 %v7223_v47  ;;  %5365 = vmatprep.subr.bf16.mxu1 %v7157_v42  ;;  %v7238_v47 = vld [vmem:[#allocation9 + $0x60c] ss:$16 sps:$4 sm:$0xff]   ;;  %v7236_v42 = vld [vmem:[#allocation9 + $0x608] ss:$16 sps:$4 sm:$0xff]  }
 0x30f   :  { %5268 = vmatpush1.bf16.msra.mxu0 %v7221_v36  ;;  %5366 = vmatpush1.bf16.msra.mxu1 %v7155_v19  ;;  %v7244_v36 = vld [vmem:[#allocation9 + $0x62c] ss:$16 sps:$4 sm:$0xff]   ;;  %v7242_v19 = vld [vmem:[#allocation9 + $0x628] ss:$16 sps:$4 sm:$0xff]  }
 0x310   :  { %5269 = vmatprep.subr.bf16.mxu0 %v7229_v43  ;;  %5367 = vmatprep.subr.bf16.mxu1 %v7160_v52  ;;  %v7250_v43 = vld [vmem:[#allocation9 + $0x64c] ss:$16 sps:$4 sm:$0xff]   ;;  %v7248_v52 = vld [vmem:[#allocation9 + $0x648] ss:$16 sps:$4 sm:$0xff]  }
 0x313   :  { %5270 = vmatpush1.bf16.msra.mxu0 %v7227_v44  ;;  %5368 = vmatpush1.bf16.msra.mxu1 %v7158_v45  ;;  %v7256_v44 = vld [vmem:[#allocation9 + $0x66c] ss:$16 sps:$4 sm:$0xff]   ;;  %v7254_v45 = vld [vmem:[#allocation9 + $0x668] ss:$16 sps:$4 sm:$0xff]  }
 0x314   :  { %5271 = vmatprep.subr.bf16.mxu0 %v7235_v33  ;;  %5378 = vmatprep.subr.bf16.mxu1 %v7163_v0  ;;  %v7262_v33 = vld [vmem:[#allocation9 + $0x68c] ss:$16 sps:$4 sm:$0xff]   ;;  %v615_v0 = vsub.s32 6, %v7841_v57 }
 0x316   :  { %5370 = vmatmul.mubr.bf16.vlgmr.msra.gmra.mrb[12].mxu1 %v7883_v37  ;;  %v7251_v37 = vld [vmem:[#allocation9 + $0x760] ss:$16 sps:$4 sm:$0xff]  }
 0x317   :  { %5272 = vmatpush1.bf16.msra.mxu0 %v7233_v46  ;;  %5379 = vmatpush1.bf16.msra.mxu1 %v7161_v49  ;;  %v7260_v46 = vld [vmem:[#allocation9 + $0x688] ss:$16 sps:$4 sm:$0xff]   ;;  %v619_v49 = vsub.s32 7, %v7841_v57 }
 0x318   :  { %5410 = vmatprep.mubr.bf16.mxu1 %v7895_v12  ;;  %5380 = vmatprep.subr.bf16.mxu1 %v7166_v48  ;;  %v7269_v12 = vld [vmem:[#allocation9 + $0x7c0] ss:$16 sps:$4 sm:$0xff]   ;;  %v616_v48 = vrot.slane %v7891_v31, %v615_v0  ;;  %v7335_v0 = vld [vmem:[#allocation12 + $0xa0] ss:$8 sps:$4 sm:$0xff]  }
 0x319   :  { %5273 = vmatprep.subr.bf16.mxu0 %v7241_v58  ;;  %v620_v58 = vrot.slane %v7891_v31, %v619_v49  ;;  %v7338_v49 = vld [vmem:[#allocation12 + $0xb0] ss:$8 sps:$4 sm:$0xff]  }
 0x31b   :  { %5274 = vmatpush1.bf16.msra.mxu0 %v7239_v50  ;;  %5381 = vmatpush1.bf16.msra.mxu1 %v7164_v51  ;;  %v7266_v50 = vld [vmem:[#allocation9 + $0x6a8] ss:$16 sps:$4 sm:$0xff]   ;;  %v7274_v51 = vld [vmem:[#allocation9 + $0x6cc] ss:$16 sps:$4 sm:$0xff]  }
 0x31c   :  { %5275 = vmatprep.subr.bf16.mxu0 %v7247_v16  ;;  %5382 = vmatprep.subr.bf16.mxu1 %v7169_v55 }
 0x31f   :  { %5276 = vmatpush1.bf16.msra.mxu0 %v7245_v56  ;;  %5383 = vmatpush1.bf16.msra.mxu1 %v7167_v60 }
 0x320   :  { %5277 = vmatprep.subr.bf16.mxu0 %v7253_v63  ;;  %5384 = vmatprep.subr.bf16.mxu1 %v7172_v1  ;;  %v7272_v1 = vld [vmem:[#allocation9 + $0x6c8] ss:$16 sps:$4 sm:$0xff]  }
 0x323   :  { %5278 = vmatpush1.bf16.msra.mxu0 %v7251_v37  ;;  %5385 = vmatpush1.bf16.msra.mxu1 %v7170_v2 }
 0x324   :  { %5279 = vmatprep.subr.bf16.mxu0 %v7259_v61  ;;  %5386 = vmatprep.subr.bf16.mxu1 %v7175_v21  ;;  %v7280_v61 = vld [vmem:[#allocation9 + $0x6ec] ss:$16 sps:$4 sm:$0xff]  }
 0x327   :  { %5280 = vmatpush1.bf16.msra.mxu0 %v7257_v4  ;;  %5387 = vmatpush1.bf16.msra.mxu1 %v7173_v5 }
 0x328   :  { %5281 = vmatprep.subr.bf16.mxu0 %v7265_v28  ;;  %5388 = vmatprep.subr.bf16.mxu1 %v7178_v6  ;;  %v7278_v28 = vld [vmem:[#allocation9 + $0x6e8] ss:$16 sps:$4 sm:$0xff]   ;;  %v7283_v6 = vld [vmem:[#allocation9 + $0x70c] ss:$16 sps:$4 sm:$0xff]  }
 0x32b   :  { %5282 = vmatpush1.bf16.msra.mxu0 %v7263_v9  ;;  %5389 = vmatpush1.bf16.msra.mxu1 %v7176_v10  ;;  %v7305_v9 = vld [vmem:[#allocation12] ss:$8 sps:$4 sm:$0xff]  }
 0x32c   :  { %5283 = vmatprep.subr.bf16.mxu0 %v7271_v11  ;;  %5390 = vmatprep.subr.bf16.mxu1 %v7181_v22  ;;  %v7310_v11 = vld [vmem:[#allocation12 + $0x14] ss:$8 sps:$4 sm:$0xff]  }
 0x32d   :  { %v7281_v22 = vld [vmem:[#allocation9 + $0x708] ss:$16 sps:$4 sm:$0xff]  }
 0x32f   :  { %5284 = vmatpush1.bf16.msra.mxu0 %v7269_v12  ;;  %5391 = vmatpush1.bf16.msra.mxu1 %v7179_v13  ;;  %v7286_v12 = vld [vmem:[#allocation9 + $0x72c] ss:$16 sps:$4 sm:$0xff]  }
 0x330   :  { %5285 = vmatprep.subr.bf16.mxu0 %v7277_v15  ;;  %5392 = vmatprep.subr.bf16.mxu1 %v7184_v17  ;;  %v7308_v13 = vld [vmem:[#allocation12 + $0x10] ss:$8 sps:$4 sm:$0xff]   ;;  %v7313_v15 = vld [vmem:[#allocation12 + $0x24] ss:$8 sps:$4 sm:$0xff]  }
 0x331   :  { %v7284_v17 = vld [vmem:[#allocation9 + $0x728] ss:$16 sps:$4 sm:$0xff]  }
 0x333   :  { %5286 = vmatpush1.bf16.msra.mxu0 %v7275_v18  ;;  %5393 = vmatpush1.bf16.msra.mxu1 %v7182_v20  ;;  %v7289_v18 = vld [vmem:[#allocation9 + $0x74c] ss:$16 sps:$4 sm:$0xff]  }
 0x334   :  { %5868 = vmatprep.subr.bf16.mxu0 %v7307_v7  ;;  %5394 = vmatprep.subr.bf16.mxu1 %v7190_v23  ;;  %v7311_v20 = vld [vmem:[#allocation12 + $0x20] ss:$8 sps:$4 sm:$0xff]   ;;  %v7316_v7 = vld [vmem:[#allocation12 + $0x34] ss:$8 sps:$4 sm:$0xff]  }
 0x335   :  { %v7287_v23 = vld [vmem:[#allocation9 + $0x748] ss:$16 sps:$4 sm:$0xff]  }
 0x337   :  { %5395 = vmatpush1.bf16.msra.mxu1 %v7188_v24  ;;  %v7292_v24 = vld [vmem:[#allocation9 + $0x76c] ss:$16 sps:$4 sm:$0xff]  }
 0x338   :  { %5396 = vmatprep.subr.bf16.mxu1 %v7196_v25  ;;  %v7314_v25 = vld [vmem:[#allocation12 + $0x30] ss:$8 sps:$4 sm:$0xff]  }
 0x33b   :  { %5397 = vmatpush1.bf16.msra.mxu1 %v7194_v26  ;;  %v7319_v26 = vld [vmem:[#allocation12 + $0x44] ss:$8 sps:$4 sm:$0xff]  }
 0x33c   :  { %5398 = vmatprep.subr.bf16.mxu1 %v7202_v53  ;;  %v7290_v53 = vld [vmem:[#allocation9 + $0x768] ss:$16 sps:$4 sm:$0xff]  }
 0x33f   :  { %5399 = vmatpush1.bf16.msra.mxu1 %v7200_v27  ;;  %v7295_v27 = vld [vmem:[#allocation9 + $0x78c] ss:$16 sps:$4 sm:$0xff]  }
 0x340   :  { %5400 = vmatprep.subr.bf16.mxu1 %v7208_v54  ;;  %v7317_v54 = vld [vmem:[#allocation12 + $0x40] ss:$8 sps:$4 sm:$0xff]  }
 0x343   :  { %5401 = vmatpush1.bf16.msra.mxu1 %v7206_v29  ;;  %v7322_v29 = vld [vmem:[#allocation12 + $0x54] ss:$8 sps:$4 sm:$0xff]  }
 0x344   :  { %5402 = vmatprep.subr.bf16.mxu1 %v7214_v30  ;;  %v7293_v30 = vld [vmem:[#allocation9 + $0x788] ss:$16 sps:$4 sm:$0xff]  }
 0x347   :  { %5403 = vmatpush1.bf16.msra.mxu1 %v7212_v32  ;;  %v7298_v32 = vld [vmem:[#allocation9 + $0x7ac] ss:$16 sps:$4 sm:$0xff]  }
 0x348   :  { %5404 = vmatprep.subr.bf16.mxu1 %v7220_v34  ;;  %v7320_v34 = vld [vmem:[#allocation12 + $0x50] ss:$8 sps:$4 sm:$0xff]  }
 0x34b   :  { %5405 = vmatpush1.bf16.msra.mxu1 %v7218_v35  ;;  %v7325_v35 = vld [vmem:[#allocation12 + $0x64] ss:$8 sps:$4 sm:$0xff]  }
 0x34c   :  { %5406 = vmatprep.subr.bf16.mxu1 %v7226_v38  ;;  %v7296_v38 = vld [vmem:[#allocation9 + $0x7a8] ss:$16 sps:$4 sm:$0xff]  }
 0x34f   :  { %5407 = vmatpush1.bf16.msra.mxu1 %v7224_v39  ;;  %v7301_v39 = vld [vmem:[#allocation9 + $0x7cc] ss:$16 sps:$4 sm:$0xff]  }
 0x350   :  { %5408 = vmatprep.subr.bf16.mxu1 %v7232_v40  ;;  %v7323_v40 = vld [vmem:[#allocation12 + $0x60] ss:$8 sps:$4 sm:$0xff]  }
 0x353   :  { %5409 = vmatpush1.bf16.msra.mxu1 %v7230_v41  ;;  %v7328_v41 = vld [vmem:[#allocation12 + $0x74] ss:$8 sps:$4 sm:$0xff]  }
 0x354   :  { %5419 = vmatprep.subr.bf16.mxu1 %v7238_v47  ;;  %v7299_v47 = vld [vmem:[#allocation9 + $0x7c8] ss:$16 sps:$4 sm:$0xff]  }
 0x356   :  { %5411 = vmatmul.mubr.bf16.vlgmr.msra.gmra.mrb[12].mxu1 %v7897_v14  ;;  %v7268_v14 = vld [vmem:[#allocation9 + $0x6ac] ss:$16 sps:$4 sm:$0xff]  }
 0x357   :  { %5420 = vmatpush1.bf16.msra.mxu1 %v7236_v42  ;;  %v7304_v42 = vld [vmem:[#allocation9 + $0x7ec] ss:$16 sps:$4 sm:$0xff]  }
 0x358   :  { %5421 = vmatprep.subr.bf16.mxu1 %v7244_v36  ;;  %v7326_v36 = vld [vmem:[#allocation12 + $0x70] ss:$8 sps:$4 sm:$0xff]  }
 0x35b   :  { %5422 = vmatpush1.bf16.msra.mxu1 %v7242_v19  ;;  %v7331_v19 = vld [vmem:[#allocation12 + $0x84] ss:$8 sps:$4 sm:$0xff]  }
 0x35c   :  { %5423 = vmatprep.subr.bf16.mxu1 %v7250_v43  ;;  %v7302_v43 = vld [vmem:[#allocation9 + $0x7e8] ss:$16 sps:$4 sm:$0xff]  }
 0x35f   :  { %5424 = vmatpush1.bf16.msra.mxu1 %v7248_v52  ;;  %v7329_v52 = vld [vmem:[#allocation12 + $0x80] ss:$8 sps:$4 sm:$0xff]  }
 0x360   :  { %5425 = vmatprep.subr.bf16.mxu1 %v7256_v44  ;;  %v7334_v44 = vld [vmem:[#allocation12 + $0x94] ss:$8 sps:$4 sm:$0xff]  }
 0x363   :  { %5426 = vmatpush1.bf16.msra.mxu1 %v7254_v45  ;;  %v7332_v45 = vld [vmem:[#allocation12 + $0x90] ss:$8 sps:$4 sm:$0xff]  }
 0x364   :  { %5427 = vmatprep.subr.bf16.mxu1 %v7262_v33  ;;  %v7337_v33 = vld [vmem:[#allocation12 + $0xa4] ss:$8 sps:$4 sm:$0xff]  }
 0x367   :  { %5428 = vmatpush1.bf16.msra.mxu1 %v7260_v46  ;;  %v7340_v46 = vld [vmem:[#allocation12 + $0xb4] ss:$8 sps:$4 sm:$0xff]  }
 0x368   :  { %5429 = vmatprep.subr.bf16.mxu1 %v7268_v14  ;;  %v7343_v14 = vld [vmem:[#allocation12 + $0xc4] ss:$8 sps:$4 sm:$0xff]  }
 0x369   :  { %v3543_v16 = vpop.f32.mrb[8].mxu1 }
 0x36a   :  { %v6817_v55 = vadd.f32 %v3543_v16, %v616_v48  ;;  %v3545_v56 = vpop.f32.mrb[9].mxu1  ;;  %v7341_v48 = vld [vmem:[#allocation12 + $0xc0] ss:$8 sps:$4 sm:$0xff]  }
 0x36b   :  { %v6818_v60 = vadd.f32 %v3545_v56, %v620_v58  ;;  %v3547_v63 = vpop.f32.mrb[10].mxu1  ;;  %5430 = vmatpush1.bf16.msra.mxu1 %v7266_v50  ;;  %v7346_v58 = vld [vmem:[#allocation12 + $0xd4] ss:$8 sps:$4 sm:$0xff]   ;;  %v7344_v50 = vld [vmem:[#allocation12 + $0xd0] ss:$8 sps:$4 sm:$0xff]  }
 0x36c   :  { %v3556_v37 = vpack.c.bf16 %v6817_v55, %v6817_v55  ;;  %v3548_v2 = vpop.f32.mrb[11].mxu1  ;;  %5431 = vmatprep.subr.bf16.mxu1 %v7274_v51  ;;  %v7349_v51 = vld [vmem:[#allocation12 + $0xe4] ss:$8 sps:$4 sm:$0xff]   ;;  %v7347_v16 = vld [vmem:[#allocation12 + $0xe0] ss:$8 sps:$4 sm:$0xff]  }
 0x36d   :  { %v3557_v21 = vpack.c.bf16 %v6818_v60, %v6818_v60  ;;  %v7352_v55 = vld [vmem:[#allocation12 + $0xf4] ss:$8 sps:$4 sm:$0xff]   ;;  %v7350_v56 = vld [vmem:[#allocation12 + $0xf0] ss:$8 sps:$4 sm:$0xff]   ;;  %v7355_v60 = vld [vmem:[#allocation12 + $0x104] ss:$8 sps:$4 sm:$0xff]  }
 0x36e   :  { %v3564_v4 = vmul.bf16 1045249613, %v3556_v37  ;;  %v7912_v63 = vld [vmem:[#allocation11] sm:$0xf] }
 0x36f   :  { %v3565_v5 = vmul.bf16 1045249613, %v3557_v21  ;;  %5432 = vmatpush1.bf16.msra.mxu1 %v7272_v1  ;;  %v3835_v1 = vrot.slane %v7912_v63, %v7844_v3 }
 0x370   :  { %5433 = vmatprep.subr.bf16.mxu1 %v7280_v61  ;;  %v7908_v10 = vmax.bf16 %v3564_v4, %v3556_v37  ;;  %v3839_v37 = vrot.slane %v7912_v63, %v7849_v8 }
 0x371   :  { %v3573_v31 = vmax.bf16 %v3565_v5, %v3557_v21 }
 0x373   :  { %5287 = vmatprep.mubr.bf16.mxu0 %v3573_v31  ;;  %5434 = vmatpush1.bf16.msra.mxu1 %v7278_v28 }
 0x374   :  { %5451 = vmatprep.mubr.bf16.mxu1 %v3573_v31  ;;  %5288 = vmatmul.mubr.bf16.vlgmr.msra.gmra.mrb[8].mxu0 %v7908_v10 }
 0x375   :  { %5435 = vmatprep.subr.bf16.mxu1 %v7283_v6  ;;  %5869 = vmatpush1.bf16.msra.mxu0 %v7305_v9 }
 0x376   :  { %5870 = vmatprep.subr.bf16.mxu0 %v7310_v11 }
 0x377   :  { %5436 = vmatpush1.bf16.msra.mxu1 %v7281_v22  ;;  %v7353_v22 = vld [vmem:[#allocation12 + $0x100] ss:$8 sps:$4 sm:$0xff]  }
 0x378   :  { %5437 = vmatprep.subr.bf16.mxu1 %v7286_v12 }
 0x379   :  { %5871 = vmatpush1.bf16.msra.mxu0 %v7308_v13  ;;  %v7358_v13 = vld [vmem:[#allocation12 + $0x114] ss:$8 sps:$4 sm:$0xff]  }
 0x37a   :  { %5872 = vmatprep.subr.bf16.mxu0 %v7313_v15  ;;  %v7356_v15 = vld [vmem:[#allocation12 + $0x110] ss:$8 sps:$4 sm:$0xff]  }
 0x37b   :  { %5438 = vmatpush1.bf16.msra.mxu1 %v7284_v17  ;;  %v7361_v17 = vld [vmem:[#allocation12 + $0x124] ss:$8 sps:$4 sm:$0xff]  }
 0x37c   :  { %5439 = vmatprep.subr.bf16.mxu1 %v7289_v18  ;;  %v7359_v18 = vld [vmem:[#allocation12 + $0x120] ss:$8 sps:$4 sm:$0xff]  }
 0x37d   :  { %5873 = vmatpush1.bf16.msra.mxu0 %v7311_v20  ;;  %v7364_v20 = vld [vmem:[#allocation12 + $0x134] ss:$8 sps:$4 sm:$0xff]  }
 0x37e   :  { %5874 = vmatprep.subr.bf16.mxu0 %v7316_v7  ;;  %v7362_v7 = vld [vmem:[#allocation12 + $0x130] ss:$8 sps:$4 sm:$0xff]  }
 0x37f   :  { %5440 = vmatpush1.bf16.msra.mxu1 %v7287_v23  ;;  %v7367_v23 = vld [vmem:[#allocation12 + $0x144] ss:$8 sps:$4 sm:$0xff]  }
 0x380   :  { %5441 = vmatprep.subr.bf16.mxu1 %v7292_v24  ;;  %v7365_v24 = vld [vmem:[#allocation12 + $0x140] ss:$8 sps:$4 sm:$0xff]  }
 0x381   :  { %5875 = vmatpush1.bf16.msra.mxu0 %v7314_v25  ;;  %v7370_v25 = vld [vmem:[#allocation12 + $0x154] ss:$8 sps:$4 sm:$0xff]  }
 0x382   :  { %5876 = vmatprep.subr.bf16.mxu0 %v7319_v26  ;;  %v7368_v26 = vld [vmem:[#allocation12 + $0x150] ss:$8 sps:$4 sm:$0xff]  }
 0x383   :  { %5442 = vmatpush1.bf16.msra.mxu1 %v7290_v53  ;;  %v7373_v53 = vld [vmem:[#allocation12 + $0x164] ss:$8 sps:$4 sm:$0xff]  }
 0x384   :  { %5443 = vmatprep.subr.bf16.mxu1 %v7295_v27  ;;  %v7371_v27 = vld [vmem:[#allocation12 + $0x160] ss:$8 sps:$4 sm:$0xff]  }
 0x385   :  { %5877 = vmatpush1.bf16.msra.mxu0 %v7317_v54  ;;  %v3847_v54 = vrot.slane %v7912_v63, %v603_v62  ;;  %v7380_v62 = vld [vmem:[#allocation12 + $0x190] ss:$8 sps:$4 sm:$0xff]  }
 0x386   :  { %5878 = vmatprep.subr.bf16.mxu0 %v7322_v29  ;;  %v7376_v29 = vld [vmem:[#allocation12 + $0x174] ss:$8 sps:$4 sm:$0xff]  }
 0x387   :  { %5444 = vmatpush1.bf16.msra.mxu1 %v7293_v30 }
 0x388   :  { %5445 = vmatprep.subr.bf16.mxu1 %v7298_v32 }
 0x389   :  { %5879 = vmatpush1.bf16.msra.mxu0 %v7320_v34 }
 0x38a   :  { %5880 = vmatprep.subr.bf16.mxu0 %v7325_v35 }
 0x38b   :  { %5446 = vmatpush1.bf16.msra.mxu1 %v7296_v38  ;;  %v7374_v38 = vld [vmem:[#allocation12 + $0x170] ss:$8 sps:$4 sm:$0xff]  }
 0x38c   :  { %5447 = vmatprep.subr.bf16.mxu1 %v7301_v39 }
 0x38d   :  { %5881 = vmatpush1.bf16.msra.mxu0 %v7323_v40  ;;  %v7379_v40 = vld [vmem:[#allocation12 + $0x184] ss:$8 sps:$4 sm:$0xff]  }
 0x38e   :  { %5882 = vmatprep.subr.bf16.mxu0 %v7328_v41 }
 0x38f   :  { %5448 = vmatpush1.bf16.msra.mxu1 %v7299_v47 }
 0x390   :  { %5449 = vmatprep.subr.bf16.mxu1 %v7304_v42  ;;  %v7377_v42 = vld [vmem:[#allocation12 + $0x180] ss:$8 sps:$4 sm:$0xff]  }
 0x391   :  { %5883 = vmatpush1.bf16.msra.mxu0 %v7326_v36  ;;  %v7382_v36 = vld [vmem:[#allocation12 + $0x194] ss:$8 sps:$4 sm:$0xff]  }
 0x392   :  { %5884 = vmatprep.subr.bf16.mxu0 %v7331_v19 }
 0x393   :  { %5450 = vmatpush1.bf16.msra.mxu1 %v7302_v43  ;;  %v7385_v43 = vld [vmem:[#allocation12 + $0x1a4] ss:$8 sps:$4 sm:$0xff]  }
 0x395   :  { %5885 = vmatpush1.bf16.msra.mxu0 %v7329_v52  ;;  %v7383_v52 = vld [vmem:[#allocation12 + $0x1a0] ss:$8 sps:$4 sm:$0xff]  }
 0x396   :  { %5452 = vmatmul.mubr.bf16.vlgmr.msra.gmra.mrb[12].mxu1 %v7908_v10  ;;  %5886 = vmatprep.subr.bf16.mxu0 %v7334_v44  ;;  %v7388_v44 = vld [vmem:[#allocation12 + $0x1b4] ss:$8 sps:$4 sm:$0xff]  }
 0x399   :  { %5887 = vmatpush1.bf16.msra.mxu0 %v7332_v45  ;;  %v7386_v45 = vld [vmem:[#allocation12 + $0x1b0] ss:$8 sps:$4 sm:$0xff]  }
 0x39a   :  { %5888 = vmatprep.subr.bf16.mxu0 %v7337_v33  ;;  %v7391_v33 = vld [vmem:[#allocation12 + $0x1c4] ss:$8 sps:$4 sm:$0xff]  }
 0x39d   :  { %5889 = vmatpush1.bf16.msra.mxu0 %v7335_v0  ;;  %v7389_v0 = vld [vmem:[#allocation12 + $0x1c0] ss:$8 sps:$4 sm:$0xff]  }
 0x39e   :  { %5890 = vmatprep.subr.bf16.mxu0 %v7340_v46  ;;  %v3843_v46 = vrot.slane %v7912_v63, %v599_v59  ;;  %v5536_v59 = vld [vmem:[#allocation14] sm:$0x3] }
 0x39f   :  { %v5545_v63 = vrot.slane %v5536_v59, %v7849_v8 }
 0x3a1   :  { %5891 = vmatpush1.bf16.msra.mxu0 %v7338_v49  ;;  %v7394_v49 = vld [vmem:[#allocation12 + $0x1d4] ss:$8 sps:$4 sm:$0xff]  }
 0x3a2   :  { %5892 = vmatprep.subr.bf16.mxu0 %v7343_v14  ;;  %v7392_v14 = vld [vmem:[#allocation12 + $0x1d0] ss:$8 sps:$4 sm:$0xff]  }
 0x3a5   :  { %5893 = vmatpush1.bf16.msra.mxu0 %v7341_v48 }
 0x3a6   :  { %5894 = vmatprep.subr.bf16.mxu0 %v7346_v58  ;;  %v7397_v58 = vld [vmem:[#allocation12 + $0x1e4] ss:$8 sps:$4 sm:$0xff]  }
 0x3a9   :  { %5895 = vmatpush1.bf16.msra.mxu0 %v7344_v50  ;;  %v7395_v50 = vld [vmem:[#allocation12 + $0x1e0] ss:$8 sps:$4 sm:$0xff]  }
 0x3aa   :  { %5896 = vmatprep.subr.bf16.mxu0 %v7349_v51 }
 0x3ad   :  { %5897 = vmatpush1.bf16.msra.mxu0 %v7347_v16  ;;  %v7400_v16 = vld [vmem:[#allocation12 + $0x1f4] ss:$8 sps:$4 sm:$0xff]  }
 0x3ae   :  { %5898 = vmatprep.subr.bf16.mxu0 %v7352_v55  ;;  %v7398_v55 = vld [vmem:[#allocation12 + $0x1f0] ss:$8 sps:$4 sm:$0xff]  }
 0x3b1   :  { %5899 = vmatpush1.bf16.msra.mxu0 %v7350_v56 }
 0x3b2   :  { %5909 = vmatprep.subr.bf16.mxu0 %v7355_v60  ;;  %v5541_v60 = vrot.slane %v5536_v59, %v7844_v3 }
 0x447   :  { %v5289_v2 = vpop.f32.mrb[8].mxu0 }
 0x448   :  { %v6819_v61 = vadd.f32 %v5289_v2, %v3835_v1  ;;  %v5291_v21 = vpop.f32.mrb[9].mxu0 }
 0x449   :  { %v6820_v4 = vadd.f32 %v5291_v21, %v3839_v37  ;;  %v5293_v5 = vpop.f32.mrb[10].mxu0  ;;  %v5954_v37 = vld [vmem:[#allocation15] sm:$0x3] }
 0x44a   :  { %v5460_v28 = vpack.c.bf16 %v6819_v61, %v6819_v61  ;;  %v5294_v31 = vpop.f32.mrb[11].mxu0 }
 0x44b   :  { %v5461_v6 = vpack.c.bf16 %v6820_v4, %v6820_v4  ;;  %v5959_v31 = vrot.slane %v5954_v37, %v7844_v3 }
 0x44c   :  { %v5464_v9 = vmul.bf16 1045249613, %v5460_v28 }
 0x44d   :  { %v5465_v10 = vmul.bf16 1045249613, %v5461_v6 }
 0x44e   :  { %v5468_v12 = vmax.bf16 %v5464_v9, %v5460_v28  ;;  %v5963_v9 = vrot.slane %v5954_v37, %v7849_v8 }
 0x44f   :  { %v5469_v11 = vmax.bf16 %v5465_v10, %v5461_v6 }
 0x451   :  { %5900 = vmatprep.mubr.bf16.mxu0 %v5469_v11 }
 0x452   :  { %5901 = vmatmul.mubr.bf16.vlgmr.msra.gmra.mrb[12].mxu0 %v5468_v12 }
 0x453   :  { %5910 = vmatpush1.bf16.msra.mxu0 %v7353_v22 }
 0x454   :  { %5911 = vmatprep.subr.bf16.mxu0 %v7358_v13 }
 0x457   :  { %5912 = vmatpush1.bf16.msra.mxu0 %v7356_v15  ;;  %v5972_v15 = vstv %s7951_s8 }
 0x458   :  { %5913 = vmatprep.subr.bf16.mxu0 %v7361_v17 }
 0x45b   :  { %5914 = vmatpush1.bf16.msra.mxu0 %v7359_v18 }
 0x45c   :  { %5915 = vmatprep.subr.bf16.mxu0 %v7364_v20 }
 0x45f   :  { %5916 = vmatpush1.bf16.msra.mxu0 %v7362_v7 }
 0x460   :  { %5917 = vmatprep.subr.bf16.mxu0 %v7367_v23 }
 0x463   :  { %5918 = vmatpush1.bf16.msra.mxu0 %v7365_v24 }
 0x464   :  { %5919 = vmatprep.subr.bf16.mxu0 %v7370_v25 }
 0x467   :  { %5920 = vmatpush1.bf16.msra.mxu0 %v7368_v26 }
 0x468   :  { %5921 = vmatprep.subr.bf16.mxu0 %v7373_v53 }
 0x469   :  { %v5453_v30 = vpop.f32.mrb[12].mxu1 }
 0x46a   :  { %v5455_v32 = vpop.f32.mrb[13].mxu1  ;;  %v6821_v48 = vadd.f32 %v5453_v30, %v3843_v46 }
 0x46b   :  { %v6822_v34 = vadd.f32 %v5455_v32, %v3847_v54  ;;  %5922 = vmatpush1.bf16.msra.mxu0 %v7371_v27  ;;  %v5457_v35 = vpop.f32.mrb[14].mxu1 }
 0x46c   :  { %v5458_v39 = vpop.f32.mrb[15].mxu1  ;;  %5923 = vmatprep.subr.bf16.mxu0 %v7376_v29  ;;  %v5462_v51 = vpack.c.bf16 %v6821_v48, %v6821_v48 }
 0x46d   :  { %v5463_v41 = vpack.c.bf16 %v6822_v34, %v6822_v34 }
 0x46e   :  { %v5466_v56 = vmul.bf16 1045249613, %v5462_v51 }
 0x46f   :  { %v5467_v47 = vmul.bf16 1045249613, %v5463_v41  ;;  %5924 = vmatpush1.bf16.msra.mxu0 %v7374_v38 }
 0x470   :  { %5925 = vmatprep.subr.bf16.mxu0 %v7379_v40  ;;  %v5470_v57 = vmax.bf16 %v5466_v56, %v5462_v51 }
 0x471   :  { %v5471_v19 = vmax.bf16 %v5467_v47, %v5463_v41 }
 0x473   :  { %5926 = vmatpush1.bf16.msra.mxu0 %v7377_v42  ;;  %5941 = vmatprep.mubr.bf16.mxu0 %v5471_v19 }
 0x474   :  { %5927 = vmatprep.subr.bf16.mxu0 %v7382_v36 }
 0x477   :  { %5928 = vmatpush1.bf16.msra.mxu0 %v7380_v62 }
 0x478   :  { %5929 = vmatprep.subr.bf16.mxu0 %v7385_v43 }
 0x47b   :  { %5930 = vmatpush1.bf16.msra.mxu0 %v7383_v52 }
 0x47c   :  { %5931 = vmatprep.subr.bf16.mxu0 %v7388_v44 }
 0x47f   :  { %5932 = vmatpush1.bf16.msra.mxu0 %v7386_v45 }
 0x480   :  { %5933 = vmatprep.subr.bf16.mxu0 %v7391_v33 }
 0x483   :  { %5934 = vmatpush1.bf16.msra.mxu0 %v7389_v0 }
 0x484   :  { %5935 = vmatprep.subr.bf16.mxu0 %v7394_v49 }
 0x487   :  { %5936 = vmatpush1.bf16.msra.mxu0 %v7392_v14 }
 0x488   :  { %5937 = vmatprep.subr.bf16.mxu0 %v7397_v58 }
 0x48b   :  { %5938 = vmatpush1.bf16.msra.mxu0 %v7395_v50 }
 0x48c   :  { %5939 = vmatprep.subr.bf16.mxu0 %v7400_v16 }
 0x48f   :  { %5940 = vmatpush1.bf16.msra.mxu0 %v7398_v55 }
 0x492   :  { %5942 = vmatmul.mubr.bf16.vlgmr.msra.gmra.mrb[12].mxu0 %v5470_v57 }
 0x565   :  { %v5943_v1 = vpop.f32.mrb[12].mxu0 }
 0x566   :  { %v6823_v2 = vadd.f32 %v5943_v1, %v5541_v60  ;;  %v5945_v61 = vpop.f32.mrb[13].mxu0 }
 0x567   :  { %v6824_v21 = vadd.f32 %v5945_v61, %v5545_v63  ;;  %v5947_v4 = vpop.f32.mrb[14].mxu0 }
 0x568   :  { %v5950_v5 = vmul.f32 0.2, %v6823_v2  ;;  %v5948_v28 = vpop.f32.mrb[15].mxu0 }
 0x569   :  { %v5951_v6 = vmul.f32 0.2, %v6824_v21 }
 0x56a   :  { %v5952_v10 = vmax.f32 %v6823_v2, %v5950_v5 }
 0x56b   :  { %v5953_v11 = vmax.f32 %v6824_v21, %v5951_v6 }
 0x56c   :  { %v5966_v22 = vmul.f32 %v5959_v31, %v5952_v10 }
 0x56d   :  { %v5967_v12 = vmul.f32 %v5963_v9, %v5953_v11 }
 0x56f   :  { %v5968_v13 = vadd.f32 %v5967_v12, %v5966_v22 }
 0x571   :  { %5969 = vadd.xlane.f32.xlu0 %v5968_v13 }
 0x5fe   :  { %v5970_v17 = vpop.xlane.xlu0 %5969 }
 0x5ff   :  { %v5973_v18 = vadd.f32 %v5972_v15, %v5970_v17 }
 0x601   :  { %v6808_v20 = vmul.f32 -1.442695, %v5973_v18 }
 0x603   :  { %7401 = vpow2.f32 %v6808_v20 }
 0x60d   :  { %v7402_v7 = vpop.eup %7401 }
 0x60e   :  { %v5977_v23 = vadd.f32 1.0, %v7402_v7 }
 0x610   :  { %7403 = vrcp.f32 %v5977_v23 }
 0x61a   :  { %v7404_v3 = vpop.eup %7403 }
 0x61b   :  { %5980 = vxpose.xlu0.b32.start.end [1/1] (short) (narrow) %v7404_v3, 8 }
 0x69b   :  { %v5996_v8 = vpop.trf.xlu0 }
 0x69c   :  { %6013 = vst.msk [vmem:[#allocation17] sm:$0x1] %vm6012_vm0, %v5996_v8 }
 0x69d   :  { %7595 = shalt.err (!%p7592_p12)
}
 0x69e   :  { %s7596_s16 = scalar_lea.hbm %s7952_s9, 16 }
 0x69f   :  { %p7597_p13 = scmp.ne.s32.totalorder %s7952_s9, %s7596_s16  ;;  %p7600_p0 = scmp.lt.u32.totalorder %s7596_s16, %s7952_s9 }
 0x6a1   :  { %p7602_p1 = pnand %p7600_p0, %p7597_p13 }
 0x6a3   :  { %7605 = shalt.err (!%p7602_p1)
}
 0x6a4   :  { %6023 = dma.vmem_to_hbm [thread:$0]  %s6021_s17, 16, %s7952_s9, [#allocation5]  }
 0x6a5   :  { %7616 = dma.done.wait [#allocation5], 16  }
 0x6a6   :  { %7617 = vsyncadd [#allocation5], 4294967280 }
 0x6a7   :  { %6027 = vsyncpa [#allocation4], 1 }
 0x6a8   :  { %6028 = vsyncpa [#allocation7], 1 }
 0x6a9   :  { %6029 = vsyncpa [#allocation10], 1 }
 0x6aa   :  { %6030 = vsyncpa [#allocation13], 1 }
 0x6ab   :  { %6031 = vsyncpa [#allocation16], 1 }
 0x6ac   :  { %6032 = vsyncpa [#allocation5], 1 }

</bundles_post_ra>
